<compile_context>
chip_gen: v7x
topology: tpu7x:2x2x1
jax: 0.10.0
libtpu: 0.0.40
codegen_flags: <defaults>
</compile_context>

<pallas_src>
import functools

import jax
import jax.numpy as jnp
from jax.experimental import pallas as pl
from jax.experimental.pallas import tpu as pltpu


def _pair(v):
    return tuple(v) if isinstance(v, (tuple, list)) else (v, v)


# --------------------------- VMEM budgeting ----------------------------------
_VMEM_BUDGET = 20 * 1024 * 1024      # tile-selection budget: fits every generation
_VMEM_LIMIT_CAP = 48 * 1024 * 1024   # below v7x's 64 MiB physical VMEM


def _vmem_bytes(pt, cin, cout, kk, h, wp, acc_itemsize):
    """Whole-kernel VMEM estimate for one grid step, incl. Pallas's default
    double buffering of the pipelined operands (not just the S temporaries)."""
    hwp = h * wp
    b = 2 * cin * hwp * 2                  # x        bf16, x2 buffers
    b += 2 * 3 * kk * pt * 4               # coords   f32,  x2 buffers
    b += 2 * cout * kk * cin * 2           # weight   bf16, x2 buffers
    b += 2 * cout * 4                      # bias
    b += 2 * cout * pt * 4                 # output   f32,  x2 buffers
    b += kk * cin * pt * acc_itemsize      # acc scratch
    # per-tap temporaries (f32 outer product + bf16 MXU operand + small factors),
    # with ~2 taps' worth of scheduling slack.
    b += 2 * (hwp * pt * 6 + (h + wp) * pt * 8)
    return b


def _choose_p_tile(p_pad, batch, cin, cout, kk, h, wp, acc_itemsize):
    """Largest lane-dense P tile that divides the padded P and fits the budget."""
    pt = 128
    for cand in (1024, 512, 256, 128):     # prefer >=256: v6e/v7x MXU is 256 wide
        if p_pad % cand == 0 and _vmem_bytes(cand, cin, cout, kk, h, wp,
                                             acc_itemsize) <= _VMEM_BUDGET:
            pt = cand
            break
    # TODO(synk): very large H*W needs an HW-windowed sampling path (restrict the
    # contraction to each tile's receptive field); the dense-grid path just takes
    # the smallest lane-dense tile here.
    # v7x megacore: keep >=2 grid steps when B == 1 so both TensorCores get work.
    if batch == 1 and pt == p_pad and p_pad % 256 == 0:
        pt = p_pad // 2
    return pt


# ----------------------------- Pallas kernel ---------------------------------
def _mdcn_kernel(x_ref, cm_ref, w_ref, b_ref, o_ref, acc_ref, *, kk, h, wp):
    """One (batch, P-tile) step: fuse all K*K taps, one deep output matmul."""
    cin = x_ref.shape[0]
    pt = cm_ref.shape[1]
    hwp = h * wp

    # Loop-invariant separable grid coordinates (2-D iotas, no div/mod).
    hg = jax.lax.broadcasted_iota(jnp.int32, (h, pt), 0).astype(jnp.float32)
    wg = jax.lax.broadcasted_iota(jnp.int32, (wp, pt), 0).astype(jnp.float32)

    x_bf = x_ref[...]                                        # bf16 [Cin, HWp]

    # KK is small (e.g. 9): keep the tap loop unrolled; per-tap live temporaries
    # are small now that the bilinear weights are built separably.
    for k in range(kk):
        yy = cm_ref[k:k + 1, :]                              # [1, Pt] sample y
        xx = cm_ref[kk + k:kk + k + 1, :]                    # [1, Pt] sample x
        mm = cm_ref[2 * kk + k:2 * kk + k + 1, :]            # [1, Pt] modulation

        # Separable triangular (bilinear) weights on the small factors; the
        # modulation mask is folded into the x-factor.  Out-of-range coordinates
        # naturally get zero weight (CUDA zero-padding behaviour).
        sy = jnp.maximum(0.0, 1.0 - jnp.abs(hg - yy))        # [H,  Pt] f32
        sx = jnp.maximum(0.0, 1.0 - jnp.abs(wg - xx)) * mm   # [Wp, Pt] f32

        # Outer product -> dense weights over the (padded) input grid.  The
        # reshape is layout-free because Wp % 8 == 0.
        s = (sy[:, None, :] * sx[None, :, :]).reshape(hwp, pt)
        s = s.astype(jnp.bfloat16)                           # [HWp, Pt]

        # bf16-in / f32-accumulate MXU sampling matmul (mask already folded).
        sampled = jnp.dot(x_bf, s, preferred_element_type=jnp.float32)
        acc_ref[k * cin:(k + 1) * cin, :] = sampled.astype(acc_ref.dtype)

    # Single deep contraction over KK*Cin (instead of KK shallow Cin matmuls).
    s_all = acc_ref[...].astype(jnp.bfloat16)                # [KK*Cin, Pt]
    out = jnp.dot(w_ref[...], s_all, preferred_element_type=jnp.float32)
    o_ref[...] = out + b_ref[...]                            # lane-dense store


# ------------------------------- wrapper --------------------------------------
def modulated_deform_conv(x, offset, mask, weight, bias,
                          stride=1, padding=0, dilation=1,
                          groups=1, deformable_groups=1):
    # TODO(synk): only groups == 1 and deformable_groups == 1 are implemented.
    assert groups == 1 and deformable_groups == 1

    sh, sw = _pair(stride)
    ph, pw = _pair(padding)
    dh, dw = _pair(dilation)
    B, Cin, H, W = x.shape
    Cout, _, KH, KW = weight.shape
    KK = KH * KW
    Ho = (H + 2 * ph - (dh * (KH - 1) + 1)) // sh + 1
    Wo = (W + 2 * pw - (dw * (KW - 1) + 1)) // sw + 1
    P = Ho * Wo

    # Pad W to a multiple of 8 (sublane tile) so the in-kernel [H,Wp,Pt]->[HWp,Pt]
    # reshape is layout-free; padded columns hold zeros so they contribute 0,
    # identical to the zero-padding semantics of the CUDA kernel.
    Wp = ((W + 7) // 8) * 8
    if Wp != W:
        x = jnp.pad(x, ((0, 0), (0, 0), (0, 0), (0, Wp - W)))
    HWp = H * Wp
    # bf16 inputs -> full-rate MXU; all accumulation stays f32 in-kernel.
    x_flat = x.reshape(B, Cin, HWp).astype(jnp.bfloat16)

    # offset channel layout (per deformable group): [2*k] = dy, [2*k+1] = dx
    off = offset.reshape(B, KK, 2, Ho, Wo).astype(jnp.float32)
    ki = (jnp.arange(KK) // KW).astype(jnp.float32)
    kj = (jnp.arange(KK) % KW).astype(jnp.float32)
    base_y = ((jnp.arange(Ho, dtype=jnp.float32) * sh - ph)[None, :, None]
              + (ki * dh)[:, None, None])                    # [KK, Ho, 1]
    base_x = ((jnp.arange(Wo, dtype=jnp.float32) * sw - pw)[None, None, :]
              + (kj * dw)[:, None, None])                    # [KK, 1, Wo]
    samp_y = (off[:, :, 0] + base_y[None]).reshape(B, KK, P)
    samp_x = (off[:, :, 1] + base_x[None]).reshape(B, KK, P)
    mask_r = mask.reshape(B, KK, P).astype(jnp.float32)
    # Single lane-dense packed input: rows [0,KK) = y, [KK,2KK) = x, [2KK,3KK) = mask.
    cm = jnp.concatenate([samp_y, samp_x, mask_r], axis=1)   # [B, 3*KK, P]

    # Pad P to a multiple of 128 with far-out-of-range coordinates (all weights
    # become zero) so output stores stay unmasked; padding is sliced off below.
    P_pad = ((P + 127) // 128) * 128
    if P_pad != P:
        cm = jnp.pad(cm, ((0, 0), (0, 0), (0, P_pad - P)), constant_values=-1e4)

    # bf16 acc scratch when C_in is 16-aligned (perfectly aligned bf16 slices,
    # half the scratch, no f32 re-read pass); f32 fallback otherwise.
    acc_dtype = jnp.bfloat16 if Cin % 16 == 0 else jnp.float32
    acc_sz = jnp.dtype(acc_dtype).itemsize
    Pt = _choose_p_tile(P_pad, B, Cin, Cout, KK, H, Wp, acc_sz)
    est = _vmem_bytes(Pt, Cin, Cout, KK, H, Wp, acc_sz)
    vmem_limit = int(min(max(2 * est, 32 * 1024 * 1024), _VMEM_LIMIT_CAP))

    # weight [Cout, Cin, KH, KW] -> [Cout, KK*Cin] (row-block k holds tap k).
    w2 = jnp.transpose(weight.reshape(Cout, Cin, KK), (0, 2, 1)
                       ).reshape(Cout, KK * Cin).astype(jnp.bfloat16)
    if bias is None:
        bias = jnp.zeros((Cout,), jnp.float32)
    b_r = bias.reshape(Cout, 1).astype(jnp.float32)

    kernel = functools.partial(_mdcn_kernel, kk=KK, h=H, wp=Wp)
    out = pl.pallas_call(
        kernel,
        out_shape=jax.ShapeDtypeStruct((B, Cout, P_pad), jnp.float32),
        grid_spec=pltpu.PrefetchScalarGridSpec(
            num_scalar_prefetch=0,
            grid=(B, P_pad // Pt),
            in_specs=[
                pl.BlockSpec((None, Cin, HWp), lambda b, p: (b, 0, 0)),
                pl.BlockSpec((None, 3 * KK, Pt), lambda b, p: (b, 0, p)),
                pl.BlockSpec((Cout, KK * Cin), lambda b, p: (0, 0)),
                pl.BlockSpec((Cout, 1), lambda b, p: (0, 0)),
            ],
            out_specs=pl.BlockSpec((None, Cout, Pt), lambda b, p: (b, 0, p)),
            scratch_shapes=[pltpu.VMEM((KK * Cin, Pt), acc_dtype)],
        ),
        compiler_params=pltpu.CompilerParams(
            dimension_semantics=("parallel", "parallel"),
            vmem_limit_bytes=vmem_limit),
    )(x_flat, cm, w2, b_r)

    # [B, Cout, P_pad] is already NCHW-flat: drop the P padding, fold into (Ho, Wo).
    return out[:, :, :P].reshape(B, Cout, Ho, Wo)


class ModulatedDeformConv:
    """JAX/Pallas port of QANet ModulatedDeformConv (forward only)."""

    def __init__(self, in_channels, out_channels, kernel_size, stride=1,
                 padding=0, dilation=1, groups=1, deformable_groups=1,
                 bias=True, *, key):
        self.in_channels = in_channels
        self.out_channels = out_channels
        self.kernel_size = _pair(kernel_size)
        self.stride = _pair(stride)
        self.padding = _pair(padding)
        self.dilation = _pair(dilation)
        self.groups = groups
        self.deformable_groups = deformable_groups
        kh, kw = self.kernel_size
        fan_in = (in_channels // groups) * kh * kw
        bound = (2.0 ** 0.5) * (3.0 / fan_in) ** 0.5   # kaiming_uniform, relu
        self.weight = jax.random.uniform(
            key, (out_channels, in_channels // groups, kh, kw),
            jnp.float32, minval=-bound, maxval=bound)
        self.bias = jnp.zeros((out_channels,), jnp.float32) if bias else None

    def __call__(self, x, offset, mask):
        return modulated_deform_conv(
            x, offset, mask, self.weight, self.bias, self.stride,
            self.padding, self.dilation, self.groups, self.deformable_groups)


# --------------------------- pure-JAX reference -------------------------------
def _ref_forward(x, offset, mask, weight, bias, stride, padding, dilation):
    sh, sw = stride
    ph, pw = padding
    dh, dw = dilation
    B, Cin, H, W = x.shape
    Cout, _, KH, KW = weight.shape
    KK = KH * KW
    Ho = (H + 2 * ph - (dh * (KH - 1) + 1)) // sh + 1
    Wo = (W + 2 * pw - (dw * (KW - 1) + 1)) // sw + 1

    off = offset.reshape(B, KK, 2, Ho, Wo)
    ki = (jnp.arange(KK) // KW).astype(jnp.float32)
    kj = (jnp.arange(KK) % KW).astype(jnp.float32)
    base_y = ((jnp.arange(Ho, dtype=jnp.float32) * sh - ph)[None, :, None]
              + (ki * dh)[:, None, None])
    base_x = ((jnp.arange(Wo, dtype=jnp.float32) * sw - pw)[None, None, :]
              + (kj * dw)[:, None, None])
    y = off[:, :, 0] + base_y[None]                 # [B, KK, Ho, Wo]
    xc = off[:, :, 1] + base_x[None]

    y0 = jnp.floor(y)
    x0 = jnp.floor(xc)
    wy1 = y - y0
    wy0 = 1.0 - wy1
    wx1 = xc - x0
    wx0 = 1.0 - wx1

    def corner(yc, xcc, w):
        valid = (yc >= 0) & (yc < H) & (xcc >= 0) & (xcc < W)
        yi = jnp.clip(yc, 0, H - 1).astype(jnp.int32)
        xi = jnp.clip(xcc, 0, W - 1).astype(jnp.int32)
        v = jax.vmap(lambda img, a, b_: img[:, a, b_])(x, yi, xi)   # [B,Cin,KK,Ho,Wo]
        return jnp.where(valid[:, None], v, 0.0) * w[:, None]

    val = (corner(y0, x0, wy0 * wx0) + corner(y0, x0 + 1, wy0 * wx1)
           + corner(y0 + 1, x0, wy1 * wx0) + corner(y0 + 1, x0 + 1, wy1 * wx1))
    val = val * mask[:, None]                        # [B, Cin, KK, Ho, Wo]

    wflat = weight.reshape(Cout, Cin, KK)
    out = jnp.einsum('ock,bckhw->bohw', wflat, val,
                     precision=jax.lax.Precision.HIGHEST)
    return out + bias[None, :, None, None]


# ------------------------------------ main ------------------------------------
if __name__ == "__main__":
    key = jax.random.PRNGKey(0)
    k_w, k_x, k_o, k_m = jax.random.split(key, 4)

    B, Cin, H, W = 2, 4, 16, 16
    Cout, K = 8, 3
    stride, padding, dilation = 1, 1, 1

    conv = ModulatedDeformConv(Cin, Cout, K, stride=stride, padding=padding,
                               dilation=dilation, bias=True, key=k_w)

    x = jax.random.normal(k_x, (B, Cin, H, W), jnp.float32)
    offset = jax.random.uniform(k_o, (B, 2 * K * K, H, W), jnp.float32,
                                minval=-2.0, maxval=2.0)
    mask = jax.nn.sigmoid(jax.random.normal(k_m, (B, K * K, H, W), jnp.float32))

    out = conv(x, offset, mask)
    out = jax.block_until_ready(out)

    ref = _ref_forward(x, offset, mask, conv.weight, conv.bias,
                       _pair(stride), _pair(padding), _pair(dilation))

    assert out.shape == (B, Cout, H, W), out.shape
    # Kernel feeds the MXU bf16 operands (f32 accumulate), so compare against the
    # f32 reference with a bf16-appropriate tolerance.
    assert jnp.allclose(out, ref, atol=5e-2, rtol=5e-2), \
        float(jnp.max(jnp.abs(out - ref)))
    print("KERNEL_OK")
</pallas_src>

<mosaic_0001>
module attributes {stable_mosaic.version = 11 : i64} {
  func.func @_mdcn_kernel(%arg0: i32, %arg1: i32, %arg2: memref<1x4x256xbf16, #tpu.memory_space<vmem>>, %arg3: memref<1x27x256xf32, #tpu.memory_space<vmem>>, %arg4: memref<8x36xbf16, #tpu.memory_space<vmem>>, %arg5: memref<8x1xf32, #tpu.memory_space<vmem>>, %arg6: memref<1x8x256xf32, #tpu.memory_space<vmem>>, %arg7: memref<36x256xf32, #tpu.memory_space<vmem>>) attributes {dimension_semantics = [#tpu.dimension_semantics<parallel>, #tpu.dimension_semantics<parallel>], iteration_bounds = array<i64: 2, 1>, scalar_prefetch = 0 : i64, scratch_operands = 1 : i64, tpu.core_type = #tpu.core_type<tc>, window_params = [{transform_indices = @transform_0, window_bounds = array<i64: 1, 4, 256>}, {transform_indices = @transform_1, window_bounds = array<i64: 1, 27, 256>}, {pipeline_mode = #tpu.pipeline_mode<synchronous>, transform_indices = @transform_2, window_bounds = array<i64: 8, 36>}, {pipeline_mode = #tpu.pipeline_mode<synchronous>, transform_indices = @transform_3, window_bounds = array<i64: 8, 1>}, {transform_indices = @transform_4, window_bounds = array<i64: 1, 8, 256>}]} {
    %0 = tpu.iota {dimensions = array<i32: 0>} : vector<16x256xi32>
    %1 = arith.sitofp %0 : vector<16x256xi32> to vector<16x256xf32>
    %2 = tpu.iota {dimensions = array<i32: 0>} : vector<16x256xi32>
    %3 = arith.sitofp %2 : vector<16x256xi32> to vector<16x256xf32>
    %c0 = arith.constant 0 : index
    %c0_0 = arith.constant 0 : index
    %c0_1 = arith.constant 0 : index
    %4 = vector.load %arg2[%c0, %c0_0, %c0_1] : memref<1x4x256xbf16, #tpu.memory_space<vmem>>, vector<1x4x256xbf16>
    %5 = vector.shape_cast %4 : vector<1x4x256xbf16> to vector<4x256xbf16>
    %c0_2 = arith.constant 0 : index
    %c0_3 = arith.constant 0 : index
    %c0_4 = arith.constant 0 : index
    %6 = vector.load %arg3[%c0_2, %c0_3, %c0_4] : memref<1x27x256xf32, #tpu.memory_space<vmem>>, vector<1x1x256xf32>
    %7 = vector.shape_cast %6 : vector<1x1x256xf32> to vector<1x256xf32>
    %c0_5 = arith.constant 0 : index
    %c9 = arith.constant 9 : index
    %c0_6 = arith.constant 0 : index
    %8 = vector.load %arg3[%c0_5, %c9, %c0_6] : memref<1x27x256xf32, #tpu.memory_space<vmem>>, vector<1x1x256xf32>
    %9 = vector.shape_cast %8 : vector<1x1x256xf32> to vector<1x256xf32>
    %c0_7 = arith.constant 0 : index
    %c18 = arith.constant 18 : index
    %c0_8 = arith.constant 0 : index
    %10 = vector.load %arg3[%c0_7, %c18, %c0_8] : memref<1x27x256xf32, #tpu.memory_space<vmem>>, vector<1x1x256xf32>
    %11 = vector.shape_cast %10 : vector<1x1x256xf32> to vector<1x256xf32>
    %12 = vector.broadcast %7 : vector<1x256xf32> to vector<16x256xf32>
    %13 = arith.subf %1, %12 : vector<16x256xf32>
    %14 = math.absf %13 : vector<16x256xf32>
    %cst = arith.constant 1.000000e+00 : f32
    %15 = vector.broadcast %cst : f32 to vector<16x256xf32>
    %16 = arith.subf %15, %14 : vector<16x256xf32>
    %cst_9 = arith.constant 0.000000e+00 : f32
    %17 = vector.broadcast %cst_9 : f32 to vector<16x256xf32>
    %18 = arith.maximumf %17, %16 : vector<16x256xf32>
    %19 = vector.broadcast %9 : vector<1x256xf32> to vector<16x256xf32>
    %20 = arith.subf %3, %19 : vector<16x256xf32>
    %21 = math.absf %20 : vector<16x256xf32>
    %cst_10 = arith.constant 1.000000e+00 : f32
    %22 = vector.broadcast %cst_10 : f32 to vector<16x256xf32>
    %23 = arith.subf %22, %21 : vector<16x256xf32>
    %cst_11 = arith.constant 0.000000e+00 : f32
    %24 = vector.broadcast %cst_11 : f32 to vector<16x256xf32>
    %25 = arith.maximumf %24, %23 : vector<16x256xf32>
    %26 = vector.broadcast %11 : vector<1x256xf32> to vector<16x256xf32>
    %27 = arith.mulf %25, %26 : vector<16x256xf32>
    %28 = vector.shape_cast %18 : vector<16x256xf32> to vector<16x1x256xf32>
    %29 = vector.shape_cast %27 : vector<16x256xf32> to vector<1x16x256xf32>
    %30 = vector.broadcast %28 : vector<16x1x256xf32> to vector<16x16x256xf32>
    %31 = vector.broadcast %29 : vector<1x16x256xf32> to vector<16x16x256xf32>
    %32 = arith.mulf %30, %31 : vector<16x16x256xf32>
    %33 = vector.shape_cast %32 : vector<16x16x256xf32> to vector<256x256xf32>
    %34 = arith.truncf %33 : vector<256x256xf32> to vector<256x256xbf16>
    %cst_12 = arith.constant dense<0.000000e+00> : vector<4x256xf32>
    %35 = tpu.matmul %5, %34, %cst_12 {dimension_numbers = #tpu.dot_dimension_numbers<[1], [0], [0], [1], [0, 0, 1, 1], [], []>} : vector<4x256xbf16>, vector<256x256xbf16>, vector<4x256xf32> -> vector<4x256xf32>
    %c0_13 = arith.constant 0 : index
    %c0_14 = arith.constant 0 : index
    %36 = vector.load %arg7[%c0_13, %c0_14] : memref<36x256xf32, #tpu.memory_space<vmem>>, vector<4x256xf32>
    tpu.vector_store %arg7[%c0_13, %c0_14], %35 {strides = array<i32>} : memref<36x256xf32, #tpu.memory_space<vmem>>, vector<4x256xf32>,
    %c0_15 = arith.constant 0 : index
    %c1 = arith.constant 1 : index
    %c0_16 = arith.constant 0 : index
    %37 = vector.load %arg3[%c0_15, %c1, %c0_16] : memref<1x27x256xf32, #tpu.memory_space<vmem>>, vector<1x1x256xf32>
    %38 = vector.shape_cast %37 : vector<1x1x256xf32> to vector<1x256xf32>
    %c0_17 = arith.constant 0 : index
    %c10 = arith.constant 10 : index
    %c0_18 = arith.constant 0 : index
    %39 = vector.load %arg3[%c0_17, %c10, %c0_18] : memref<1x27x256xf32, #tpu.memory_space<vmem>>, vector<1x1x256xf32>
    %40 = vector.shape_cast %39 : vector<1x1x256xf32> to vector<1x256xf32>
    %c0_19 = arith.constant 0 : index
    %c19 = arith.constant 19 : index
    %c0_20 = arith.constant 0 : index
    %41 = vector.load %arg3[%c0_19, %c19, %c0_20] : memref<1x27x256xf32, #tpu.memory_space<vmem>>, vector<1x1x256xf32>
    %42 = vector.shape_cast %41 : vector<1x1x256xf32> to vector<1x256xf32>
    %43 = vector.broadcast %38 : vector<1x256xf32> to vector<16x256xf32>
    %44 = arith.subf %1, %43 : vector<16x256xf32>
    %45 = math.absf %44 : vector<16x256xf32>
    %cst_21 = arith.constant 1.000000e+00 : f32
    %46 = vector.broadcast %cst_21 : f32 to vector<16x256xf32>
    %47 = arith.subf %46, %45 : vector<16x256xf32>
    %cst_22 = arith.constant 0.000000e+00 : f32
    %48 = vector.broadcast %cst_22 : f32 to vector<16x256xf32>
    %49 = arith.maximumf %48, %47 : vector<16x256xf32>
    %50 = vector.broadcast %40 : vector<1x256xf32> to vector<16x256xf32>
    %51 = arith.subf %3, %50 : vector<16x256xf32>
    %52 = math.absf %51 : vector<16x256xf32>
    %cst_23 = arith.constant 1.000000e+00 : f32
    %53 = vector.broadcast %cst_23 : f32 to vector<16x256xf32>
    %54 = arith.subf %53, %52 : vector<16x256xf32>
    %cst_24 = arith.constant 0.000000e+00 : f32
    %55 = vector.broadcast %cst_24 : f32 to vector<16x256xf32>
    %56 = arith.maximumf %55, %54 : vector<16x256xf32>
    %57 = vector.broadcast %42 : vector<1x256xf32> to vector<16x256xf32>
    %58 = arith.mulf %56, %57 : vector<16x256xf32>
    %59 = vector.shape_cast %49 : vector<16x256xf32> to vector<16x1x256xf32>
    %60 = vector.shape_cast %58 : vector<16x256xf32> to vector<1x16x256xf32>
    %61 = vector.broadcast %59 : vector<16x1x256xf32> to vector<16x16x256xf32>
    %62 = vector.broadcast %60 : vector<1x16x256xf32> to vector<16x16x256xf32>
    %63 = arith.mulf %61, %62 : vector<16x16x256xf32>
    %64 = vector.shape_cast %63 : vector<16x16x256xf32> to vector<256x256xf32>
    %65 = arith.truncf %64 : vector<256x256xf32> to vector<256x256xbf16>
    %cst_25 = arith.constant dense<0.000000e+00> : vector<4x256xf32>
    %66 = tpu.matmul %5, %65, %cst_25 {dimension_numbers = #tpu.dot_dimension_numbers<[1], [0], [0], [1], [0, 0, 1, 1], [], []>} : vector<4x256xbf16>, vector<256x256xbf16>, vector<4x256xf32> -> vector<4x256xf32>
    %c4 = arith.constant 4 : index
    %c0_26 = arith.constant 0 : index
    %67 = vector.load %arg7[%c4, %c0_26] : memref<36x256xf32, #tpu.memory_space<vmem>>, vector<4x256xf32>
    tpu.vector_store %arg7[%c4, %c0_26], %66 {strides = array<i32>} : memref<36x256xf32, #tpu.memory_space<vmem>>, vector<4x256xf32>,
    %c0_27 = arith.constant 0 : index
    %c2 = arith.constant 2 : index
    %c0_28 = arith.constant 0 : index
    %68 = vector.load %arg3[%c0_27, %c2, %c0_28] : memref<1x27x256xf32, #tpu.memory_space<vmem>>, vector<1x1x256xf32>
    %69 = vector.shape_cast %68 : vector<1x1x256xf32> to vector<1x256xf32>
    %c0_29 = arith.constant 0 : index
    %c11 = arith.constant 11 : index
    %c0_30 = arith.constant 0 : index
    %70 = vector.load %arg3[%c0_29, %c11, %c0_30] : memref<1x27x256xf32, #tpu.memory_space<vmem>>, vector<1x1x256xf32>
    %71 = vector.shape_cast %70 : vector<1x1x256xf32> to vector<1x256xf32>
    %c0_31 = arith.constant 0 : index
    %c20 = arith.constant 20 : index
    %c0_32 = arith.constant 0 : index
    %72 = vector.load %arg3[%c0_31, %c20, %c0_32] : memref<1x27x256xf32, #tpu.memory_space<vmem>>, vector<1x1x256xf32>
    %73 = vector.shape_cast %72 : vector<1x1x256xf32> to vector<1x256xf32>
    %74 = vector.broadcast %69 : vector<1x256xf32> to vector<16x256xf32>
    %75 = arith.subf %1, %74 : vector<16x256xf32>
    %76 = math.absf %75 : vector<16x256xf32>
    %cst_33 = arith.constant 1.000000e+00 : f32
    %77 = vector.broadcast %cst_33 : f32 to vector<16x256xf32>
    %78 = arith.subf %77, %76 : vector<16x256xf32>
    %cst_34 = arith.constant 0.000000e+00 : f32
    %79 = vector.broadcast %cst_34 : f32 to vector<16x256xf32>
    %80 = arith.maximumf %79, %78 : vector<16x256xf32>
    %81 = vector.broadcast %71 : vector<1x256xf32> to vector<16x256xf32>
    %82 = arith.subf %3, %81 : vector<16x256xf32>
    %83 = math.absf %82 : vector<16x256xf32>
    %cst_35 = arith.constant 1.000000e+00 : f32
    %84 = vector.broadcast %cst_35 : f32 to vector<16x256xf32>
    %85 = arith.subf %84, %83 : vector<16x256xf32>
    %cst_36 = arith.constant 0.000000e+00 : f32
    %86 = vector.broadcast %cst_36 : f32 to vector<16x256xf32>
    %87 = arith.maximumf %86, %85 : vector<16x256xf32>
    %88 = vector.broadcast %73 : vector<1x256xf32> to vector<16x256xf32>
    %89 = arith.mulf %87, %88 : vector<16x256xf32>
    %90 = vector.shape_cast %80 : vector<16x256xf32> to vector<16x1x256xf32>
    %91 = vector.shape_cast %89 : vector<16x256xf32> to vector<1x16x256xf32>
    %92 = vector.broadcast %90 : vector<16x1x256xf32> to vector<16x16x256xf32>
    %93 = vector.broadcast %91 : vector<1x16x256xf32> to vector<16x16x256xf32>
    %94 = arith.mulf %92, %93 : vector<16x16x256xf32>
    %95 = vector.shape_cast %94 : vector<16x16x256xf32> to vector<256x256xf32>
    %96 = arith.truncf %95 : vector<256x256xf32> to vector<256x256xbf16>
    %cst_37 = arith.constant dense<0.000000e+00> : vector<4x256xf32>
    %97 = tpu.matmul %5, %96, %cst_37 {dimension_numbers = #tpu.dot_dimension_numbers<[1], [0], [0], [1], [0, 0, 1, 1], [], []>} : vector<4x256xbf16>, vector<256x256xbf16>, vector<4x256xf32> -> vector<4x256xf32>
    %c8 = arith.constant 8 : index
    %c0_38 = arith.constant 0 : index
    %98 = vector.load %arg7[%c8, %c0_38] : memref<36x256xf32, #tpu.memory_space<vmem>>, vector<4x256xf32>
    tpu.vector_store %arg7[%c8, %c0_38], %97 {strides = array<i32>} : memref<36x256xf32, #tpu.memory_space<vmem>>, vector<4x256xf32>,
    %c0_39 = arith.constant 0 : index
    %c3 = arith.constant 3 : index
    %c0_40 = arith.constant 0 : index
    %99 = vector.load %arg3[%c0_39, %c3, %c0_40] : memref<1x27x256xf32, #tpu.memory_space<vmem>>, vector<1x1x256xf32>
    %100 = vector.shape_cast %99 : vector<1x1x256xf32> to vector<1x256xf32>
    %c0_41 = arith.constant 0 : index
    %c12 = arith.constant 12 : index
    %c0_42 = arith.constant 0 : index
    %101 = vector.load %arg3[%c0_41, %c12, %c0_42] : memref<1x27x256xf32, #tpu.memory_space<vmem>>, vector<1x1x256xf32>
    %102 = vector.shape_cast %101 : vector<1x1x256xf32> to vector<1x256xf32>
    %c0_43 = arith.constant 0 : index
    %c21 = arith.constant 21 : index
    %c0_44 = arith.constant 0 : index
    %103 = vector.load %arg3[%c0_43, %c21, %c0_44] : memref<1x27x256xf32, #tpu.memory_space<vmem>>, vector<1x1x256xf32>
    %104 = vector.shape_cast %103 : vector<1x1x256xf32> to vector<1x256xf32>
    %105 = vector.broadcast %100 : vector<1x256xf32> to vector<16x256xf32>
    %106 = arith.subf %1, %105 : vector<16x256xf32>
    %107 = math.absf %106 : vector<16x256xf32>
    %cst_45 = arith.constant 1.000000e+00 : f32
    %108 = vector.broadcast %cst_45 : f32 to vector<16x256xf32>
    %109 = arith.subf %108, %107 : vector<16x256xf32>
    %cst_46 = arith.constant 0.000000e+00 : f32
    %110 = vector.broadcast %cst_46 : f32 to vector<16x256xf32>
    %111 = arith.maximumf %110, %109 : vector<16x256xf32>
    %112 = vector.broadcast %102 : vector<1x256xf32> to vector<16x256xf32>
    %113 = arith.subf %3, %112 : vector<16x256xf32>
    %114 = math.absf %113 : vector<16x256xf32>
    %cst_47 = arith.constant 1.000000e+00 : f32
    %115 = vector.broadcast %cst_47 : f32 to vector<16x256xf32>
    %116 = arith.subf %115, %114 : vector<16x256xf32>
    %cst_48 = arith.constant 0.000000e+00 : f32
    %117 = vector.broadcast %cst_48 : f32 to vector<16x256xf32>
    %118 = arith.maximumf %117, %116 : vector<16x256xf32>
    %119 = vector.broadcast %104 : vector<1x256xf32> to vector<16x256xf32>
    %120 = arith.mulf %118, %119 : vector<16x256xf32>
    %121 = vector.shape_cast %111 : vector<16x256xf32> to vector<16x1x256xf32>
    %122 = vector.shape_cast %120 : vector<16x256xf32> to vector<1x16x256xf32>
    %123 = vector.broadcast %121 : vector<16x1x256xf32> to vector<16x16x256xf32>
    %124 = vector.broadcast %122 : vector<1x16x256xf32> to vector<16x16x256xf32>
    %125 = arith.mulf %123, %124 : vector<16x16x256xf32>
    %126 = vector.shape_cast %125 : vector<16x16x256xf32> to vector<256x256xf32>
    %127 = arith.truncf %126 : vector<256x256xf32> to vector<256x256xbf16>
    %cst_49 = arith.constant dense<0.000000e+00> : vector<4x256xf32>
    %128 = tpu.matmul %5, %127, %cst_49 {dimension_numbers = #tpu.dot_dimension_numbers<[1], [0], [0], [1], [0, 0, 1, 1], [], []>} : vector<4x256xbf16>, vector<256x256xbf16>, vector<4x256xf32> -> vector<4x256xf32>
    %c12_50 = arith.constant 12 : index
    %c0_51 = arith.constant 0 : index
    %129 = vector.load %arg7[%c12_50, %c0_51] : memref<36x256xf32, #tpu.memory_space<vmem>>, vector<4x256xf32>
    tpu.vector_store %arg7[%c12_50, %c0_51], %128 {strides = array<i32>} : memref<36x256xf32, #tpu.memory_space<vmem>>, vector<4x256xf32>,
    %c0_52 = arith.constant 0 : index
    %c4_53 = arith.constant 4 : index
    %c0_54 = arith.constant 0 : index
    %130 = vector.load %arg3[%c0_52, %c4_53, %c0_54] : memref<1x27x256xf32, #tpu.memory_space<vmem>>, vector<1x1x256xf32>
    %131 = vector.shape_cast %130 : vector<1x1x256xf32> to vector<1x256xf32>
    %c0_55 = arith.constant 0 : index
    %c13 = arith.constant 13 : index
    %c0_56 = arith.constant 0 : index
    %132 = vector.load %arg3[%c0_55, %c13, %c0_56] : memref<1x27x256xf32, #tpu.memory_space<vmem>>, vector<1x1x256xf32>
    %133 = vector.shape_cast %132 : vector<1x1x256xf32> to vector<1x256xf32>
    %c0_57 = arith.constant 0 : index
    %c22 = arith.constant 22 : index
    %c0_58 = arith.constant 0 : index
    %134 = vector.load %arg3[%c0_57, %c22, %c0_58] : memref<1x27x256xf32, #tpu.memory_space<vmem>>, vector<1x1x256xf32>
    %135 = vector.shape_cast %134 : vector<1x1x256xf32> to vector<1x256xf32>
    %136 = vector.broadcast %131 : vector<1x256xf32> to vector<16x256xf32>
    %137 = arith.subf %1, %136 : vector<16x256xf32>
    %138 = math.absf %137 : vector<16x256xf32>
    %cst_59 = arith.constant 1.000000e+00 : f32
    %139 = vector.broadcast %cst_59 : f32 to vector<16x256xf32>
    %140 = arith.subf %139, %138 : vector<16x256xf32>
    %cst_60 = arith.constant 0.000000e+00 : f32
    %141 = vector.broadcast %cst_60 : f32 to vector<16x256xf32>
    %142 = arith.maximumf %141, %140 : vector<16x256xf32>
    %143 = vector.broadcast %133 : vector<1x256xf32> to vector<16x256xf32>
    %144 = arith.subf %3, %143 : vector<16x256xf32>
    %145 = math.absf %144 : vector<16x256xf32>
    %cst_61 = arith.constant 1.000000e+00 : f32
    %146 = vector.broadcast %cst_61 : f32 to vector<16x256xf32>
    %147 = arith.subf %146, %145 : vector<16x256xf32>
    %cst_62 = arith.constant 0.000000e+00 : f32
    %148 = vector.broadcast %cst_62 : f32 to vector<16x256xf32>
    %149 = arith.maximumf %148, %147 : vector<16x256xf32>
    %150 = vector.broadcast %135 : vector<1x256xf32> to vector<16x256xf32>
    %151 = arith.mulf %149, %150 : vector<16x256xf32>
    %152 = vector.shape_cast %142 : vector<16x256xf32> to vector<16x1x256xf32>
    %153 = vector.shape_cast %151 : vector<16x256xf32> to vector<1x16x256xf32>
    %154 = vector.broadcast %152 : vector<16x1x256xf32> to vector<16x16x256xf32>
    %155 = vector.broadcast %153 : vector<1x16x256xf32> to vector<16x16x256xf32>
    %156 = arith.mulf %154, %155 : vector<16x16x256xf32>
    %157 = vector.shape_cast %156 : vector<16x16x256xf32> to vector<256x256xf32>
    %158 = arith.truncf %157 : vector<256x256xf32> to vector<256x256xbf16>
    %cst_63 = arith.constant dense<0.000000e+00> : vector<4x256xf32>
    %159 = tpu.matmul %5, %158, %cst_63 {dimension_numbers = #tpu.dot_dimension_numbers<[1], [0], [0], [1], [0, 0, 1, 1], [], []>} : vector<4x256xbf16>, vector<256x256xbf16>, vector<4x256xf32> -> vector<4x256xf32>
    %c16 = arith.constant 16 : index
    %c0_64 = arith.constant 0 : index
    %160 = vector.load %arg7[%c16, %c0_64] : memref<36x256xf32, #tpu.memory_space<vmem>>, vector<4x256xf32>
    tpu.vector_store %arg7[%c16, %c0_64], %159 {strides = array<i32>} : memref<36x256xf32, #tpu.memory_space<vmem>>, vector<4x256xf32>,
    %c0_65 = arith.constant 0 : index
    %c5 = arith.constant 5 : index
    %c0_66 = arith.constant 0 : index
    %161 = vector.load %arg3[%c0_65, %c5, %c0_66] : memref<1x27x256xf32, #tpu.memory_space<vmem>>, vector<1x1x256xf32>
    %162 = vector.shape_cast %161 : vector<1x1x256xf32> to vector<1x256xf32>
    %c0_67 = arith.constant 0 : index
    %c14 = arith.constant 14 : index
    %c0_68 = arith.constant 0 : index
    %163 = vector.load %arg3[%c0_67, %c14, %c0_68] : memref<1x27x256xf32, #tpu.memory_space<vmem>>, vector<1x1x256xf32>
    %164 = vector.shape_cast %163 : vector<1x1x256xf32> to vector<1x256xf32>
    %c0_69 = arith.constant 0 : index
    %c23 = arith.constant 23 : index
    %c0_70 = arith.constant 0 : index
    %165 = vector.load %arg3[%c0_69, %c23, %c0_70] : memref<1x27x256xf32, #tpu.memory_space<vmem>>, vector<1x1x256xf32>
    %166 = vector.shape_cast %165 : vector<1x1x256xf32> to vector<1x256xf32>
    %167 = vector.broadcast %162 : vector<1x256xf32> to vector<16x256xf32>
    %168 = arith.subf %1, %167 : vector<16x256xf32>
    %169 = math.absf %168 : vector<16x256xf32>
    %cst_71 = arith.constant 1.000000e+00 : f32
    %170 = vector.broadcast %cst_71 : f32 to vector<16x256xf32>
    %171 = arith.subf %170, %169 : vector<16x256xf32>
    %cst_72 = arith.constant 0.000000e+00 : f32
    %172 = vector.broadcast %cst_72 : f32 to vector<16x256xf32>
    %173 = arith.maximumf %172, %171 : vector<16x256xf32>
    %174 = vector.broadcast %164 : vector<1x256xf32> to vector<16x256xf32>
    %175 = arith.subf %3, %174 : vector<16x256xf32>
    %176 = math.absf %175 : vector<16x256xf32>
    %cst_73 = arith.constant 1.000000e+00 : f32
    %177 = vector.broadcast %cst_73 : f32 to vector<16x256xf32>
    %178 = arith.subf %177, %176 : vector<16x256xf32>
    %cst_74 = arith.constant 0.000000e+00 : f32
    %179 = vector.broadcast %cst_74 : f32 to vector<16x256xf32>
    %180 = arith.maximumf %179, %178 : vector<16x256xf32>
    %181 = vector.broadcast %166 : vector<1x256xf32> to vector<16x256xf32>
    %182 = arith.mulf %180, %181 : vector<16x256xf32>
    %183 = vector.shape_cast %173 : vector<16x256xf32> to vector<16x1x256xf32>
    %184 = vector.shape_cast %182 : vector<16x256xf32> to vector<1x16x256xf32>
    %185 = vector.broadcast %183 : vector<16x1x256xf32> to vector<16x16x256xf32>
    %186 = vector.broadcast %184 : vector<1x16x256xf32> to vector<16x16x256xf32>
    %187 = arith.mulf %185, %186 : vector<16x16x256xf32>
    %188 = vector.shape_cast %187 : vector<16x16x256xf32> to vector<256x256xf32>
    %189 = arith.truncf %188 : vector<256x256xf32> to vector<256x256xbf16>
    %cst_75 = arith.constant dense<0.000000e+00> : vector<4x256xf32>
    %190 = tpu.matmul %5, %189, %cst_75 {dimension_numbers = #tpu.dot_dimension_numbers<[1], [0], [0], [1], [0, 0, 1, 1], [], []>} : vector<4x256xbf16>, vector<256x256xbf16>, vector<4x256xf32> -> vector<4x256xf32>
    %c20_76 = arith.constant 20 : index
    %c0_77 = arith.constant 0 : index
    %191 = vector.load %arg7[%c20_76, %c0_77] : memref<36x256xf32, #tpu.memory_space<vmem>>, vector<4x256xf32>
    tpu.vector_store %arg7[%c20_76, %c0_77], %190 {strides = array<i32>} : memref<36x256xf32, #tpu.memory_space<vmem>>, vector<4x256xf32>,
    %c0_78 = arith.constant 0 : index
    %c6 = arith.constant 6 : index
    %c0_79 = arith.constant 0 : index
    %192 = vector.load %arg3[%c0_78, %c6, %c0_79] : memref<1x27x256xf32, #tpu.memory_space<vmem>>, vector<1x1x256xf32>
    %193 = vector.shape_cast %192 : vector<1x1x256xf32> to vector<1x256xf32>
    %c0_80 = arith.constant 0 : index
    %c15 = arith.constant 15 : index
    %c0_81 = arith.constant 0 : index
    %194 = vector.load %arg3[%c0_80, %c15, %c0_81] : memref<1x27x256xf32, #tpu.memory_space<vmem>>, vector<1x1x256xf32>
    %195 = vector.shape_cast %194 : vector<1x1x256xf32> to vector<1x256xf32>
    %c0_82 = arith.constant 0 : index
    %c24 = arith.constant 24 : index
    %c0_83 = arith.constant 0 : index
    %196 = vector.load %arg3[%c0_82, %c24, %c0_83] : memref<1x27x256xf32, #tpu.memory_space<vmem>>, vector<1x1x256xf32>
    %197 = vector.shape_cast %196 : vector<1x1x256xf32> to vector<1x256xf32>
    %198 = vector.broadcast %193 : vector<1x256xf32> to vector<16x256xf32>
    %199 = arith.subf %1, %198 : vector<16x256xf32>
    %200 = math.absf %199 : vector<16x256xf32>
    %cst_84 = arith.constant 1.000000e+00 : f32
    %201 = vector.broadcast %cst_84 : f32 to vector<16x256xf32>
    %202 = arith.subf %201, %200 : vector<16x256xf32>
    %cst_85 = arith.constant 0.000000e+00 : f32
    %203 = vector.broadcast %cst_85 : f32 to vector<16x256xf32>
    %204 = arith.maximumf %203, %202 : vector<16x256xf32>
    %205 = vector.broadcast %195 : vector<1x256xf32> to vector<16x256xf32>
    %206 = arith.subf %3, %205 : vector<16x256xf32>
    %207 = math.absf %206 : vector<16x256xf32>
    %cst_86 = arith.constant 1.000000e+00 : f32
    %208 = vector.broadcast %cst_86 : f32 to vector<16x256xf32>
    %209 = arith.subf %208, %207 : vector<16x256xf32>
    %cst_87 = arith.constant 0.000000e+00 : f32
    %210 = vector.broadcast %cst_87 : f32 to vector<16x256xf32>
    %211 = arith.maximumf %210, %209 : vector<16x256xf32>
    %212 = vector.broadcast %197 : vector<1x256xf32> to vector<16x256xf32>
    %213 = arith.mulf %211, %212 : vector<16x256xf32>
    %214 = vector.shape_cast %204 : vector<16x256xf32> to vector<16x1x256xf32>
    %215 = vector.shape_cast %213 : vector<16x256xf32> to vector<1x16x256xf32>
    %216 = vector.broadcast %214 : vector<16x1x256xf32> to vector<16x16x256xf32>
    %217 = vector.broadcast %215 : vector<1x16x256xf32> to vector<16x16x256xf32>
    %218 = arith.mulf %216, %217 : vector<16x16x256xf32>
    %219 = vector.shape_cast %218 : vector<16x16x256xf32> to vector<256x256xf32>
    %220 = arith.truncf %219 : vector<256x256xf32> to vector<256x256xbf16>
    %cst_88 = arith.constant dense<0.000000e+00> : vector<4x256xf32>
    %221 = tpu.matmul %5, %220, %cst_88 {dimension_numbers = #tpu.dot_dimension_numbers<[1], [0], [0], [1], [0, 0, 1, 1], [], []>} : vector<4x256xbf16>, vector<256x256xbf16>, vector<4x256xf32> -> vector<4x256xf32>
    %c24_89 = arith.constant 24 : index
    %c0_90 = arith.constant 0 : index
    %222 = vector.load %arg7[%c24_89, %c0_90] : memref<36x256xf32, #tpu.memory_space<vmem>>, vector<4x256xf32>
    tpu.vector_store %arg7[%c24_89, %c0_90], %221 {strides = array<i32>} : memref<36x256xf32, #tpu.memory_space<vmem>>, vector<4x256xf32>,
    %c0_91 = arith.constant 0 : index
    %c7 = arith.constant 7 : index
    %c0_92 = arith.constant 0 : index
    %223 = vector.load %arg3[%c0_91, %c7, %c0_92] : memref<1x27x256xf32, #tpu.memory_space<vmem>>, vector<1x1x256xf32>
    %224 = vector.shape_cast %223 : vector<1x1x256xf32> to vector<1x256xf32>
    %c0_93 = arith.constant 0 : index
    %c16_94 = arith.constant 16 : index
    %c0_95 = arith.constant 0 : index
    %225 = vector.load %arg3[%c0_93, %c16_94, %c0_95] : memref<1x27x256xf32, #tpu.memory_space<vmem>>, vector<1x1x256xf32>
    %226 = vector.shape_cast %225 : vector<1x1x256xf32> to vector<1x256xf32>
    %c0_96 = arith.constant 0 : index
    %c25 = arith.constant 25 : index
    %c0_97 = arith.constant 0 : index
    %227 = vector.load %arg3[%c0_96, %c25, %c0_97] : memref<1x27x256xf32, #tpu.memory_space<vmem>>, vector<1x1x256xf32>
    %228 = vector.shape_cast %227 : vector<1x1x256xf32> to vector<1x256xf32>
    %229 = vector.broadcast %224 : vector<1x256xf32> to vector<16x256xf32>
    %230 = arith.subf %1, %229 : vector<16x256xf32>
    %231 = math.absf %230 : vector<16x256xf32>
    %cst_98 = arith.constant 1.000000e+00 : f32
    %232 = vector.broadcast %cst_98 : f32 to vector<16x256xf32>
    %233 = arith.subf %232, %231 : vector<16x256xf32>
    %cst_99 = arith.constant 0.000000e+00 : f32
    %234 = vector.broadcast %cst_99 : f32 to vector<16x256xf32>
    %235 = arith.maximumf %234, %233 : vector<16x256xf32>
    %236 = vector.broadcast %226 : vector<1x256xf32> to vector<16x256xf32>
    %237 = arith.subf %3, %236 : vector<16x256xf32>
    %238 = math.absf %237 : vector<16x256xf32>
    %cst_100 = arith.constant 1.000000e+00 : f32
    %239 = vector.broadcast %cst_100 : f32 to vector<16x256xf32>
    %240 = arith.subf %239, %238 : vector<16x256xf32>
    %cst_101 = arith.constant 0.000000e+00 : f32
    %241 = vector.broadcast %cst_101 : f32 to vector<16x256xf32>
    %242 = arith.maximumf %241, %240 : vector<16x256xf32>
    %243 = vector.broadcast %228 : vector<1x256xf32> to vector<16x256xf32>
    %244 = arith.mulf %242, %243 : vector<16x256xf32>
    %245 = vector.shape_cast %235 : vector<16x256xf32> to vector<16x1x256xf32>
    %246 = vector.shape_cast %244 : vector<16x256xf32> to vector<1x16x256xf32>
    %247 = vector.broadcast %245 : vector<16x1x256xf32> to vector<16x16x256xf32>
    %248 = vector.broadcast %246 : vector<1x16x256xf32> to vector<16x16x256xf32>
    %249 = arith.mulf %247, %248 : vector<16x16x256xf32>
    %250 = vector.shape_cast %249 : vector<16x16x256xf32> to vector<256x256xf32>
    %251 = arith.truncf %250 : vector<256x256xf32> to vector<256x256xbf16>
    %cst_102 = arith.constant dense<0.000000e+00> : vector<4x256xf32>
    %252 = tpu.matmul %5, %251, %cst_102 {dimension_numbers = #tpu.dot_dimension_numbers<[1], [0], [0], [1], [0, 0, 1, 1], [], []>} : vector<4x256xbf16>, vector<256x256xbf16>, vector<4x256xf32> -> vector<4x256xf32>
    %c28 = arith.constant 28 : index
    %c0_103 = arith.constant 0 : index
    %253 = vector.load %arg7[%c28, %c0_103] : memref<36x256xf32, #tpu.memory_space<vmem>>, vector<4x256xf32>
    tpu.vector_store %arg7[%c28, %c0_103], %252 {strides = array<i32>} : memref<36x256xf32, #tpu.memory_space<vmem>>, vector<4x256xf32>,
    %c0_104 = arith.constant 0 : index
    %c8_105 = arith.constant 8 : index
    %c0_106 = arith.constant 0 : index
    %254 = vector.load %arg3[%c0_104, %c8_105, %c0_106] : memref<1x27x256xf32, #tpu.memory_space<vmem>>, vector<1x1x256xf32>
    %255 = vector.shape_cast %254 : vector<1x1x256xf32> to vector<1x256xf32>
    %c0_107 = arith.constant 0 : index
    %c17 = arith.constant 17 : index
    %c0_108 = arith.constant 0 : index
    %256 = vector.load %arg3[%c0_107, %c17, %c0_108] : memref<1x27x256xf32, #tpu.memory_space<vmem>>, vector<1x1x256xf32>
    %257 = vector.shape_cast %256 : vector<1x1x256xf32> to vector<1x256xf32>
    %c0_109 = arith.constant 0 : index
    %c26 = arith.constant 26 : index
    %c0_110 = arith.constant 0 : index
    %258 = vector.load %arg3[%c0_109, %c26, %c0_110] : memref<1x27x256xf32, #tpu.memory_space<vmem>>, vector<1x1x256xf32>
    %259 = vector.shape_cast %258 : vector<1x1x256xf32> to vector<1x256xf32>
    %260 = vector.broadcast %255 : vector<1x256xf32> to vector<16x256xf32>
    %261 = arith.subf %1, %260 : vector<16x256xf32>
    %262 = math.absf %261 : vector<16x256xf32>
    %cst_111 = arith.constant 1.000000e+00 : f32
    %263 = vector.broadcast %cst_111 : f32 to vector<16x256xf32>
    %264 = arith.subf %263, %262 : vector<16x256xf32>
    %cst_112 = arith.constant 0.000000e+00 : f32
    %265 = vector.broadcast %cst_112 : f32 to vector<16x256xf32>
    %266 = arith.maximumf %265, %264 : vector<16x256xf32>
    %267 = vector.broadcast %257 : vector<1x256xf32> to vector<16x256xf32>
    %268 = arith.subf %3, %267 : vector<16x256xf32>
    %269 = math.absf %268 : vector<16x256xf32>
    %cst_113 = arith.constant 1.000000e+00 : f32
    %270 = vector.broadcast %cst_113 : f32 to vector<16x256xf32>
    %271 = arith.subf %270, %269 : vector<16x256xf32>
    %cst_114 = arith.constant 0.000000e+00 : f32
    %272 = vector.broadcast %cst_114 : f32 to vector<16x256xf32>
    %273 = arith.maximumf %272, %271 : vector<16x256xf32>
    %274 = vector.broadcast %259 : vector<1x256xf32> to vector<16x256xf32>
    %275 = arith.mulf %273, %274 : vector<16x256xf32>
    %276 = vector.shape_cast %266 : vector<16x256xf32> to vector<16x1x256xf32>
    %277 = vector.shape_cast %275 : vector<16x256xf32> to vector<1x16x256xf32>
    %278 = vector.broadcast %276 : vector<16x1x256xf32> to vector<16x16x256xf32>
    %279 = vector.broadcast %277 : vector<1x16x256xf32> to vector<16x16x256xf32>
    %280 = arith.mulf %278, %279 : vector<16x16x256xf32>
    %281 = vector.shape_cast %280 : vector<16x16x256xf32> to vector<256x256xf32>
    %282 = arith.truncf %281 : vector<256x256xf32> to vector<256x256xbf16>
    %cst_115 = arith.constant dense<0.000000e+00> : vector<4x256xf32>
    %283 = tpu.matmul %5, %282, %cst_115 {dimension_numbers = #tpu.dot_dimension_numbers<[1], [0], [0], [1], [0, 0, 1, 1], [], []>} : vector<4x256xbf16>, vector<256x256xbf16>, vector<4x256xf32> -> vector<4x256xf32>
    %c32 = arith.constant 32 : index
    %c0_116 = arith.constant 0 : index
    %284 = vector.load %arg7[%c32, %c0_116] : memref<36x256xf32, #tpu.memory_space<vmem>>, vector<4x256xf32>
    tpu.vector_store %arg7[%c32, %c0_116], %283 {strides = array<i32>} : memref<36x256xf32, #tpu.memory_space<vmem>>, vector<4x256xf32>,
    %c0_117 = arith.constant 0 : index
    %c0_118 = arith.constant 0 : index
    %285 = vector.load %arg7[%c0_117, %c0_118] : memref<36x256xf32, #tpu.memory_space<vmem>>, vector<36x256xf32>
    %286 = arith.truncf %285 : vector<36x256xf32> to vector<36x256xbf16>
    %c0_119 = arith.constant 0 : index
    %c0_120 = arith.constant 0 : index
    %287 = vector.load %arg4[%c0_119, %c0_120] : memref<8x36xbf16, #tpu.memory_space<vmem>>, vector<8x36xbf16>
    %cst_121 = arith.constant dense<0.000000e+00> : vector<8x256xf32>
    %288 = tpu.matmul %287, %286, %cst_121 {dimension_numbers = #tpu.dot_dimension_numbers<[1], [0], [0], [1], [0, 0, 1, 1], [], []>} : vector<8x36xbf16>, vector<36x256xbf16>, vector<8x256xf32> -> vector<8x256xf32>
    %c0_122 = arith.constant 0 : index
    %c0_123 = arith.constant 0 : index
    %289 = vector.load %arg5[%c0_122, %c0_123] : memref<8x1xf32, #tpu.memory_space<vmem>>, vector<8x1xf32>
    %290 = vector.broadcast %289 : vector<8x1xf32> to vector<8x256xf32>
    %291 = arith.addf %288, %290 : vector<8x256xf32>
    %c0_124 = arith.constant 0 : index
    %c0_125 = arith.constant 0 : index
    %c0_126 = arith.constant 0 : index
    %292 = vector.load %arg6[%c0_124, %c0_125, %c0_126] : memref<1x8x256xf32, #tpu.memory_space<vmem>>, vector<1x8x256xf32>
    %293 = vector.shape_cast %292 : vector<1x8x256xf32> to vector<8x256xf32>
    %294 = vector.shape_cast %291 : vector<8x256xf32> to vector<1x8x256xf32>
    tpu.vector_store %arg6[%c0_124, %c0_125, %c0_126], %294 {strides = array<i32>} : memref<1x8x256xf32, #tpu.memory_space<vmem>>, vector<1x8x256xf32>,
    return
  }
  func.func @transform_0(%arg0: i32, %arg1: i32) -> (i32, i32, i32) {
    %c0_i32 = arith.constant 0 : i32
    %c0_i32_0 = arith.constant 0 : i32
    %c0_i32_1 = arith.constant 0 : i32
    return %arg0, %c0_i32, %c0_i32_0 : i32, i32, i32
  }
  func.func @transform_1(%arg0: i32, %arg1: i32) -> (i32, i32, i32) {
    %c0_i32 = arith.constant 0 : i32
    %c0_i32_0 = arith.constant 0 : i32
    return %arg0, %c0_i32, %arg1 : i32, i32, i32
  }
  func.func @transform_2(%arg0: i32, %arg1: i32) -> (i32, i32) {
    %c0_i32 = arith.constant 0 : i32
    %c0_i32_0 = arith.constant 0 : i32
    %c0_i32_1 = arith.constant 0 : i32
    return %c0_i32, %c0_i32_0 : i32, i32
  }
  func.func @transform_3(%arg0: i32, %arg1: i32) -> (i32, i32) {
    %c0_i32 = arith.constant 0 : i32
    %c0_i32_0 = arith.constant 0 : i32
    %c0_i32_1 = arith.constant 0 : i32
    return %c0_i32, %c0_i32_0 : i32, i32
  }
  func.func @transform_4(%arg0: i32, %arg1: i32) -> (i32, i32, i32) {
    %c0_i32 = arith.constant 0 : i32
    %c0_i32_0 = arith.constant 0 : i32
    return %arg0, %c0_i32, %arg1 : i32, i32, i32
  }
}

</mosaic_0001>

<bundles_post_ra>
// kernel: tpu_custom_call.1
= control target key start
LH: loop header
LB: loop body
LE: loop exit
PB: predicated region body
PF: predicated region fallthrough
CT: control target
= control target key end

     0   :  { %9 = vsyncpa [#allocation4], 0  ;;  %s6761_s0 = inlined_call_operand.vmem [shape: bf16[2,4,256], index: 0, kind: input, shape index: {}]   ;;  %s6762_s1 = inlined_call_operand.vmem [shape: f32[2,27,256], index: 1, kind: input, shape index: {}]   ;;  %s6763_s2 = inlined_call_operand.vmem [shape: bf16[8,36], index: 2, kind: input, shape index: {}]   ;;  %s6764_s3 = inlined_call_operand.vmem [shape: f32[8,1], index: 3, kind: input, shape index: {}]   ;;  %s6765_s4 = inlined_call_operand.hbm [shape: f32[2,8,256], index: 4, kind: output, shape index: {}]  }
   0x1   :  { %11 = vsyncpa [#allocation4 + $0x1], 0  ;;  %s4987_s15 = smov 0   ;;  %s4989_s16 = smov 0  }
   0x2   :  { %s4991_s17 = smov 0   ;;  %s4993_s18 = smov 0  }
   0x3   :  { %s4995_s19 = smov 0   ;;  %s4997_s20 = smov 0  }
   0x4 LB: > { %s4772_s21 = sadd.s32 4294967295, %s4957_s20   ;;  %s4773_s22 = sadd.s32 4294967294, %s4957_s20   ;;  %s4957_s20 = sphi %s4997_s20, %s17_s20   ;;  %s4953_s19 = sphi %s4995_s19, %s6772_s19   ;;  %s4949_s18 = sphi %s4993_s18, %s6771_s18   ;;  %s4945_s17 = sphi %s4991_s17, %s6770_s17   ;;  %s4941_s16 = sphi %s4989_s16, %s6769_s16   ;;  %s4937_s15 = sphi %s4987_s15, %s6768_s15  }
   0x5   : > { %s29_s23 = sadd.s32 1, %s4953_s19  ;;  %s134_s24 = sadd.s32 1, %s4945_s17 }
   0x6   : > { %p31_p0 = scmp.ge.s32.totalorder %s29_s23, 2  ;;  %p144_p1 = scmp.ne.s32.totalorder %s4945_s17, %s4941_s16 }
   0x7   : > { %p145_p2 = scmp.eq.s32.totalorder %s4772_s21, 1  ;;  %p150_p3 = scmp.ne.s32.totalorder %s4941_s16, %s4937_s15 }
   0x8   : > { %s6774_s23 = smov (%p31_p0, %s29_s23), 0  ;;  %p151_p5 = scmp.eq.s32.totalorder %s4773_s22, 1 }
   0x9   : > { %p5027_p4 = por %p145_p2, %p144_p1  ;;  %s129_s26 = ssub.s32 %s4953_s19, %s6774_s23 }
   0xa   : > { %p4776_p6 = scmp.ge.s32.totalorder %s4957_s20, 1  ;;  %p132_p7 = scmp.eq.s32.totalorder %s129_s26, 0 }
   0xb   : > { %p5034_p8 = por %p151_p5, %p150_p3  ;;  %p196_p9 = scmp.lt.s32.totalorder %s4957_s20, 3 }
   0xc   : > { %s5040_s28 = scalar_select %p132_p7, %s4945_s17, %s134_s24  }
   0xd   : > { %p197_p10 = pnand %p4776_p6, %p196_p9 }
   0xe   : > { %p231_p11 = scmp.lt.s32.totalorder (!%p197_p10), %s4949_s18, 1  ;;  %v248_v0 = vlaneseq (!%p197_p10)  ;;  %v4959_v1 = vmov (!%p197_p10), 1966171168   ;;  %vm4617_vm0 = vcmask (!%p197_p10), 1041408   ;;  %vm4613_vm1 = vcmask (!%p197_p10), 293888   ;;  %s228_s22 = sand.u32 (!%p197_p10), 1, %s4941_s16  }
   0xf   : > { %200 = sbr.rel (%p197_p10) target bundleno = 969 (0x3c9), region = 36  ;;  %v335_v2 = vunpack.c.l.s4 (!%p197_p10), %v4959_v1  ;;  %s4777_s24 = sshll.u32 (!%p197_p10), %s228_s22, 4 }
  0x10   : > { %v249_v3 = vshrl.u32 (!%p197_p10), %v248_v0, 7  ;;  %s4818_s26 = sshll.u32 (!%p197_p10), %s4949_s18, 8  ;;  %s4961_s9 = smov (!%p197_p10), [#allocation3]  }
  0x11   : > { %v336_v4 = vunpack.c.0.s8 (!%p197_p10), %v335_v2  ;;  %s4883_s10 = sshll.u32 (!%p197_p10), %s4961_s9, 4  ;;  %s4884_s10 = int_to_ptr.vmem [resolvable:$false] %s4883_s10 }
  0x12   : > { %v250_v5 = vadd.s32 (!%p197_p10), 8, %v249_v3  ;;  %v5047_v6 = vsub.s32 (!%p197_p10), 0, %v249_v3  ;;  %v5049_v7 = vsub.s32 (!%p197_p10), 1, %v249_v3  ;;  %v5056_v8 = vcvt.s32.f32 (!%p197_p10), %v249_v3 }
  0x13   : > { %v5062_v12 = vsub.s32 (!%p197_p10), %v336_v4, %v249_v3 }
  0x14   : > { %v5058_v9 = vcvt.s32.f32 (!%p197_p10), %v250_v5 }
  0x16   : > { %s5044_s29 = scalar_select %p231_p11, %s4949_s18, 1 }
  0x17   : > { %s4668_s18 = scalar_lea.sflag [#allocation4], %s228_s22 }
  0x18   : > { %s4817_s30 = sshll.u32 %s5044_s29, 6  ;;  %s4816_s8 = sshll.u32 %s5044_s29, 2 }
  0x19   : > { %s5054_s7 = scalar_lea.vmem %s6762_s1, %s4817_s30  ;;  %s5251_s11 = scalar_lea.vmem %s6761_s0, %s4816_s8 }
  0x1a   : > { %v254_v10 = vld [vmem:[%s5054_s7] ss:$8 sm:$0x3]  ;;  %v4782_v11 = vld [vmem:[%s5054_s7 + $0x11] ss:$8 sm:$0x3] }
  0x1b   : > { %v4783_v13 = vld [vmem:[%s5054_s7 + $0x22] ss:$8 sm:$0x3]  ;;  %v5066_v14 = vrot.slane %v254_v10, %v5047_v6  ;;  %v5069_v15 = vrot.slane %v254_v10, %v5049_v7  ;;  %v294_v16 = vrot.slane %v4782_v11, %v5049_v7  ;;  %v4785_v17 = vld [vmem:[%s5054_s7 + $0x1] ss:$8 sm:$0x3]  ;;  %v290_v18 = vrot.slane %v4782_v11, %v5047_v6 }
  0x1c   : > { %v321_v19 = vrot.slane %v4783_v13, %v5049_v7  ;;  %v4786_v20 = vld [vmem:[%s5054_s7 + $0x12] ss:$8 sm:$0x3]  ;;  %v4787_v21 = vld [vmem:[%s5054_s7 + $0x23] ss:$8 sm:$0x3]  ;;  %v5078_v22 = vrot.slane %v4785_v17, %v5047_v6  ;;  %v5081_v23 = vrot.slane %v4785_v17, %v5049_v7  ;;  %v5084_v24 = vrot.slane %v4783_v13, %v5047_v6 }
  0x1d   : > { %v270_v25 = vsub.f32 %v5056_v8, %v5066_v14  ;;  %v271_v26 = vsub.f32 %v5056_v8, %v5069_v15  ;;  %v298_v27 = vsub.f32 %v5056_v8, %v294_v16  ;;  %v300_v28 = vsub.f32 %v5058_v9, %v294_v16  ;;  %s230_s29 = scalar_lea.vmem [#allocation3], %s4777_s24 }
  0x1e   : > { %v759_v29 = vsub.f32 %v5056_v8, %v5078_v22  ;;  %v760_v30 = vsub.f32 %v5056_v8, %v5081_v23  ;;  %v783_v31 = vrot.slane %v4786_v20, %v5049_v7  ;;  %v810_v32 = vrot.slane %v4787_v21, %v5049_v7  ;;  %s4684_s30 = sshll.u32 %s230_s29, 4  ;;  %s6716_s30 = int_to_ptr.vmem [resolvable:$true] %s4684_s30 }
  0x1f   : > { %v274_v33 = vand.u32 2147483647, %v270_v25  ;;  %v275_v34 = vand.u32 2147483647, %v271_v26  ;;  %v302_v35 = vand.u32 2147483647, %v298_v27  ;;  %v297_v36 = vsub.f32 %v5056_v8, %v290_v18  ;;  %p4886_p1 = scmp.lt.s32.totalorder %s6716_s30, %s4884_s10 }
  0x20   : > { %v304_v37 = vand.u32 2147483647, %v300_v28  ;;  %v763_v38 = vand.u32 2147483647, %v759_v29  ;;  %v764_v39 = vand.u32 2147483647, %v760_v30  ;;  %v787_v40 = vsub.f32 %v5056_v8, %v783_v31 }
  0x21   : > { %v278_v41 = vsub.f32 1.0, %v274_v33  ;;  %v279_v42 = vsub.f32 1.0, %v275_v34  ;;  %v306_v43 = vsub.f32 1.0, %v302_v35  ;;  %v789_v44 = vsub.f32 %v5058_v9, %v783_v31  ;;  %s4879_s8 = scalar_lea.vmem %s6716_s30, 256 }
  0x22   : > { %v308_v45 = vsub.f32 1.0, %v304_v37  ;;  %v767_v46 = vsub.f32 1.0, %v763_v38  ;;  %v768_v47 = vsub.f32 1.0, %v764_v39  ;;  %v791_v48 = vand.u32 2147483647, %v787_v40  ;;  %p4880_p12 = scmp.ne.s32.totalorder %s6716_s30, %s4879_s8 }
  0x23   : > { %v5101_v49 = vmax.f32 %v278_v41, 0.0  ;;  %v5103_v50 = vmax.f32 %v279_v42, 0.0  ;;  %v310_v51 = vmax.f32 %v306_v43, 0.0  ;;  %v793_v52 = vand.u32 2147483647, %v789_v44 }
  0x24   : > { %v312_v53 = vmax.f32 %v308_v45, 0.0  ;;  %v5105_v54 = vmax.f32 %v767_v46, 0.0  ;;  %v5107_v55 = vmax.f32 %v768_v47, 0.0  ;;  %v795_v56 = vsub.f32 1.0, %v791_v48  ;;  %p4881_p13 = pnand %p4880_p12, %p5027_p4 }
  0x25   : > { %v5109_v57 = vmul.f32 %v321_v19, %v310_v51  ;;  %v332_v58 = vcombine.low %v5101_v49, %v5103_v50  ;;  %v797_v59 = vsub.f32 1.0, %v793_v52  ;;  %v299_v60 = vsub.f32 %v5058_v9, %v290_v18 }
  0x26   : > { %v5114_v61 = vmul.f32 %v321_v19, %v312_v53  ;;  %v799_v62 = vmax.f32 %v795_v56, 0.0  ;;  %v821_v63 = vcombine.low %v5105_v54, %v5107_v55  ;;  %v301_v0 = vand.u32 2147483647, %v297_v36  ;;  %p4882_p0 = pneg %p4881_p13 }
  0x27   : > { %v340_v1 = vrot.slane %v332_v58, %v5062_v12  ;;  %v801_v2 = vmax.f32 %v797_v59, 0.0  ;;  %v303_v3 = vand.u32 2147483647, %v299_v60  ;;  %v779_v4 = vrot.slane %v4786_v20, %v5047_v6 }
  0x28   : > { %v5120_v5 = vmul.f32 %v810_v32, %v799_v62  ;;  %v829_v10 = vrot.slane %v821_v63, %v5062_v12  ;;  %v305_v11 = vsub.f32 1.0, %v301_v0  ;;  %v806_v13 = vrot.slane %v4787_v21, %v5047_v6 }
  0x29   : > { %v348_v16 = vcombine.high %v340_v1, %v340_v1  ;;  %v356_v17 = vrot.slane %v340_v1, %v5062_v12  ;;  %v5125_v18 = vmul.f32 %v810_v32, %v801_v2  ;;  %v307_v19 = vsub.f32 1.0, %v303_v3 }
  0x2a   : > { %v837_v25 = vcombine.high %v829_v10, %v829_v10  ;;  %v845_v26 = vrot.slane %v829_v10, %v5062_v12  ;;  %v309_v27 = vmax.f32 %v305_v11, 0.0  ;;  %v786_v28 = vsub.f32 %v5056_v8, %v779_v4 }
  0x2b   : > { %v439_v20 = vrot.slane %v356_v17, %v5049_v7  ;;  %v311_v29 = vmax.f32 %v307_v19, 0.0  ;;  %v435_v30 = vrot.slane %v356_v17, %v5047_v6  ;;  %v788_v31 = vsub.f32 %v5058_v9, %v779_v4 }
  0x2c   : > { %v928_v21 = vrot.slane %v845_v26, %v5049_v7  ;;  %v5134_v33 = vmul.f32 %v5084_v24, %v309_v27  ;;  %v790_v32 = vand.u32 2147483647, %v786_v28  ;;  %v924_v34 = vrot.slane %v845_v26, %v5047_v6 }
  0x2d   : > { %v593_v35 = vmul.f32 %v439_v20, %v5109_v57  ;;  %v595_v36 = vmul.f32 %v439_v20, %v5114_v61  ;;  %v5140_v37 = vmul.f32 %v5084_v24, %v311_v29  ;;  %v792_v38 = vand.u32 2147483647, %v788_v31 }
  0x2e   : > { %v1082_v39 = vmul.f32 %v928_v21, %v5120_v5  ;;  %v1084_v40 = vmul.f32 %v928_v21, %v5125_v18  ;;  %v592_v41 = vmul.f32 %v435_v30, %v5134_v33  ;;  %v794_v42 = vsub.f32 1.0, %v790_v32 }
  0x2f   : > { %v657_v43 = vpack.c.bf16 %v595_v36, %v593_v35  ;;  %v594_v44 = vmul.f32 %v435_v30, %v5140_v37  ;;  %v796_v45 = vsub.f32 1.0, %v792_v38  ;;  %v370_v46 = vrot.slane %v348_v16, %v5062_v12 }
  0x30   : > { %v1146_v47 = vpack.c.bf16 %v1084_v40, %v1082_v39  ;;  %v798_v48 = vmax.f32 %v794_v42, 0.0  ;;  %v859_v51 = vrot.slane %v837_v25, %v5062_v12  ;;  %v378_v24 = vcombine.high %v356_v17, %v356_v17 }
  0x31   : > { %699 = vmatprep.subr.bf16.mxu0 %v657_v43  ;;  %v656_v52 = vpack.c.bf16 %v594_v44, %v592_v41  ;;  %v800_v53 = vmax.f32 %v796_v45, 0.0  ;;  %v447_v56 = vrot.slane %v370_v46, %v5049_v7  ;;  %v443_v58 = vrot.slane %v370_v46, %v5047_v6 }
  0x32   : > { %1177 = vmatprep.subr.bf16.mxu1 %v1146_v47  ;;  %v5150_v59 = vmul.f32 %v806_v13, %v798_v48  ;;  %v936_v60 = vrot.slane %v859_v51, %v5049_v7  ;;  %v932_v62 = vrot.slane %v859_v51, %v5047_v6  ;;  %v455_v63 = vrot.slane %v378_v24, %v5049_v7 }
  0x33   : > { %700 = vmatpush1.bf16.msra.mxu0 %v656_v52  ;;  %v5155_v0 = vmul.f32 %v806_v13, %v800_v53  ;;  %v597_v1 = vmul.f32 %v447_v56, %v5109_v57  ;;  %v599_v2 = vmul.f32 %v447_v56, %v5114_v61  ;;  %v596_v3 = vmul.f32 %v443_v58, %v5134_v33 }
  0x34   : > { %v1081_v4 = vmul.f32 %v924_v34, %v5150_v59  ;;  %v1086_v10 = vmul.f32 %v936_v60, %v5120_v5  ;;  %v1088_v11 = vmul.f32 %v936_v60, %v5125_v18  ;;  %v598_v16 = vmul.f32 %v443_v58, %v5140_v37 }
  0x35   : > { %v1083_v17 = vmul.f32 %v924_v34, %v5155_v0  ;;  %v659_v19 = vpack.c.bf16 %v599_v2, %v597_v1  ;;  %v1085_v13 = vmul.f32 %v932_v62, %v5150_v59  ;;  %v1087_v25 = vmul.f32 %v932_v62, %v5155_v0 }
  0x36   : > { %v1148_v27 = vpack.c.bf16 %v1088_v11, %v1086_v10  ;;  %v658_v28 = vpack.c.bf16 %v598_v16, %v596_v3  ;;  %v601_v20 = vmul.f32 %v455_v63, %v5109_v57  ;;  %v603_v29 = vmul.f32 %v455_v63, %v5114_v61 }
  0x37   : > { %v1145_v30 = vpack.c.bf16 %v1083_v17, %v1081_v4  ;;  %701 = vmatprep.subr.bf16.mxu0 %v659_v19  ;;  %v1147_v31 = vpack.c.bf16 %v1087_v25, %v1085_v13  ;;  %v867_v21 = vcombine.high %v845_v26, %v845_v26  ;;  %v451_v32 = vrot.slane %v378_v24, %v5047_v6 }
  0x38   : > { %702 = vmatpush1.bf16.msra.mxu0 %v658_v28  ;;  %v661_v35 = vpack.c.bf16 %v603_v29, %v601_v20  ;;  %v380_v34 = vcombine.high %v370_v46, %v370_v46  ;;  %v869_v36 = vcombine.high %v859_v51, %v859_v51  ;;  %v333_v38 = vcombine.high %v5101_v49, %v5103_v50 }
  0x39   : > { %1178 = vmatpush1.bf16.msra.mxu1 %v1145_v30  ;;  %v944_v39 = vrot.slane %v867_v21, %v5049_v7  ;;  %v600_v40 = vmul.f32 %v451_v32, %v5134_v33  ;;  %v602_v41 = vmul.f32 %v451_v32, %v5140_v37  ;;  %v940_v42 = vrot.slane %v867_v21, %v5047_v6 }
  0x3a   : > { %1179 = vmatprep.subr.bf16.mxu1 %v1148_v27  ;;  %703 = vmatprep.subr.bf16.mxu0 %v661_v35  ;;  %v463_v26 = vrot.slane %v380_v34, %v5049_v7  ;;  %v952_v43 = vrot.slane %v869_v36, %v5049_v7  ;;  %v459_v44 = vrot.slane %v380_v34, %v5047_v6 }
  0x3b   : > { %v1090_v45 = vmul.f32 %v944_v39, %v5120_v5  ;;  %v1092_v49 = vmul.f32 %v944_v39, %v5125_v18  ;;  %v660_v50 = vpack.c.bf16 %v602_v41, %v600_v40  ;;  %v1089_v46 = vmul.f32 %v940_v42, %v5150_v59 }
  0x3c   : > { %v1091_v47 = vmul.f32 %v940_v42, %v5155_v0  ;;  %v605_v48 = vmul.f32 %v463_v26, %v5109_v57  ;;  %v607_v51 = vmul.f32 %v463_v26, %v5114_v61  ;;  %v1094_v24 = vmul.f32 %v952_v43, %v5120_v5 }
  0x3d   : > { %1180 = vmatpush1.bf16.msra.mxu1 %v1147_v31  ;;  %v1150_v52 = vpack.c.bf16 %v1092_v49, %v1090_v45  ;;  %704 = vmatpush1.bf16.msra.mxu0 %v660_v50  ;;  %v1096_v53 = vmul.f32 %v952_v43, %v5125_v18  ;;  %v604_v56 = vmul.f32 %v459_v44, %v5134_v33 }
  0x3e   : > { %v1149_v58 = vpack.c.bf16 %v1091_v47, %v1089_v46  ;;  %v663_v60 = vpack.c.bf16 %v607_v51, %v605_v48  ;;  %v606_v62 = vmul.f32 %v459_v44, %v5140_v37  ;;  %v948_v63 = vrot.slane %v869_v36, %v5047_v6 }
  0x3f   : > { %1181 = vmatprep.subr.bf16.mxu1 %v1150_v52  ;;  %v1152_v1 = vpack.c.bf16 %v1096_v53, %v1094_v24  ;;  %v347_v2 = vrot.slane %v333_v38, %v5062_v12  ;;  %v822_v3 = vcombine.high %v5105_v54, %v5107_v55  ;;  %v272_v4 = vsub.f32 %v5058_v9, %v5066_v14 }
  0x40   : > { %705 = vmatprep.subr.bf16.mxu0 %v663_v60  ;;  %v662_v10 = vpack.c.bf16 %v606_v62, %v604_v56  ;;  %v1093_v11 = vmul.f32 %v948_v63, %v5150_v59  ;;  %v1095_v16 = vmul.f32 %v948_v63, %v5155_v0  ;;  %v273_v17 = vsub.f32 %v5058_v9, %v5069_v15 }
  0x41   : > { %1182 = vmatpush1.bf16.msra.mxu1 %v1149_v58  ;;  %v363_v19 = vrot.slane %v347_v2, %v5062_v12  ;;  %v836_v13 = vrot.slane %v822_v3, %v5062_v12  ;;  %v349_v25 = vcombine.high %v347_v2, %v347_v2  ;;  %v5201_v27 = vand.u32 2147483647, %v272_v4 }
  0x42   : > { %1183 = vmatprep.subr.bf16.mxu1 %v1152_v1  ;;  %706 = vmatpush1.bf16.msra.mxu0 %v662_v10  ;;  %v1151_v14 = vpack.c.bf16 %v1095_v16, %v1093_v11  ;;  %v5203_v54 = vand.u32 2147483647, %v273_v17  ;;  %v761_v55 = vsub.f32 %v5058_v9, %v5078_v22  ;;  %v762_v28 = vsub.f32 %v5058_v9, %v5081_v23 }
  0x43   : > { %v471_v15 = vrot.slane %v363_v19, %v5049_v7  ;;  %v852_v20 = vrot.slane %v836_v13, %v5062_v12  ;;  %v467_v29 = vrot.slane %v363_v19, %v5047_v6  ;;  %v377_v30 = vrot.slane %v349_v25, %v5062_v12 }
  0x44   : > { %v838_v31 = vcombine.high %v836_v13, %v836_v13  ;;  %v379_v21 = vcombine.high %v363_v19, %v363_v19  ;;  %v280_v32 = vsub.f32 1.0, %v5201_v27  ;;  %v281_v35 = vsub.f32 1.0, %v5203_v54 }
  0x45   : > { %1184 = vmatpush1.bf16.msra.mxu1 %v1151_v14  ;;  %v609_v34 = vmul.f32 %v471_v15, %v5109_v57  ;;  %v611_v36 = vmul.f32 %v471_v15, %v5114_v61  ;;  %v960_v38 = vrot.slane %v852_v20, %v5049_v7  ;;  %v608_v39 = vmul.f32 %v467_v29, %v5134_v33 }
  0x46   : > { %v610_v40 = vmul.f32 %v467_v29, %v5140_v37  ;;  %v956_v41 = vrot.slane %v852_v20, %v5047_v6  ;;  %v479_v42 = vrot.slane %v377_v30, %v5049_v7  ;;  %v866_v26 = vrot.slane %v838_v31, %v5062_v12 }
  0x47   : > { %v665_v43 = vpack.c.bf16 %v611_v36, %v609_v34  ;;  %v1098_v44 = vmul.f32 %v960_v38, %v5120_v5  ;;  %v1100_v45 = vmul.f32 %v960_v38, %v5125_v18  ;;  %v475_v49 = vrot.slane %v377_v30, %v5047_v6 }
  0x48   : > { %v664_v50 = vpack.c.bf16 %v610_v40, %v608_v39  ;;  %v1097_v46 = vmul.f32 %v956_v41, %v5150_v59  ;;  %v1099_v47 = vmul.f32 %v956_v41, %v5155_v0  ;;  %v613_v48 = vmul.f32 %v479_v42, %v5109_v57 }
  0x49   : > { %707 = vmatprep.subr.bf16.mxu0 %v665_v43  ;;  %v1154_v51 = vpack.c.bf16 %v1100_v45, %v1098_v44  ;;  %v615_v24 = vmul.f32 %v479_v42, %v5114_v61  ;;  %v968_v52 = vrot.slane %v866_v26, %v5049_v7  ;;  %v612_v53 = vmul.f32 %v475_v49, %v5134_v33 }
  0x4a   : > { %708 = vmatpush1.bf16.msra.mxu0 %v664_v50  ;;  %v1153_v56 = vpack.c.bf16 %v1099_v47, %v1097_v46  ;;  %v614_v58 = vmul.f32 %v475_v49, %v5140_v37  ;;  %v964_v60 = vrot.slane %v866_v26, %v5047_v6  ;;  %v487_v62 = vrot.slane %v379_v21, %v5049_v7  ;;  %v5263_v46 = vld.sshfl [vmem:[%s5251_s11] sm:$0x33 pattern:$0x76325410] }
  0x4b   : > { %1185 = vmatprep.subr.bf16.mxu1 %v1154_v51  ;;  %v667_v63 = vpack.c.bf16 %v615_v24, %v613_v48  ;;  %v1102_v1 = vmul.f32 %v968_v52, %v5120_v5  ;;  %v1104_v2 = vmul.f32 %v968_v52, %v5125_v18  ;;  %v868_v3 = vcombine.high %v852_v20, %v852_v20  ;;  %v4788_v52 = vld [vmem:[%s5054_s7 + $0x2] ss:$8 sm:$0x3] }
  0x4c   : > { %1186 = vmatpush1.bf16.msra.mxu1 %v1153_v56  ;;  %v666_v4 = vpack.c.bf16 %v614_v58, %v612_v53  ;;  %v1101_v10 = vmul.f32 %v964_v60, %v5150_v59  ;;  %v1103_v11 = vmul.f32 %v964_v60, %v5155_v0  ;;  %v617_v16 = vmul.f32 %v487_v62, %v5109_v57 }
  0x4d   : > { %709 = vmatprep.subr.bf16.mxu0 %v667_v63  ;;  %v1156_v17 = vpack.c.bf16 %v1104_v2, %v1102_v1  ;;  %v619_v19 = vmul.f32 %v487_v62, %v5114_v61  ;;  %v976_v13 = vrot.slane %v868_v3, %v5049_v7  ;;  %v483_v25 = vrot.slane %v379_v21, %v5047_v6 }
  0x4e   : > { %710 = vmatpush1.bf16.msra.mxu0 %v666_v4  ;;  %v1155_v14 = vpack.c.bf16 %v1103_v11, %v1101_v10  ;;  %v972_v15 = vrot.slane %v868_v3, %v5047_v6  ;;  %v381_v20 = vcombine.high %v377_v30, %v377_v30  ;;  %v870_v29 = vcombine.high %v866_v26, %v866_v26  ;;  %v4789_v3 = vld [vmem:[%s5054_s7 + $0x13] ss:$8 sm:$0x3] }
  0x4f   : > { %1187 = vmatprep.subr.bf16.mxu1 %v1156_v17  ;;  %v669_v31 = vpack.c.bf16 %v619_v19, %v617_v16  ;;  %v1106_v34 = vmul.f32 %v976_v13, %v5120_v5  ;;  %v1108_v36 = vmul.f32 %v976_v13, %v5125_v18  ;;  %v616_v38 = vmul.f32 %v483_v25, %v5134_v33 }
  0x50   : > { %1188 = vmatpush1.bf16.msra.mxu1 %v1155_v14  ;;  %v618_v21 = vmul.f32 %v483_v25, %v5140_v37  ;;  %v1105_v30 = vmul.f32 %v972_v15, %v5150_v59  ;;  %v1107_v39 = vmul.f32 %v972_v15, %v5155_v0  ;;  %v495_v40 = vrot.slane %v381_v20, %v5049_v7 }
  0x51   : > { %711 = vmatprep.subr.bf16.mxu0 %v669_v31  ;;  %v1158_v41 = vpack.c.bf16 %v1108_v36, %v1106_v34  ;;  %v984_v42 = vrot.slane %v870_v29, %v5049_v7  ;;  %v491_v26 = vrot.slane %v381_v20, %v5047_v6  ;;  %v980_v43 = vrot.slane %v870_v29, %v5047_v6 }
  0x52   : > { %v668_v44 = vpack.c.bf16 %v618_v21, %v616_v38  ;;  %v1157_v45 = vpack.c.bf16 %v1107_v39, %v1105_v30  ;;  %v621_v49 = vmul.f32 %v495_v40, %v5109_v57  ;;  %v623_v50 = vmul.f32 %v495_v40, %v5114_v61 }
  0x53   : > { %1189 = vmatprep.subr.bf16.mxu1 %v1158_v41  ;;  %v1110_v47 = vmul.f32 %v984_v42, %v5120_v5  ;;  %v1112_v48 = vmul.f32 %v984_v42, %v5125_v18  ;;  %v620_v51 = vmul.f32 %v491_v26, %v5134_v33  ;;  %v622_v24 = vmul.f32 %v491_v26, %v5140_v37 }
  0x54   : > { %712 = vmatpush1.bf16.msra.mxu0 %v668_v44  ;;  %1190 = vmatpush1.bf16.msra.mxu1 %v1157_v45  ;;  %v671_v53 = vpack.c.bf16 %v623_v50, %v621_v49  ;;  %v1109_v56 = vmul.f32 %v980_v43, %v5150_v59  ;;  %v1111_v58 = vmul.f32 %v980_v43, %v5155_v0  ;;  %v284_v60 = vmax.f32 %v280_v32, 0.0 }
  0x55   : > { %v1160_v62 = vpack.c.bf16 %v1112_v48, %v1110_v47  ;;  %v670_v63 = vpack.c.bf16 %v622_v24, %v620_v51  ;;  %v285_v1 = vmax.f32 %v281_v35, 0.0  ;;  %v765_v2 = vand.u32 2147483647, %v761_v55 }
  0x56   : > { %713 = vmatprep.subr.bf16.mxu0 %v671_v53  ;;  %v1159_v4 = vpack.c.bf16 %v1111_v58, %v1109_v56  ;;  %v766_v10 = vand.u32 2147483647, %v762_v28  ;;  %v5285_v27 = vcombine.high %v5263_v46, %v5263_v46  ;;  %v5288_v32 = vrot.slane %v4788_v52, %v5047_v6 }
  0x57   : > { %1191 = vmatprep.subr.bf16.mxu1 %v1160_v62  ;;  %v382_v54 = vcombine.low %v284_v60, %v285_v1  ;;  %v769_v35 = vsub.f32 1.0, %v765_v2  ;;  %v383_v11 = vcombine.high %v284_v60, %v285_v1  ;;  %v5291_v22 = vrot.slane %v4788_v52, %v5049_v7 }
  0x58   : > { %714 = vmatpush1.bf16.msra.mxu0 %v670_v63  ;;  %1192 = vmatpush1.bf16.msra.mxu1 %v1159_v4  ;;  %v770_v55 = vsub.f32 1.0, %v766_v10  ;;  %v1243_v23 = vsub.f32 %v5056_v8, %v5288_v32  ;;  %v5296_v28 = vrot.slane %v4789_v3, %v5047_v6  ;;  %v5299_v16 = vrot.slane %v4789_v3, %v5049_v7 }
  0x59   : > { %v390_v17 = vrot.slane %v382_v54, %v5062_v12  ;;  %v773_v19 = vmax.f32 %v769_v35, 0.0  ;;  %v5303_v13 = vrot.slane %v383_v11, %v5062_v12  ;;  %731 = vmatprep.mubr.bf16.mxu0 %v5285_v27  ;;  %1209 = vmatprep.mubr.bf16.mxu1 %v5285_v27  ;;  %v1244_v25 = vsub.f32 %v5056_v8, %v5291_v22 }
  0x5a   : > { %v774_v14 = vmax.f32 %v770_v55, 0.0  ;;  %v5309_v15 = vand.u32 2147483647, %v1243_v23  ;;  %v1271_v20 = vsub.f32 %v5056_v8, %v5299_v16  ;;  %v1273_v29 = vsub.f32 %v5058_v9, %v5299_v16 }
  0x5b   : > { %v406_v31 = vrot.slane %v390_v17, %v5062_v12  ;;  %v398_v34 = vcombine.high %v390_v17, %v390_v17  ;;  %v5318_v36 = vrot.slane %v5303_v13, %v5062_v12  ;;  %v399_v38 = vcombine.high %v5303_v13, %v5303_v13 }
  0x5c   : > { %v871_v21 = vcombine.low %v773_v19, %v774_v14  ;;  %v872_v30 = vcombine.high %v773_v19, %v774_v14  ;;  %v5322_v39 = vand.u32 2147483647, %v1244_v25  ;;  %v1251_v40 = vsub.f32 1.0, %v5309_v15 }
  0x5d   : > { %v503_v41 = vrot.slane %v406_v31, %v5049_v7  ;;  %v499_v42 = vrot.slane %v406_v31, %v5047_v6  ;;  %v420_v26 = vrot.slane %v398_v34, %v5062_v12  ;;  %v428_v43 = vcombine.high %v406_v31, %v406_v31 }
  0x5e   : > { %v879_v44 = vrot.slane %v871_v21, %v5062_v12  ;;  %v5331_v45 = vrot.slane %v5318_v36, %v5049_v7  ;;  %v5334_v49 = vrot.slane %v872_v30, %v5062_v12  ;;  %v5338_v50 = vrot.slane %v5318_v36, %v5047_v6 }
  0x5f   : > { %v625_v47 = vmul.f32 %v503_v41, %v5109_v57  ;;  %v627_v48 = vmul.f32 %v503_v41, %v5114_v61  ;;  %v624_v51 = vmul.f32 %v499_v42, %v5134_v33  ;;  %v626_v24 = vmul.f32 %v499_v42, %v5140_v37 }
  0x60   : > { %v895_v52 = vrot.slane %v879_v44, %v5062_v12  ;;  %v511_v53 = vrot.slane %v420_v26, %v5049_v7  ;;  %v887_v56 = vcombine.high %v879_v44, %v879_v44  ;;  %v507_v58 = vrot.slane %v420_v26, %v5047_v6 }
  0x61   : > { %v673_v60 = vpack.c.bf16 %v627_v48, %v625_v47  ;;  %v672_v62 = vpack.c.bf16 %v626_v24, %v624_v51  ;;  %v519_v63 = vrot.slane %v428_v43, %v5049_v7  ;;  %v515_v1 = vrot.slane %v428_v43, %v5047_v6 }
  0x62   : > { %v992_v2 = vrot.slane %v895_v52, %v5049_v7  ;;  %v988_v3 = vrot.slane %v895_v52, %v5047_v6  ;;  %v629_v4 = vmul.f32 %v511_v53, %v5109_v57  ;;  %v631_v10 = vmul.f32 %v511_v53, %v5114_v61 }
  0x63   : > { %715 = vmatprep.subr.bf16.mxu0 %v673_v60  ;;  %v909_v54 = vrot.slane %v887_v56, %v5062_v12  ;;  %v628_v35 = vmul.f32 %v507_v58, %v5134_v33  ;;  %v630_v11 = vmul.f32 %v507_v58, %v5140_v37  ;;  %v633_v55 = vmul.f32 %v519_v63, %v5109_v57 }
  0x64   : > { %v1114_v23 = vmul.f32 %v992_v2, %v5120_v5  ;;  %v1116_v17 = vmul.f32 %v992_v2, %v5125_v18  ;;  %716 = vmatpush1.bf16.msra.mxu0 %v672_v62  ;;  %v1113_v19 = vmul.f32 %v988_v3, %v5150_v59  ;;  %v1115_v25 = vmul.f32 %v988_v3, %v5155_v0 }
  0x65   : > { %v675_v14 = vpack.c.bf16 %v631_v10, %v629_v4  ;;  %v1000_v31 = vrot.slane %v909_v54, %v5049_v7  ;;  %v674_v34 = vpack.c.bf16 %v630_v11, %v628_v35  ;;  %v996_v21 = vrot.slane %v909_v54, %v5047_v6 }
  0x66   : > { %v1162_v30 = vpack.c.bf16 %v1116_v17, %v1114_v23  ;;  %v1161_v41 = vpack.c.bf16 %v1115_v25, %v1113_v19  ;;  %v635_v42 = vmul.f32 %v519_v63, %v5114_v61  ;;  %v917_v43 = vcombine.high %v895_v52, %v895_v52 }
  0x67   : > { %717 = vmatprep.subr.bf16.mxu0 %v675_v14  ;;  %v1118_v44 = vmul.f32 %v1000_v31, %v5120_v5  ;;  %v1120_v47 = vmul.f32 %v1000_v31, %v5125_v18  ;;  %v1117_v48 = vmul.f32 %v996_v21, %v5150_v59  ;;  %v1119_v51 = vmul.f32 %v996_v21, %v5155_v0 }
  0x68   : > { %1193 = vmatprep.subr.bf16.mxu1 %v1162_v30  ;;  %718 = vmatpush1.bf16.msra.mxu0 %v674_v34  ;;  %v677_v24 = vpack.c.bf16 %v635_v42, %v633_v55  ;;  %v1008_v53 = vrot.slane %v917_v43, %v5049_v7  ;;  %v632_v56 = vmul.f32 %v515_v1, %v5134_v33  ;;  %v1252_v58 = vsub.f32 1.0, %v5322_v39 }
  0x69   : > { %1194 = vmatpush1.bf16.msra.mxu1 %v1161_v41  ;;  %v1164_v52 = vpack.c.bf16 %v1120_v47, %v1118_v44  ;;  %v1163_v60 = vpack.c.bf16 %v1119_v51, %v1117_v48  ;;  %v634_v62 = vmul.f32 %v515_v1, %v5140_v37  ;;  %v1004_v63 = vrot.slane %v917_v43, %v5047_v6 }
  0x6a   : > { %719 = vmatprep.subr.bf16.mxu0 %v677_v24  ;;  %v1122_v2 = vmul.f32 %v1008_v53, %v5120_v5  ;;  %v1124_v3 = vmul.f32 %v1008_v53, %v5125_v18  ;;  %v430_v4 = vcombine.high %v420_v26, %v420_v26  ;;  %v919_v10 = vcombine.high %v909_v54, %v909_v54 }
  0x6b   : > { %1195 = vmatprep.subr.bf16.mxu1 %v1164_v52  ;;  %v676_v35 = vpack.c.bf16 %v634_v62, %v632_v56  ;;  %v1121_v11 = vmul.f32 %v1004_v63, %v5150_v59  ;;  %v1123_v39 = vmul.f32 %v1004_v63, %v5155_v0  ;;  %v641_v55 = vmul.f32 %v5331_v45, %v5109_v57 }
  0x6c   : > { %v1166_v23 = vpack.c.bf16 %v1124_v3, %v1122_v2  ;;  %v527_v1 = vrot.slane %v430_v4, %v5049_v7  ;;  %v1016_v17 = vrot.slane %v919_v10, %v5049_v7  ;;  %v523_v19 = vrot.slane %v430_v4, %v5047_v6 }
  0x6d   : > { %1196 = vmatpush1.bf16.msra.mxu1 %v1163_v60  ;;  %720 = vmatpush1.bf16.msra.mxu0 %v676_v35  ;;  %v1165_v26 = vpack.c.bf16 %v1123_v39, %v1121_v11  ;;  %v1012_v54 = vrot.slane %v919_v10, %v5047_v6  ;;  %v643_v25 = vmul.f32 %v5331_v45, %v5114_v61  ;;  %v5387_v14 = vmax.f32 %v1251_v40, 0.0 }
  0x6e   : > { %1197 = vmatprep.subr.bf16.mxu1 %v1166_v23  ;;  %v637_v31 = vmul.f32 %v527_v1, %v5109_v57  ;;  %v639_v34 = vmul.f32 %v527_v1, %v5114_v61  ;;  %v1126_v21 = vmul.f32 %v1016_v17, %v5120_v5  ;;  %v1128_v30 = vmul.f32 %v1016_v17, %v5125_v18 }
  0x6f   : > { %v636_v41 = vmul.f32 %v523_v19, %v5134_v33  ;;  %v638_v42 = vmul.f32 %v523_v19, %v5140_v37  ;;  %v1125_v43 = vmul.f32 %v1012_v54, %v5150_v59  ;;  %v1127_v45 = vmul.f32 %v1012_v54, %v5155_v0 }
  0x70   : > { %v679_v15 = vpack.c.bf16 %v639_v34, %v637_v31  ;;  %v1168_v40 = vpack.c.bf16 %v1128_v30, %v1126_v21  ;;  %v681_v44 = vpack.c.bf16 %v643_v25, %v641_v55  ;;  %v902_v47 = vrot.slane %v5334_v49, %v5062_v12 }
  0x71   : > { %1198 = vmatpush1.bf16.msra.mxu1 %v1165_v26  ;;  %v678_v48 = vpack.c.bf16 %v638_v42, %v636_v41  ;;  %v1167_v51 = vpack.c.bf16 %v1127_v45, %v1125_v43  ;;  %v640_v24 = vmul.f32 %v5338_v50, %v5134_v33  ;;  %v642_v53 = vmul.f32 %v5338_v50, %v5140_v37 }
  0x72   : > { %721 = vmatprep.subr.bf16.mxu0 %v679_v15  ;;  %1199 = vmatprep.subr.bf16.mxu1 %v1168_v40  ;;  %v1024_v56 = vrot.slane %v902_v47, %v5049_v7  ;;  %v1020_v52 = vrot.slane %v902_v47, %v5047_v6  ;;  %v427_v60 = vrot.slane %v399_v38, %v5062_v12  ;;  %v5409_v62 = vmax.f32 %v1252_v58, 0.0 }
  0x73   : > { %722 = vmatpush1.bf16.msra.mxu0 %v678_v48  ;;  %v680_v63 = vpack.c.bf16 %v642_v53, %v640_v24  ;;  %v888_v2 = vcombine.high %v5334_v49, %v5334_v49  ;;  %v429_v50 = vcombine.high %v5318_v36, %v5318_v36  ;;  %v918_v3 = vcombine.high %v902_v47, %v902_v47 }
  0x74   : > { %723 = vmatprep.subr.bf16.mxu0 %v681_v44  ;;  %v1130_v4 = vmul.f32 %v1024_v56, %v5120_v5  ;;  %v1132_v10 = vmul.f32 %v1024_v56, %v5125_v18  ;;  %v1129_v35 = vmul.f32 %v1020_v52, %v5150_v59  ;;  %v1131_v13 = vmul.f32 %v1020_v52, %v5155_v0 }
  0x75   : > { %1200 = vmatpush1.bf16.msra.mxu1 %v1167_v51  ;;  %v543_v38 = vrot.slane %v427_v60, %v5049_v7  ;;  %v916_v58 = vrot.slane %v888_v2, %v5062_v12  ;;  %v539_v49 = vrot.slane %v427_v60, %v5047_v6  ;;  %v551_v11 = vrot.slane %v429_v50, %v5049_v7 }
  0x76   : > { %v1170_v36 = vpack.c.bf16 %v1132_v10, %v1130_v4  ;;  %v1169_v39 = vpack.c.bf16 %v1131_v13, %v1129_v35  ;;  %v1040_v55 = vrot.slane %v918_v3, %v5049_v7  ;;  %v547_v23 = vrot.slane %v429_v50, %v5047_v6 }
  0x77   : > { %724 = vmatpush1.bf16.msra.mxu0 %v680_v63  ;;  %v645_v1 = vmul.f32 %v543_v38, %v5109_v57  ;;  %v647_v17 = vmul.f32 %v543_v38, %v5114_v61  ;;  %v1032_v19 = vrot.slane %v916_v58, %v5049_v7  ;;  %v644_v26 = vmul.f32 %v539_v49, %v5134_v33 }
  0x78   : > { %1201 = vmatprep.subr.bf16.mxu1 %v1170_v36  ;;  %v646_v54 = vmul.f32 %v539_v49, %v5140_v37  ;;  %v1028_v25 = vrot.slane %v916_v58, %v5047_v6  ;;  %v649_v31 = vmul.f32 %v551_v11, %v5109_v57  ;;  %v651_v34 = vmul.f32 %v551_v11, %v5114_v61  ;;  %v4790_v36 = vld [vmem:[%s5054_s7 + $0x24] ss:$8 sm:$0x3] }
  0x79   : > { %1202 = vmatpush1.bf16.msra.mxu1 %v1169_v39  ;;  %v683_v21 = vpack.c.bf16 %v647_v17, %v645_v1  ;;  %v1134_v30 = vmul.f32 %v1032_v19, %v5120_v5  ;;  %v1136_v41 = vmul.f32 %v1032_v19, %v5125_v18  ;;  %v1138_v42 = vmul.f32 %v1040_v55, %v5120_v5  ;;  %v4791_v17 = vld [vmem:[%s5054_s7 + $0x3] ss:$8 sm:$0x3] }
  0x7a   : > { %v682_v43 = vpack.c.bf16 %v646_v54, %v644_v26  ;;  %v1133_v45 = vmul.f32 %v1028_v25, %v5150_v59  ;;  %v1135_v15 = vmul.f32 %v1028_v25, %v5155_v0  ;;  %v685_v40 = vpack.c.bf16 %v651_v34, %v649_v31 }
  0x7b   : > { %725 = vmatprep.subr.bf16.mxu0 %v683_v21  ;;  %v1172_v44 = vpack.c.bf16 %v1136_v41, %v1134_v30  ;;  %v1140_v47 = vmul.f32 %v1040_v55, %v5125_v18  ;;  %v648_v48 = vmul.f32 %v547_v23, %v5134_v33  ;;  %v650_v51 = vmul.f32 %v547_v23, %v5140_v37 }
  0x7c   : > { %726 = vmatpush1.bf16.msra.mxu0 %v682_v43  ;;  %v1171_v24 = vpack.c.bf16 %v1135_v15, %v1133_v45  ;;  %v1036_v53 = vrot.slane %v918_v3, %v5047_v6  ;;  %v431_v56 = vcombine.high %v427_v60, %v427_v60  ;;  %v920_v52 = vcombine.high %v916_v58, %v916_v58 }
  0x7d   : > { %1203 = vmatprep.subr.bf16.mxu1 %v1172_v44  ;;  %727 = vmatprep.subr.bf16.mxu0 %v685_v40  ;;  %v1174_v63 = vpack.c.bf16 %v1140_v47, %v1138_v42  ;;  %v684_v2 = vpack.c.bf16 %v650_v51, %v648_v48  ;;  %v1275_v50 = vand.u32 2147483647, %v1271_v20  ;;  %v1277_v4 = vand.u32 2147483647, %v1273_v29 }
  0x7e   : > { %1204 = vmatpush1.bf16.msra.mxu1 %v1171_v24  ;;  %v1137_v10 = vmul.f32 %v1036_v53, %v5150_v59  ;;  %v1139_v3 = vmul.f32 %v1036_v53, %v5155_v0  ;;  %v559_v60 = vrot.slane %v431_v56, %v5049_v7  ;;  %v1048_v35 = vrot.slane %v920_v52, %v5049_v7 }
  0x7f   : > { %1205 = vmatprep.subr.bf16.mxu1 %v1174_v63  ;;  %v555_v13 = vrot.slane %v431_v56, %v5047_v6  ;;  %v1044_v20 = vrot.slane %v920_v52, %v5047_v6  ;;  %v1279_v38 = vsub.f32 1.0, %v1275_v50  ;;  %v1281_v58 = vsub.f32 1.0, %v1277_v4 }
  0x80   : > { %728 = vmatpush1.bf16.msra.mxu0 %v684_v2  ;;  %v1173_v16 = vpack.c.bf16 %v1139_v3, %v1137_v10  ;;  %v653_v29 = vmul.f32 %v559_v60, %v5109_v57  ;;  %v655_v49 = vmul.f32 %v559_v60, %v5114_v61  ;;  %v1142_v11 = vmul.f32 %v1048_v35, %v5120_v5  ;;  %v4792_v61 = vld [vmem:[%s5054_s7 + $0x14] ss:$8 sm:$0x3] }
  0x81   : > { %v1144_v39 = vmul.f32 %v1048_v35, %v5125_v18  ;;  %v652_v55 = vmul.f32 %v555_v13, %v5134_v33  ;;  %v654_v23 = vmul.f32 %v555_v13, %v5140_v37  ;;  %v1141_v1 = vmul.f32 %v1044_v20, %v5150_v59  ;;  %v4793_v59 = vld [vmem:[%s5054_s7 + $0x25] ss:$8 sm:$0x3] }
  0x82   : > { %1206 = vmatpush1.bf16.msra.mxu1 %v1173_v16  ;;  %v687_v19 = vpack.c.bf16 %v655_v49, %v653_v29  ;;  %v1143_v26 = vmul.f32 %v1044_v20, %v5155_v0  ;;  %v1283_v57 = vmax.f32 %v1279_v38, 0.0  ;;  %v1285_v54 = vmax.f32 %v1281_v58, 0.0 }
  0x83   : > { %v1176_v25 = vpack.c.bf16 %v1144_v39, %v1142_v11  ;;  %v686_v5 = vpack.c.bf16 %v654_v23, %v652_v55  ;;  %v1290_v31 = vrot.slane %v4790_v36, %v5047_v6  ;;  %v1294_v18 = vrot.slane %v4790_v36, %v5049_v7 }
  0x84   : > { %729 = vmatprep.subr.bf16.mxu0 %v687_v19  ;;  %v1175_v33 = vpack.c.bf16 %v1143_v26, %v1141_v1  ;;  %v1305_v37 = vcombine.low %v5387_v14, %v5409_v62  ;;  %v5471_v34 = vrot.slane %v4791_v17, %v5047_v6  ;;  %v5474_v0 = vrot.slane %v4791_v17, %v5049_v7 }
  0x85   : > { %1207 = vmatprep.subr.bf16.mxu1 %v1176_v25  ;;  %730 = vmatpush1.bf16.msra.mxu0 %v686_v5  ;;  %v5476_v21 = vmul.f32 %v1294_v18, %v1283_v57  ;;  %v5478_v30 = vmul.f32 %v1294_v18, %v1285_v54  ;;  %v1741_v41 = vrot.slane %v4792_v61, %v5047_v6 }
  0x86   : > { %1208 = vmatpush1.bf16.msra.mxu1 %v1175_v33  ;;  %v1313_v42 = vrot.slane %v1305_v37, %v5062_v12  ;;  %v1721_v43 = vsub.f32 %v5056_v8, %v5471_v34  ;;  %v1722_v45 = vsub.f32 %v5056_v8, %v5474_v0  ;;  %v1745_v15 = vrot.slane %v4792_v61, %v5049_v7 }
  0x87   : > { %v5488_v40 = vrot.slane %v4793_v59, %v5047_v6  ;;  %v1772_v44 = vrot.slane %v4793_v59, %v5049_v7  ;;  %v1270_v47 = vsub.f32 %v5056_v8, %v5296_v28  ;;  %v1272_v48 = vsub.f32 %v5058_v9, %v5296_v28 }
  0x88   : > { %732 = vmatmul.mubr.bf16.vlgmr.msra.gmra.mrb[0].mxu0 %v5263_v46  ;;  %v1329_v51 = vrot.slane %v1313_v42, %v5062_v12  ;;  %v1725_v24 = vand.u32 2147483647, %v1721_v43  ;;  %v1726_v53 = vand.u32 2147483647, %v1722_v45  ;;  %v1749_v56 = vsub.f32 %v5056_v8, %v1745_v15 }
  0x89   : > { %1210 = vmatmul.mubr.bf16.vlgmr.msra.gmra.mrb[0].mxu1 %v5263_v46  ;;  %v1751_v52 = vsub.f32 %v5058_v9, %v1745_v15  ;;  %v1274_v63 = vand.u32 2147483647, %v1270_v47  ;;  %v1276_v2 = vand.u32 2147483647, %v1272_v48  ;;  %v1748_v50 = vsub.f32 %v5056_v8, %v1741_v41  ;;  %1693 = vmatprep.mubr.bf16.mxu0 %v5285_v27 }
  0x8a   : > { %v1412_v28 = vrot.slane %v1329_v51, %v5049_v7  ;;  %v1729_v4 = vsub.f32 1.0, %v1725_v24  ;;  %v1730_v10 = vsub.f32 1.0, %v1726_v53  ;;  %v1753_v3 = vand.u32 2147483647, %v1749_v56  ;;  %2171 = vmatprep.mubr.bf16.mxu1 %v5285_v27 }
  0x8b   : > { %v1755_v60 = vand.u32 2147483647, %v1751_v52  ;;  %v1278_v35 = vsub.f32 1.0, %v1274_v63  ;;  %v1280_v13 = vsub.f32 1.0, %v1276_v2  ;;  %v1408_v46 = vrot.slane %v1329_v51, %v5047_v6 }
  0x8c   : > { %v1566_v20 = vmul.f32 %v1412_v28, %v5476_v21  ;;  %v1568_v38 = vmul.f32 %v1412_v28, %v5478_v30  ;;  %v5507_v58 = vmax.f32 %v1729_v4, 0.0  ;;  %v5509_v16 = vmax.f32 %v1730_v10, 0.0 }
  0x8d   : > { %v1757_v29 = vsub.f32 1.0, %v1753_v3  ;;  %v1759_v49 = vsub.f32 1.0, %v1755_v60  ;;  %v1282_v11 = vmax.f32 %v1278_v35, 0.0  ;;  %v1284_v36 = vmax.f32 %v1280_v13, 0.0 }
  0x8e   : > { %v1630_v39 = vpack.c.bf16 %v1568_v38, %v1566_v20  ;;  %v1783_v55 = vcombine.low %v5507_v58, %v5509_v16  ;;  %v1750_v23 = vsub.f32 %v5058_v9, %v1741_v41  ;;  %v1752_v1 = vand.u32 2147483647, %v1748_v50 }
  0x8f   : > { %v1761_v17 = vmax.f32 %v1757_v29, 0.0  ;;  %v1763_v19 = vmax.f32 %v1759_v49, 0.0  ;;  %v5514_v26 = vmul.f32 %v1290_v31, %v1282_v11  ;;  %v5516_v57 = vmul.f32 %v1290_v31, %v1284_v36 }
  0x90   : > { %1661 = vmatprep.subr.bf16.mxu0 %v1630_v39  ;;  %v1791_v54 = vrot.slane %v1783_v55, %v5062_v12  ;;  %v1754_v61 = vand.u32 2147483647, %v1750_v23  ;;  %v1756_v25 = vsub.f32 1.0, %v1752_v1  ;;  %v1321_v5 = vcombine.high %v1313_v42, %v1313_v42 }
  0x91   : > { %v5519_v18 = vmul.f32 %v1772_v44, %v1761_v17  ;;  %v5521_v33 = vmul.f32 %v1772_v44, %v1763_v19  ;;  %v1565_v37 = vmul.f32 %v1408_v46, %v5514_v26  ;;  %v1567_v59 = vmul.f32 %v1408_v46, %v5516_v57 }
  0x92   : > { %v1807_v41 = vrot.slane %v1791_v54, %v5062_v12  ;;  %v1758_v43 = vsub.f32 1.0, %v1754_v61  ;;  %v1760_v45 = vmax.f32 %v1756_v25, 0.0  ;;  %v1343_v31 = vrot.slane %v1321_v5, %v5062_v12 }
  0x93   : > { %v1629_v15 = vpack.c.bf16 %v1567_v59, %v1565_v37  ;;  %v1799_v47 = vcombine.high %v1791_v54, %v1791_v54  ;;  %v1351_v48 = vcombine.high %v1329_v51, %v1329_v51  ;;  %v1306_v42 = vcombine.high %v5387_v14, %v5409_v62 }
  0x94   : > { %v1890_v24 = vrot.slane %v1807_v41, %v5049_v7  ;;  %v1762_v44 = vmax.f32 %v1758_v43, 0.0  ;;  %v5531_v53 = vmul.f32 %v5488_v40, %v1760_v45  ;;  %v1886_v56 = vrot.slane %v1807_v41, %v5047_v6 }
  0x95   : > { %1662 = vmatpush1.bf16.msra.mxu0 %v1629_v15  ;;  %v1420_v52 = vrot.slane %v1343_v31, %v5049_v7  ;;  %v1821_v63 = vrot.slane %v1799_v47, %v5062_v12  ;;  %v1416_v2 = vrot.slane %v1343_v31, %v5047_v6  ;;  %v1428_v51 = vrot.slane %v1351_v48, %v5049_v7 }
  0x96   : > { %v2044_v50 = vmul.f32 %v1890_v24, %v5519_v18  ;;  %v2046_v28 = vmul.f32 %v1890_v24, %v5521_v33  ;;  %v5541_v4 = vmul.f32 %v5488_v40, %v1762_v44  ;;  %v2043_v10 = vmul.f32 %v1886_v56, %v5531_v53 }
  0x97   : > { %v1570_v3 = vmul.f32 %v1420_v52, %v5476_v21  ;;  %v1572_v60 = vmul.f32 %v1420_v52, %v5478_v30  ;;  %v1898_v35 = vrot.slane %v1821_v63, %v5049_v7  ;;  %v1569_v13 = vmul.f32 %v1416_v2, %v5514_v26 }
  0x98   : > { %v2108_v46 = vpack.c.bf16 %v2046_v28, %v2044_v50  ;;  %v2045_v20 = vmul.f32 %v1886_v56, %v5541_v4  ;;  %v1571_v38 = vmul.f32 %v1416_v2, %v5516_v57  ;;  %v1894_v29 = vrot.slane %v1821_v63, %v5047_v6 }
  0x99   : > { %v1632_v49 = vpack.c.bf16 %v1572_v60, %v1570_v3  ;;  %v2048_v40 = vmul.f32 %v1898_v35, %v5519_v18  ;;  %v2050_v11 = vmul.f32 %v1898_v35, %v5521_v33  ;;  %v1574_v36 = vmul.f32 %v1428_v51, %v5476_v21 }
  0x9a   : > { %2139 = vmatprep.subr.bf16.mxu1 %v2108_v46  ;;  %v2107_v39 = vpack.c.bf16 %v2045_v20, %v2043_v10  ;;  %v1631_v55 = vpack.c.bf16 %v1571_v38, %v1569_v13  ;;  %v2047_v23 = vmul.f32 %v1894_v29, %v5531_v53  ;;  %v2049_v1 = vmul.f32 %v1894_v29, %v5541_v4 }
  0x9b   : > { %1663 = vmatprep.subr.bf16.mxu0 %v1632_v49  ;;  %v2110_v17 = vpack.c.bf16 %v2050_v11, %v2048_v40  ;;  %v1576_v19 = vmul.f32 %v1428_v51, %v5478_v30  ;;  %v1829_v54 = vcombine.high %v1807_v41, %v1807_v41  ;;  %v1424_v61 = vrot.slane %v1351_v48, %v5047_v6 }
  0x9c   : > { %2140 = vmatpush1.bf16.msra.mxu1 %v2107_v39  ;;  %1664 = vmatpush1.bf16.msra.mxu0 %v1631_v55  ;;  %v2109_v25 = vpack.c.bf16 %v2049_v1, %v2047_v23  ;;  %v1353_v5 = vcombine.high %v1343_v31, %v1343_v31  ;;  %v1831_v37 = vcombine.high %v1821_v63, %v1821_v63 }
  0x9d   : > { %2141 = vmatprep.subr.bf16.mxu1 %v2110_v17  ;;  %v1634_v59 = vpack.c.bf16 %v1576_v19, %v1574_v36  ;;  %v1906_v43 = vrot.slane %v1829_v54, %v5049_v7  ;;  %v1573_v45 = vmul.f32 %v1424_v61, %v5514_v26  ;;  %v1575_v15 = vmul.f32 %v1424_v61, %v5516_v57 }
  0x9e   : > { %v1902_v47 = vrot.slane %v1829_v54, %v5047_v6  ;;  %v1436_v24 = vrot.slane %v1353_v5, %v5049_v7  ;;  %v1914_v41 = vrot.slane %v1831_v37, %v5049_v7  ;;  %v1432_v48 = vrot.slane %v1353_v5, %v5047_v6 }
  0x9f   : > { %1665 = vmatprep.subr.bf16.mxu0 %v1634_v59  ;;  %v2052_v31 = vmul.f32 %v1906_v43, %v5519_v18  ;;  %v2054_v44 = vmul.f32 %v1906_v43, %v5521_v33  ;;  %v1633_v56 = vpack.c.bf16 %v1575_v15, %v1573_v45  ;;  %v1910_v52 = vrot.slane %v1831_v37, %v5047_v6 }
  0xa0   : > { %2142 = vmatpush1.bf16.msra.mxu1 %v2109_v25  ;;  %v2051_v63 = vmul.f32 %v1902_v47, %v5531_v53  ;;  %v2053_v2 = vmul.f32 %v1902_v47, %v5541_v4  ;;  %v1578_v51 = vmul.f32 %v1436_v24, %v5476_v21  ;;  %v1580_v50 = vmul.f32 %v1436_v24, %v5478_v30 }
  0xa1   : > { %v2112_v28 = vpack.c.bf16 %v2054_v44, %v2052_v31  ;;  %1666 = vmatpush1.bf16.msra.mxu0 %v1633_v56  ;;  %v2056_v10 = vmul.f32 %v1914_v41, %v5519_v18  ;;  %v2058_v3 = vmul.f32 %v1914_v41, %v5521_v33  ;;  %v1577_v60 = vmul.f32 %v1432_v48, %v5514_v26 }
  0xa2   : > { %v2111_v35 = vpack.c.bf16 %v2053_v2, %v2051_v63  ;;  %v1636_v13 = vpack.c.bf16 %v1580_v50, %v1578_v51  ;;  %v1579_v46 = vmul.f32 %v1432_v48, %v5516_v57  ;;  %v2055_v20 = vmul.f32 %v1910_v52, %v5531_v53 }
  0xa3   : > { %2143 = vmatprep.subr.bf16.mxu1 %v2112_v28  ;;  %v2114_v38 = vpack.c.bf16 %v2058_v3, %v2056_v10  ;;  %v2057_v29 = vmul.f32 %v1910_v52, %v5541_v4  ;;  %v1320_v49 = vrot.slane %v1306_v42, %v5062_v12  ;;  %v1784_v40 = vcombine.high %v5507_v58, %v5509_v16 }
  0xa4   : > { %2144 = vmatpush1.bf16.msra.mxu1 %v2111_v35  ;;  %1667 = vmatprep.subr.bf16.mxu0 %v1636_v13  ;;  %v1635_v11 = vpack.c.bf16 %v1579_v46, %v1577_v60  ;;  %v1245_v36 = vsub.f32 %v5058_v9, %v5288_v32  ;;  %v1246_v39 = vsub.f32 %v5058_v9, %v5291_v22 }
  0xa5   : > { %2145 = vmatprep.subr.bf16.mxu1 %v2114_v38  ;;  %v2113_v55 = vpack.c.bf16 %v2057_v29, %v2055_v20  ;;  %v1336_v23 = vrot.slane %v1320_v49, %v5062_v12  ;;  %v1798_v1 = vrot.slane %v1784_v40, %v5062_v12  ;;  %v1322_v14 = vcombine.high %v1320_v49, %v1320_v49 }
  0xa6   : > { %1668 = vmatpush1.bf16.msra.mxu0 %v1635_v11  ;;  %v5590_v62 = vand.u32 2147483647, %v1245_v36  ;;  %v5592_v58 = vand.u32 2147483647, %v1246_v39  ;;  %v1723_v16 = vsub.f32 %v5058_v9, %v5471_v34  ;;  %v1724_v32 = vsub.f32 %v5058_v9, %v5474_v0 }
  0xa7   : > { %v1444_v22 = vrot.slane %v1336_v23, %v5049_v7  ;;  %v1814_v42 = vrot.slane %v1798_v1, %v5062_v12  ;;  %v1440_v17 = vrot.slane %v1336_v23, %v5047_v6  ;;  %v1350_v19 = vrot.slane %v1322_v14, %v5062_v12 }
  0xa8   : > { %2146 = vmatpush1.bf16.msra.mxu1 %v2113_v55  ;;  %v1800_v54 = vcombine.high %v1798_v1, %v1798_v1  ;;  %v1352_v61 = vcombine.high %v1336_v23, %v1336_v23  ;;  %v1253_v25 = vsub.f32 1.0, %v5590_v62  ;;  %v1254_v5 = vsub.f32 1.0, %v5592_v58 }
  0xa9   : > { %v1582_v37 = vmul.f32 %v1444_v22, %v5476_v21  ;;  %v1584_v59 = vmul.f32 %v1444_v22, %v5478_v30  ;;  %v1922_v43 = vrot.slane %v1814_v42, %v5049_v7  ;;  %v1581_v45 = vmul.f32 %v1440_v17, %v5514_v26 }
  0xaa   : > { %v1583_v15 = vmul.f32 %v1440_v17, %v5516_v57  ;;  %v1918_v47 = vrot.slane %v1814_v42, %v5047_v6  ;;  %v1452_v24 = vrot.slane %v1350_v19, %v5049_v7  ;;  %v1828_v41 = vrot.slane %v1800_v54, %v5062_v12 }
  0xab   : > { %v1638_v48 = vpack.c.bf16 %v1584_v59, %v1582_v37  ;;  %v2060_v31 = vmul.f32 %v1922_v43, %v5519_v18  ;;  %v2062_v44 = vmul.f32 %v1922_v43, %v5521_v33  ;;  %v1448_v56 = vrot.slane %v1350_v19, %v5047_v6 }
  0xac   : > { %v1637_v52 = vpack.c.bf16 %v1583_v15, %v1581_v45  ;;  %v2059_v63 = vmul.f32 %v1918_v47, %v5531_v53  ;;  %v2061_v2 = vmul.f32 %v1918_v47, %v5541_v4  ;;  %v1586_v51 = vmul.f32 %v1452_v24, %v5476_v21 }
  0xad   : > { %1669 = vmatprep.subr.bf16.mxu0 %v1638_v48  ;;  %v2116_v50 = vpack.c.bf16 %v2062_v44, %v2060_v31  ;;  %v1588_v28 = vmul.f32 %v1452_v24, %v5478_v30  ;;  %v1930_v10 = vrot.slane %v1828_v41, %v5049_v7  ;;  %v1585_v3 = vmul.f32 %v1448_v56, %v5514_v26 }
  0xae   : > { %1670 = vmatpush1.bf16.msra.mxu0 %v1637_v52  ;;  %v2115_v60 = vpack.c.bf16 %v2061_v2, %v2059_v63  ;;  %v1587_v35 = vmul.f32 %v1448_v56, %v5516_v57  ;;  %v1926_v13 = vrot.slane %v1828_v41, %v5047_v6  ;;  %v1460_v46 = vrot.slane %v1352_v61, %v5049_v7 }
  0xaf   : > { %2147 = vmatprep.subr.bf16.mxu1 %v2116_v50  ;;  %v1640_v20 = vpack.c.bf16 %v1588_v28, %v1586_v51  ;;  %v2064_v38 = vmul.f32 %v1930_v10, %v5519_v18  ;;  %v2066_v29 = vmul.f32 %v1930_v10, %v5521_v33  ;;  %v1830_v49 = vcombine.high %v1814_v42, %v1814_v42  ;;  %v4794_v10 = vld [vmem:[%s5054_s7 + $0x4] ss:$8 sm:$0x3] }
  0xb0   : > { %2148 = vmatpush1.bf16.msra.mxu1 %v2115_v60  ;;  %v1639_v40 = vpack.c.bf16 %v1587_v35, %v1585_v3  ;;  %v2063_v11 = vmul.f32 %v1926_v13, %v5531_v53  ;;  %v2065_v36 = vmul.f32 %v1926_v13, %v5541_v4  ;;  %v1590_v39 = vmul.f32 %v1460_v46, %v5476_v21 }
  0xb1   : > { %1671 = vmatprep.subr.bf16.mxu0 %v1640_v20  ;;  %v2118_v55 = vpack.c.bf16 %v2066_v29, %v2064_v38  ;;  %v1592_v23 = vmul.f32 %v1460_v46, %v5478_v30  ;;  %v1938_v1 = vrot.slane %v1830_v49, %v5049_v7  ;;  %v1456_v14 = vrot.slane %v1352_v61, %v5047_v6  ;;  %v4795_v46 = vld [vmem:[%s5054_s7 + $0x15] ss:$8 sm:$0x3] }
  0xb2   : > { %1672 = vmatpush1.bf16.msra.mxu0 %v1639_v40  ;;  %v2117_v22 = vpack.c.bf16 %v2065_v36, %v2063_v11  ;;  %v1934_v42 = vrot.slane %v1830_v49, %v5047_v6  ;;  %v1354_v17 = vcombine.high %v1350_v19, %v1350_v19  ;;  %v1832_v54 = vcombine.high %v1828_v41, %v1828_v41  ;;  %v5664_v36 = vld [vmem:[%s5054_s7 + $0x26] ss:$8 sm:$0x3] }
  0xb3   : > { %2149 = vmatprep.subr.bf16.mxu1 %v2118_v55  ;;  %v1642_v37 = vpack.c.bf16 %v1592_v23, %v1590_v39  ;;  %v2068_v59 = vmul.f32 %v1938_v1, %v5519_v18  ;;  %v2070_v43 = vmul.f32 %v1938_v1, %v5521_v33  ;;  %v1589_v45 = vmul.f32 %v1456_v14, %v5514_v26 }
  0xb4   : > { %2150 = vmatpush1.bf16.msra.mxu1 %v2117_v22  ;;  %v1591_v15 = vmul.f32 %v1456_v14, %v5516_v57  ;;  %v2067_v47 = vmul.f32 %v1934_v42, %v5531_v53  ;;  %v2069_v61 = vmul.f32 %v1934_v42, %v5541_v4  ;;  %v1468_v24 = vrot.slane %v1354_v17, %v5049_v7 }
  0xb5   : > { %1673 = vmatprep.subr.bf16.mxu0 %v1642_v37  ;;  %v2120_v19 = vpack.c.bf16 %v2070_v43, %v2068_v59  ;;  %v1946_v41 = vrot.slane %v1832_v54, %v5049_v7  ;;  %v1464_v48 = vrot.slane %v1354_v17, %v5047_v6  ;;  %v1942_v31 = vrot.slane %v1832_v54, %v5047_v6 }
  0xb6   : > { %v1641_v44 = vpack.c.bf16 %v1591_v15, %v1589_v45  ;;  %v2119_v56 = vpack.c.bf16 %v2069_v61, %v2067_v47  ;;  %v1594_v52 = vmul.f32 %v1468_v24, %v5476_v21  ;;  %v1596_v63 = vmul.f32 %v1468_v24, %v5478_v30 }
  0xb7   : > { %2151 = vmatprep.subr.bf16.mxu1 %v2120_v19  ;;  %v2072_v2 = vmul.f32 %v1946_v41, %v5519_v18  ;;  %v2074_v51 = vmul.f32 %v1946_v41, %v5521_v33  ;;  %v1593_v50 = vmul.f32 %v1464_v48, %v5514_v26  ;;  %v1595_v28 = vmul.f32 %v1464_v48, %v5516_v57 }
  0xb8   : > { %1674 = vmatpush1.bf16.msra.mxu0 %v1641_v44  ;;  %2152 = vmatpush1.bf16.msra.mxu1 %v2119_v56  ;;  %v1644_v3 = vpack.c.bf16 %v1596_v63, %v1594_v52  ;;  %v2071_v60 = vmul.f32 %v1942_v31, %v5531_v53  ;;  %v2073_v35 = vmul.f32 %v1942_v31, %v5541_v4  ;;  %v1257_v13 = vmax.f32 %v1253_v25, 0.0 }
  0xb9   : > { %v2122_v20 = vpack.c.bf16 %v2074_v51, %v2072_v2  ;;  %v1643_v38 = vpack.c.bf16 %v1595_v28, %v1593_v50  ;;  %v1258_v29 = vmax.f32 %v1254_v5, 0.0  ;;  %v1727_v49 = vand.u32 2147483647, %v1723_v16 }
  0xba   : > { %1675 = vmatprep.subr.bf16.mxu0 %v1644_v3  ;;  %v2121_v40 = vpack.c.bf16 %v2073_v35, %v2071_v60  ;;  %v1728_v11 = vand.u32 2147483647, %v1724_v32  ;;  %v5667_v62 = vrot.slane %v4794_v10, %v5047_v6  ;;  %v5670_v25 = vrot.slane %v4794_v10, %v5049_v7 }
  0xbb   : > { %2153 = vmatprep.subr.bf16.mxu1 %v2122_v20  ;;  %v1355_v58 = vcombine.low %v1257_v13, %v1258_v29  ;;  %v1731_v5 = vsub.f32 1.0, %v1727_v49  ;;  %v1356_v39 = vcombine.high %v1257_v13, %v1258_v29  ;;  %v5673_v34 = vrot.slane %v4795_v46, %v5047_v6 }
  0xbc   : > { %1676 = vmatpush1.bf16.msra.mxu0 %v1643_v38  ;;  %2154 = vmatpush1.bf16.msra.mxu1 %v2121_v40  ;;  %v1732_v16 = vsub.f32 1.0, %v1728_v11  ;;  %v2205_v0 = vsub.f32 %v5056_v8, %v5667_v62  ;;  %v2206_v32 = vsub.f32 %v5056_v8, %v5670_v25  ;;  %v5680_v55 = vrot.slane %v4795_v46, %v5049_v7 }
  0xbd   : > { %v1363_v23 = vrot.slane %v1355_v58, %v5062_v12  ;;  %v1735_v1 = vmax.f32 %v1731_v5, 0.0  ;;  %v5684_v14 = vrot.slane %v1356_v39, %v5062_v12  ;;  %v5688_v22 = vrot.slane %v5664_v36, %v5047_v6 }
  0xbe   : > { %v1736_v42 = vmax.f32 %v1732_v16, 0.0  ;;  %v5690_v17 = vand.u32 2147483647, %v2205_v0  ;;  %v5692_v54 = vand.u32 2147483647, %v2206_v32  ;;  %v2233_v37 = vsub.f32 %v5056_v8, %v5680_v55 }
  0xbf   : > { %v1379_v59 = vrot.slane %v1363_v23, %v5062_v12  ;;  %v1371_v43 = vcombine.high %v1363_v23, %v1363_v23  ;;  %v5699_v45 = vrot.slane %v5684_v14, %v5062_v12  ;;  %v1372_v15 = vcombine.high %v5684_v14, %v5684_v14 }
  0xc0   : > { %v1833_v47 = vcombine.low %v1735_v1, %v1736_v42  ;;  %v1834_v61 = vcombine.high %v1735_v1, %v1736_v42  ;;  %v2213_v24 = vsub.f32 1.0, %v5690_v17  ;;  %v2214_v19 = vsub.f32 1.0, %v5692_v54 }
  0xc1   : > { %v1476_v41 = vrot.slane %v1379_v59, %v5049_v7  ;;  %v1472_v48 = vrot.slane %v1379_v59, %v5047_v6  ;;  %v1393_v31 = vrot.slane %v1371_v43, %v5062_v12  ;;  %v1401_v44 = vcombine.high %v1379_v59, %v1379_v59 }
  0xc2   : > { %v1841_v56 = vrot.slane %v1833_v47, %v5062_v12  ;;  %v5711_v52 = vrot.slane %v5699_v45, %v5049_v7  ;;  %v5714_v63 = vrot.slane %v1834_v61, %v5062_v12  ;;  %v5718_v2 = vrot.slane %v5699_v45, %v5047_v6 }
  0xc3   : > { %v1598_v51 = vmul.f32 %v1476_v41, %v5476_v21  ;;  %v1600_v50 = vmul.f32 %v1476_v41, %v5478_v30  ;;  %v1597_v28 = vmul.f32 %v1472_v48, %v5514_v26  ;;  %v1599_v10 = vmul.f32 %v1472_v48, %v5516_v57 }
  0xc4   : > { %v1857_v3 = vrot.slane %v1841_v56, %v5062_v12  ;;  %v1484_v60 = vrot.slane %v1393_v31, %v5049_v7  ;;  %v1849_v35 = vcombine.high %v1841_v56, %v1841_v56  ;;  %v1480_v13 = vrot.slane %v1393_v31, %v5047_v6 }
  0xc5   : > { %v1646_v46 = vpack.c.bf16 %v1600_v50, %v1598_v51  ;;  %v1645_v20 = vpack.c.bf16 %v1599_v10, %v1597_v28  ;;  %v1492_v38 = vrot.slane %v1401_v44, %v5049_v7  ;;  %v1488_v29 = vrot.slane %v1401_v44, %v5047_v6 }
  0xc6   : > { %v1954_v49 = vrot.slane %v1857_v3, %v5049_v7  ;;  %v1950_v40 = vrot.slane %v1857_v3, %v5047_v6  ;;  %v1602_v11 = vmul.f32 %v1484_v60, %v5476_v21  ;;  %v1604_v58 = vmul.f32 %v1484_v60, %v5478_v30 }
  0xc7   : > { %1677 = vmatprep.subr.bf16.mxu0 %v1646_v46  ;;  %v1871_v5 = vrot.slane %v1849_v35, %v5062_v12  ;;  %v1601_v39 = vmul.f32 %v1480_v13, %v5514_v26  ;;  %v1603_v16 = vmul.f32 %v1480_v13, %v5516_v57  ;;  %v1606_v0 = vmul.f32 %v1492_v38, %v5476_v21 }
  0xc8   : > { %v2076_v32 = vmul.f32 %v1954_v49, %v5519_v18  ;;  %v2078_v23 = vmul.f32 %v1954_v49, %v5521_v33  ;;  %1678 = vmatpush1.bf16.msra.mxu0 %v1645_v20  ;;  %v2075_v1 = vmul.f32 %v1950_v40, %v5531_v53  ;;  %v2077_v42 = vmul.f32 %v1950_v40, %v5541_v4 }
  0xc9   : > { %v1648_v17 = vpack.c.bf16 %v1604_v58, %v1602_v11  ;;  %v1962_v59 = vrot.slane %v1871_v5, %v5049_v7  ;;  %v1647_v43 = vpack.c.bf16 %v1603_v16, %v1601_v39  ;;  %v1958_v47 = vrot.slane %v1871_v5, %v5047_v6 }
  0xca   : > { %v2124_v61 = vpack.c.bf16 %v2078_v23, %v2076_v32  ;;  %v2123_v41 = vpack.c.bf16 %v2077_v42, %v2075_v1  ;;  %v1608_v48 = vmul.f32 %v1492_v38, %v5478_v30  ;;  %v1879_v44 = vcombine.high %v1857_v3, %v1857_v3 }
  0xcb   : > { %1679 = vmatprep.subr.bf16.mxu0 %v1648_v17  ;;  %v2080_v56 = vmul.f32 %v1962_v59, %v5519_v18  ;;  %v2082_v51 = vmul.f32 %v1962_v59, %v5521_v33  ;;  %v2079_v50 = vmul.f32 %v1958_v47, %v5531_v53  ;;  %v2081_v28 = vmul.f32 %v1958_v47, %v5541_v4 }
  0xcc   : > { %2155 = vmatprep.subr.bf16.mxu1 %v2124_v61  ;;  %1680 = vmatpush1.bf16.msra.mxu0 %v1647_v43  ;;  %v1650_v10 = vpack.c.bf16 %v1608_v48, %v1606_v0  ;;  %v1970_v60 = vrot.slane %v1879_v44, %v5049_v7  ;;  %v1605_v35 = vmul.f32 %v1488_v29, %v5514_v26  ;;  %v5750_v13 = vmax.f32 %v2213_v24, 0.0 }
  0xcd   : > { %2156 = vmatpush1.bf16.msra.mxu1 %v2123_v41  ;;  %v2126_v3 = vpack.c.bf16 %v2082_v51, %v2080_v56  ;;  %v2125_v46 = vpack.c.bf16 %v2081_v28, %v2079_v50  ;;  %v1607_v20 = vmul.f32 %v1488_v29, %v5516_v57  ;;  %v1966_v38 = vrot.slane %v1879_v44, %v5047_v6 }
  0xce   : > { %1681 = vmatprep.subr.bf16.mxu0 %v1650_v10  ;;  %v2084_v49 = vmul.f32 %v1970_v60, %v5519_v18  ;;  %v2086_v40 = vmul.f32 %v1970_v60, %v5521_v33  ;;  %v1403_v11 = vcombine.high %v1393_v31, %v1393_v31  ;;  %v1881_v58 = vcombine.high %v1871_v5, %v1871_v5 }
  0xcf   : > { %2157 = vmatprep.subr.bf16.mxu1 %v2126_v3  ;;  %v1649_v39 = vpack.c.bf16 %v1607_v20, %v1605_v35  ;;  %v2083_v16 = vmul.f32 %v1966_v38, %v5531_v53  ;;  %v2085_v24 = vmul.f32 %v1966_v38, %v5541_v4  ;;  %v1614_v0 = vmul.f32 %v5711_v52, %v5476_v21 }
  0xd0   : > { %v2128_v32 = vpack.c.bf16 %v2086_v40, %v2084_v49  ;;  %v1500_v29 = vrot.slane %v1403_v11, %v5049_v7  ;;  %v1978_v23 = vrot.slane %v1881_v58, %v5049_v7  ;;  %v1496_v1 = vrot.slane %v1403_v11, %v5047_v6 }
  0xd1   : > { %2158 = vmatpush1.bf16.msra.mxu1 %v2125_v46  ;;  %1682 = vmatpush1.bf16.msra.mxu0 %v1649_v39  ;;  %v2127_v31 = vpack.c.bf16 %v2085_v24, %v2083_v16  ;;  %v1974_v5 = vrot.slane %v1881_v58, %v5047_v6  ;;  %v1616_v42 = vmul.f32 %v5711_v52, %v5478_v30  ;;  %v5768_v17 = vmax.f32 %v2214_v19, 0.0 }
  0xd2   : > { %2159 = vmatprep.subr.bf16.mxu1 %v2128_v32  ;;  %v1610_v59 = vmul.f32 %v1500_v29, %v5476_v21  ;;  %v1612_v43 = vmul.f32 %v1500_v29, %v5478_v30  ;;  %v2088_v47 = vmul.f32 %v1978_v23, %v5519_v18  ;;  %v2090_v61 = vmul.f32 %v1978_v23, %v5521_v33 }
  0xd3   : > { %v1609_v41 = vmul.f32 %v1496_v1, %v5514_v26  ;;  %v1611_v48 = vmul.f32 %v1496_v1, %v5516_v57  ;;  %v2087_v44 = vmul.f32 %v1974_v5, %v5531_v53  ;;  %v2089_v52 = vmul.f32 %v1974_v5, %v5541_v4 }
  0xd4   : > { %v1652_v54 = vpack.c.bf16 %v1612_v43, %v1610_v59  ;;  %v2130_v19 = vpack.c.bf16 %v2090_v61, %v2088_v47  ;;  %v1654_v56 = vpack.c.bf16 %v1616_v42, %v1614_v0  ;;  %v1864_v51 = vrot.slane %v5714_v63, %v5062_v12 }
  0xd5   : > { %2160 = vmatpush1.bf16.msra.mxu1 %v2127_v31  ;;  %v1651_v50 = vpack.c.bf16 %v1611_v48, %v1609_v41  ;;  %v2129_v28 = vpack.c.bf16 %v2089_v52, %v2087_v44  ;;  %v1613_v10 = vmul.f32 %v5718_v2, %v5514_v26  ;;  %v1615_v60 = vmul.f32 %v5718_v2, %v5516_v57 }
  0xd6   : > { %1683 = vmatprep.subr.bf16.mxu0 %v1652_v54  ;;  %2161 = vmatprep.subr.bf16.mxu1 %v2130_v19  ;;  %v1986_v35 = vrot.slane %v1864_v51, %v5049_v7  ;;  %v1982_v3 = vrot.slane %v1864_v51, %v5047_v6  ;;  %v1400_v46 = vrot.slane %v1372_v15, %v5062_v12  ;;  %v5793_v20 = vand.u32 2147483647, %v2233_v37 }
  0xd7   : > { %1684 = vmatpush1.bf16.msra.mxu0 %v1651_v50  ;;  %v1653_v38 = vpack.c.bf16 %v1615_v60, %v1613_v10  ;;  %v1850_v2 = vcombine.high %v5714_v63, %v5714_v63  ;;  %v1402_v49 = vcombine.high %v5699_v45, %v5699_v45  ;;  %v1880_v40 = vcombine.high %v1864_v51, %v1864_v51 }
  0xd8   : > { %1685 = vmatprep.subr.bf16.mxu0 %v1654_v56  ;;  %v2092_v11 = vmul.f32 %v1986_v35, %v5519_v18  ;;  %v2094_v14 = vmul.f32 %v1986_v35, %v5521_v33  ;;  %v2091_v15 = vmul.f32 %v1982_v3, %v5531_v53  ;;  %v2093_v58 = vmul.f32 %v1982_v3, %v5541_v4 }
  0xd9   : > { %2162 = vmatpush1.bf16.msra.mxu1 %v2129_v28  ;;  %v1516_v37 = vrot.slane %v1400_v46, %v5049_v7  ;;  %v1878_v39 = vrot.slane %v1850_v2, %v5062_v12  ;;  %v1512_v63 = vrot.slane %v1400_v46, %v5047_v6  ;;  %v1524_v16 = vrot.slane %v1402_v49, %v5049_v7 }
  0xda   : > { %v2132_v45 = vpack.c.bf16 %v2094_v14, %v2092_v11  ;;  %v2131_v24 = vpack.c.bf16 %v2093_v58, %v2091_v15  ;;  %v2002_v0 = vrot.slane %v1880_v40, %v5049_v7  ;;  %v1520_v32 = vrot.slane %v1402_v49, %v5047_v6 }
  0xdb   : > { %1686 = vmatpush1.bf16.msra.mxu0 %v1653_v38  ;;  %v1618_v29 = vmul.f32 %v1516_v37, %v5476_v21  ;;  %v1620_v23 = vmul.f32 %v1516_v37, %v5478_v30  ;;  %v1994_v1 = vrot.slane %v1878_v39, %v5049_v7  ;;  %v1617_v31 = vmul.f32 %v1512_v63, %v5514_v26 }
  0xdc   : > { %2163 = vmatprep.subr.bf16.mxu1 %v2132_v45  ;;  %v1619_v5 = vmul.f32 %v1512_v63, %v5516_v57  ;;  %v1990_v42 = vrot.slane %v1878_v39, %v5047_v6  ;;  %v1622_v59 = vmul.f32 %v1524_v16, %v5476_v21  ;;  %v1624_v43 = vmul.f32 %v1524_v16, %v5478_v30 }
  0xdd   : > { %2164 = vmatpush1.bf16.msra.mxu1 %v2131_v24  ;;  %v1656_v47 = vpack.c.bf16 %v1620_v23, %v1618_v29  ;;  %v2096_v61 = vmul.f32 %v1994_v1, %v5519_v18  ;;  %v2098_v41 = vmul.f32 %v1994_v1, %v5521_v33  ;;  %v2100_v48 = vmul.f32 %v2002_v0, %v5519_v18  ;;  %v4797_v24 = vld [vmem:[%s5054_s7 + $0x5] ss:$8 sm:$0x3] }
  0xde   : > { %v1655_v44 = vpack.c.bf16 %v1619_v5, %v1617_v31  ;;  %v2095_v52 = vmul.f32 %v1990_v42, %v5531_v53  ;;  %v2097_v54 = vmul.f32 %v1990_v42, %v5541_v4  ;;  %v1658_v19 = vpack.c.bf16 %v1624_v43, %v1622_v59  ;;  %v4799_v59 = vld [vmem:[%s5054_s7 + $0x27] ss:$8 sm:$0x3] }
  0xdf   : > { %1687 = vmatprep.subr.bf16.mxu0 %v1656_v47  ;;  %v2134_v56 = vpack.c.bf16 %v2098_v41, %v2096_v61  ;;  %v2102_v51 = vmul.f32 %v2002_v0, %v5521_v33  ;;  %v1621_v50 = vmul.f32 %v1520_v32, %v5514_v26  ;;  %v1623_v28 = vmul.f32 %v1520_v32, %v5516_v57 }
  0xe0   : > { %1688 = vmatpush1.bf16.msra.mxu0 %v1655_v44  ;;  %v2133_v10 = vpack.c.bf16 %v2097_v54, %v2095_v52  ;;  %v1998_v60 = vrot.slane %v1880_v40, %v5047_v6  ;;  %v1404_v35 = vcombine.high %v1400_v46, %v1400_v46  ;;  %v1882_v3 = vcombine.high %v1878_v39, %v1878_v39 }
  0xe1   : > { %2165 = vmatprep.subr.bf16.mxu1 %v2134_v56  ;;  %1689 = vmatprep.subr.bf16.mxu0 %v1658_v19  ;;  %v2136_v38 = vpack.c.bf16 %v2102_v51, %v2100_v48  ;;  %v1657_v2 = vpack.c.bf16 %v1623_v28, %v1621_v50  ;;  %v2235_v49 = vsub.f32 %v5058_v9, %v5680_v55  ;;  %v2241_v11 = vsub.f32 1.0, %v5793_v20  ;;  %v5875_v50 = vld.sshfl [vmem:[%s5251_s11] sm:$0x33 pattern:$0x76325410] }
  0xe2   : > { %2166 = vmatpush1.bf16.msra.mxu1 %v2133_v10  ;;  %v2099_v14 = vmul.f32 %v1998_v60, %v5531_v53  ;;  %v2101_v15 = vmul.f32 %v1998_v60, %v5541_v4  ;;  %v1532_v58 = vrot.slane %v1404_v35, %v5049_v7  ;;  %v2010_v46 = vrot.slane %v1882_v3, %v5049_v7 }
  0xe3   : > { %2167 = vmatprep.subr.bf16.mxu1 %v2136_v38  ;;  %v1528_v40 = vrot.slane %v1404_v35, %v5047_v6  ;;  %v2006_v37 = vrot.slane %v1882_v3, %v5047_v6  ;;  %v2239_v39 = vand.u32 2147483647, %v2235_v49  ;;  %v2245_v63 = vmax.f32 %v2241_v11, 0.0 }
  0xe4   : > { %1690 = vmatpush1.bf16.msra.mxu0 %v1657_v2  ;;  %v2135_v55 = vpack.c.bf16 %v2101_v15, %v2099_v14  ;;  %v1626_v20 = vmul.f32 %v1532_v58, %v5476_v21  ;;  %v1628_v16 = vmul.f32 %v1532_v58, %v5478_v30  ;;  %v2104_v45 = vmul.f32 %v2010_v46, %v5519_v18  ;;  %v4798_v30 = vld [vmem:[%s5054_s7 + $0x16] ss:$8 sm:$0x3] }
  0xe5   : > { %v2106_v0 = vmul.f32 %v2010_v46, %v5521_v33  ;;  %v1625_v32 = vmul.f32 %v1528_v40, %v5514_v26  ;;  %v1627_v29 = vmul.f32 %v1528_v40, %v5516_v57  ;;  %v2103_v23 = vmul.f32 %v2006_v37, %v5531_v53 }
  0xe6   : > { %2168 = vmatpush1.bf16.msra.mxu1 %v2135_v55  ;;  %v1660_v1 = vpack.c.bf16 %v1628_v16, %v1626_v20  ;;  %v2105_v31 = vmul.f32 %v2006_v37, %v5541_v4  ;;  %v2243_v5 = vsub.f32 1.0, %v2239_v39  ;;  %v2256_v21 = vrot.slane %v5664_v36, %v5049_v7 }
  0xe7   : > { %v2138_v42 = vpack.c.bf16 %v2106_v0, %v2104_v45  ;;  %v1659_v18 = vpack.c.bf16 %v1627_v29, %v1625_v32  ;;  %v2267_v33 = vcombine.low %v5750_v13, %v5768_v17  ;;  %v5851_v26 = vrot.slane %v4797_v24, %v5047_v6 }
  0xe8   : > { %1691 = vmatprep.subr.bf16.mxu0 %v1660_v1  ;;  %v2137_v57 = vpack.c.bf16 %v2105_v31, %v2103_v23  ;;  %v2247_v53 = vmax.f32 %v2243_v5, 0.0  ;;  %v5853_v43 = vmul.f32 %v2256_v21, %v2245_v63  ;;  %v5856_v4 = vrot.slane %v4797_v24, %v5049_v7 }
  0xe9   : > { %2169 = vmatprep.subr.bf16.mxu1 %v2138_v42  ;;  %1692 = vmatpush1.bf16.msra.mxu0 %v1659_v18  ;;  %v2275_v36 = vrot.slane %v2267_v33, %v5062_v12  ;;  %v2683_v47 = vsub.f32 %v5056_v8, %v5851_v26  ;;  %v2703_v61 = vrot.slane %v4798_v30, %v5047_v6 }
  0xea   : > { %2170 = vmatpush1.bf16.msra.mxu1 %v2137_v57  ;;  %v5862_v41 = vmul.f32 %v2256_v21, %v2247_v53  ;;  %v2684_v48 = vsub.f32 %v5056_v8, %v5856_v4  ;;  %v2707_v44 = vrot.slane %v4798_v30, %v5049_v7  ;;  %v5868_v52 = vrot.slane %v4799_v59, %v5047_v6 }
  0xeb   : > { %v2291_v54 = vrot.slane %v2275_v36, %v5062_v12  ;;  %v2687_v19 = vand.u32 2147483647, %v2683_v47  ;;  %v2734_v56 = vrot.slane %v4799_v59, %v5049_v7  ;;  %v2232_v51 = vsub.f32 %v5056_v8, %v5673_v34 }
  0xec   : > { %1694 = vmatmul.mubr.bf16.vlgmr.msra.gmra.mrb[4].mxu0 %v5875_v50  ;;  %v2688_v28 = vand.u32 2147483647, %v2684_v48  ;;  %v2711_v10 = vsub.f32 %v5056_v8, %v2707_v44  ;;  %v2713_v60 = vsub.f32 %v5058_v9, %v2707_v44  ;;  %v2234_v35 = vsub.f32 %v5058_v9, %v5673_v34 }
  0xed   : > { %2172 = vmatmul.mubr.bf16.vlgmr.msra.gmra.mrb[4].mxu1 %v5875_v50  ;;  %v2374_v3 = vrot.slane %v2291_v54, %v5049_v7  ;;  %v2691_v38 = vsub.f32 1.0, %v2687_v19  ;;  %v2236_v2 = vand.u32 2147483647, %v2232_v51  ;;  %v2370_v49 = vrot.slane %v2291_v54, %v5047_v6  ;;  %2655 = vmatprep.mubr.bf16.mxu0 %v5285_v27 }
  0xee   : > { %v2692_v11 = vsub.f32 1.0, %v2688_v28  ;;  %v2715_v14 = vand.u32 2147483647, %v2711_v10  ;;  %v2717_v15 = vand.u32 2147483647, %v2713_v60  ;;  %v2710_v58 = vsub.f32 %v5056_v8, %v2703_v61  ;;  %3133 = vmatprep.mubr.bf16.mxu1 %v5285_v27 }
  0xef   : > { %v2528_v46 = vmul.f32 %v2374_v3, %v5853_v43  ;;  %v2530_v34 = vmul.f32 %v2374_v3, %v5862_v41  ;;  %v5890_v40 = vmax.f32 %v2691_v38, 0.0  ;;  %v2238_v37 = vand.u32 2147483647, %v2234_v35 }
  0xf0   : > { %v5892_v39 = vmax.f32 %v2692_v11, 0.0  ;;  %v2719_v63 = vsub.f32 1.0, %v2715_v14  ;;  %v2721_v55 = vsub.f32 1.0, %v2717_v15  ;;  %v2240_v20 = vsub.f32 1.0, %v2236_v2 }
  0xf1   : > { %v2592_v16 = vpack.c.bf16 %v2530_v34, %v2528_v46  ;;  %v2242_v45 = vsub.f32 1.0, %v2238_v37  ;;  %v2712_v24 = vsub.f32 %v5058_v9, %v2703_v61  ;;  %v2714_v0 = vand.u32 2147483647, %v2710_v58 }
  0xf2   : > { %v2723_v32 = vmax.f32 %v2719_v63, 0.0  ;;  %v2725_v29 = vmax.f32 %v2721_v55, 0.0  ;;  %v2745_v23 = vcombine.low %v5890_v40, %v5892_v39  ;;  %v2244_v1 = vmax.f32 %v2240_v20, 0.0 }
  0xf3   : > { %2623 = vmatprep.subr.bf16.mxu0 %v2592_v16  ;;  %v2246_v31 = vmax.f32 %v2242_v45, 0.0  ;;  %v2716_v5 = vand.u32 2147483647, %v2712_v24  ;;  %v2718_v21 = vsub.f32 1.0, %v2714_v0  ;;  %v2283_v30 = vcombine.high %v2275_v36, %v2275_v36 }
  0xf4   : > { %v5897_v42 = vmul.f32 %v2734_v56, %v2723_v32  ;;  %v5899_v18 = vmul.f32 %v2734_v56, %v2725_v29  ;;  %v2753_v33 = vrot.slane %v2745_v23, %v5062_v12  ;;  %v5903_v59 = vmul.f32 %v5688_v22, %v2244_v1 }
  0xf5   : > { %v5906_v57 = vmul.f32 %v5688_v22, %v2246_v31  ;;  %v2720_v53 = vsub.f32 1.0, %v2716_v5  ;;  %v2722_v47 = vmax.f32 %v2718_v21, 0.0  ;;  %v2305_v61 = vrot.slane %v2283_v30, %v5062_v12 }
  0xf6   : > { %v2769_v48 = vrot.slane %v2753_v33, %v5062_v12  ;;  %v2527_v36 = vmul.f32 %v2370_v49, %v5903_v59  ;;  %v2761_v44 = vcombine.high %v2753_v33, %v2753_v33  ;;  %v2313_v19 = vcombine.high %v2291_v54, %v2291_v54 }
  0xf7   : > { %v2529_v56 = vmul.f32 %v2370_v49, %v5906_v57  ;;  %v2724_v51 = vmax.f32 %v2720_v53, 0.0  ;;  %v5913_v28 = vmul.f32 %v5868_v52, %v2722_v47  ;;  %v2382_v10 = vrot.slane %v2305_v61, %v5049_v7 }
  0xf8   : > { %v2852_v22 = vrot.slane %v2769_v48, %v5049_v7  ;;  %v2848_v60 = vrot.slane %v2769_v48, %v5047_v6  ;;  %v2783_v35 = vrot.slane %v2761_v44, %v5062_v12  ;;  %v2378_v3 = vrot.slane %v2305_v61, %v5047_v6 }
  0xf9   : > { %v2591_v38 = vpack.c.bf16 %v2529_v56, %v2527_v36  ;;  %v5921_v2 = vmul.f32 %v5868_v52, %v2724_v51  ;;  %v2532_v54 = vmul.f32 %v2382_v10, %v5853_v43  ;;  %v2534_v49 = vmul.f32 %v2382_v10, %v5862_v41 }
  0xfa   : > { %v3006_v11 = vmul.f32 %v2852_v22, %v5897_v42  ;;  %v3008_v14 = vmul.f32 %v2852_v22, %v5899_v18  ;;  %v3005_v15 = vmul.f32 %v2848_v60, %v5913_v28  ;;  %v2860_v58 = vrot.slane %v2783_v35, %v5049_v7 }
  0xfb   : > { %2624 = vmatpush1.bf16.msra.mxu0 %v2591_v38  ;;  %v3007_v46 = vmul.f32 %v2848_v60, %v5921_v2  ;;  %v2594_v34 = vpack.c.bf16 %v2534_v49, %v2532_v54  ;;  %v2531_v37 = vmul.f32 %v2378_v3, %v5903_v59  ;;  %v2533_v52 = vmul.f32 %v2378_v3, %v5906_v57 }
  0xfc   : > { %v3070_v63 = vpack.c.bf16 %v3008_v14, %v3006_v11  ;;  %v3010_v55 = vmul.f32 %v2860_v58, %v5897_v42  ;;  %v3012_v20 = vmul.f32 %v2860_v58, %v5899_v18  ;;  %v2856_v16 = vrot.slane %v2783_v35, %v5047_v6 }
  0xfd   : > { %v3069_v45 = vpack.c.bf16 %v3007_v46, %v3005_v15  ;;  %2625 = vmatprep.subr.bf16.mxu0 %v2594_v34  ;;  %v2593_v24 = vpack.c.bf16 %v2533_v52, %v2531_v37  ;;  %v2390_v0 = vrot.slane %v2313_v19, %v5049_v7  ;;  %v2791_v32 = vcombine.high %v2769_v48, %v2769_v48 }
  0xfe   : > { %3101 = vmatprep.subr.bf16.mxu1 %v3070_v63  ;;  %v3072_v29 = vpack.c.bf16 %v3012_v20, %v3010_v55  ;;  %v3009_v23 = vmul.f32 %v2856_v16, %v5913_v28  ;;  %v3011_v1 = vmul.f32 %v2856_v16, %v5921_v2  ;;  %v2386_v31 = vrot.slane %v2313_v19, %v5047_v6  ;;  %v5967_v16 = vld [vmem:[%s5054_s7 + $0x6] ss:$8 sm:$0x3] }
  0xff   : > { %3102 = vmatpush1.bf16.msra.mxu1 %v3069_v45  ;;  %2626 = vmatpush1.bf16.msra.mxu0 %v2593_v24  ;;  %v2536_v5 = vmul.f32 %v2390_v0, %v5853_v43  ;;  %v2538_v21 = vmul.f32 %v2390_v0, %v5862_v41  ;;  %v2868_v30 = vrot.slane %v2791_v32, %v5049_v7 }
 0x100   : > { %3103 = vmatprep.subr.bf16.mxu1 %v3072_v29  ;;  %v3071_v33 = vpack.c.bf16 %v3011_v1, %v3009_v23  ;;  %v2535_v53 = vmul.f32 %v2386_v31, %v5903_v59  ;;  %v2537_v47 = vmul.f32 %v2386_v31, %v5906_v57  ;;  %v2864_v48 = vrot.slane %v2791_v32, %v5047_v6 }
 0x101   : > { %v2596_v36 = vpack.c.bf16 %v2538_v21, %v2536_v5  ;;  %v3014_v44 = vmul.f32 %v2868_v30, %v5897_v42  ;;  %v3016_v19 = vmul.f32 %v2868_v30, %v5899_v18  ;;  %v2315_v56 = vcombine.high %v2305_v61, %v2305_v61 }
 0x102   : > { %v2595_v51 = vpack.c.bf16 %v2537_v47, %v2535_v53  ;;  %v3013_v10 = vmul.f32 %v2864_v48, %v5913_v28  ;;  %v3015_v22 = vmul.f32 %v2864_v48, %v5921_v2  ;;  %v2793_v60 = vcombine.high %v2783_v35, %v2783_v35 }
 0x103   : > { %3104 = vmatpush1.bf16.msra.mxu1 %v3071_v33  ;;  %2627 = vmatprep.subr.bf16.mxu0 %v2596_v36  ;;  %v3074_v3 = vpack.c.bf16 %v3016_v19, %v3014_v44  ;;  %v2398_v38 = vrot.slane %v2315_v56, %v5049_v7  ;;  %v2394_v54 = vrot.slane %v2315_v56, %v5047_v6 }
 0x104   : > { %2628 = vmatpush1.bf16.msra.mxu0 %v2595_v51  ;;  %v3073_v49 = vpack.c.bf16 %v3015_v22, %v3013_v10  ;;  %v2876_v11 = vrot.slane %v2793_v60, %v5049_v7  ;;  %v2872_v14 = vrot.slane %v2793_v60, %v5047_v6  ;;  %v2268_v61 = vcombine.high %v5750_v13, %v5768_v17 }
 0x105   : > { %3105 = vmatprep.subr.bf16.mxu1 %v3074_v3  ;;  %v2540_v35 = vmul.f32 %v2398_v38, %v5853_v43  ;;  %v2542_v15 = vmul.f32 %v2398_v38, %v5862_v41  ;;  %v2539_v58 = vmul.f32 %v2394_v54, %v5903_v59  ;;  %v2541_v46 = vmul.f32 %v2394_v54, %v5906_v57 }
 0x106   : > { %v3018_v34 = vmul.f32 %v2876_v11, %v5897_v42  ;;  %v3020_v37 = vmul.f32 %v2876_v11, %v5899_v18  ;;  %v3017_v52 = vmul.f32 %v2872_v14, %v5913_v28  ;;  %v3019_v63 = vmul.f32 %v2872_v14, %v5921_v2 }
 0x107   : > { %3106 = vmatpush1.bf16.msra.mxu1 %v3073_v49  ;;  %v2598_v55 = vpack.c.bf16 %v2542_v15, %v2540_v35  ;;  %v2597_v13 = vpack.c.bf16 %v2541_v46, %v2539_v58  ;;  %v2282_v17 = vrot.slane %v2268_v61, %v5062_v12  ;;  %v2746_v20 = vcombine.high %v5890_v40, %v5892_v39 }
 0x108   : > { %v3076_v45 = vpack.c.bf16 %v3020_v37, %v3018_v34  ;;  %v3075_v24 = vpack.c.bf16 %v3019_v63, %v3017_v52  ;;  %v2207_v0 = vsub.f32 %v5058_v9, %v5667_v62  ;;  %v2208_v32 = vsub.f32 %v5058_v9, %v5670_v25 }
 0x109   : > { %2629 = vmatprep.subr.bf16.mxu0 %v2598_v55  ;;  %v2298_v29 = vrot.slane %v2282_v17, %v5062_v12  ;;  %v2760_v23 = vrot.slane %v2746_v20, %v5062_v12  ;;  %v2284_v1 = vcombine.high %v2282_v17, %v2282_v17  ;;  %v2685_v31 = vsub.f32 %v5058_v9, %v5851_v26 }
 0x10a   : > { %3107 = vmatprep.subr.bf16.mxu1 %v3076_v45  ;;  %2630 = vmatpush1.bf16.msra.mxu0 %v2597_v13  ;;  %v5977_v40 = vand.u32 2147483647, %v2207_v0  ;;  %v5979_v39 = vand.u32 2147483647, %v2208_v32  ;;  %v2686_v62 = vsub.f32 %v5058_v9, %v5856_v4  ;;  %v5985_v25 = vrot.slane %v5967_v16, %v5047_v6 }
 0x10b   : > { %3108 = vmatpush1.bf16.msra.mxu1 %v3075_v24  ;;  %v2406_v5 = vrot.slane %v2298_v29, %v5049_v7  ;;  %v2776_v21 = vrot.slane %v2760_v23, %v5062_v12  ;;  %v2402_v30 = vrot.slane %v2298_v29, %v5047_v6  ;;  %v2312_v33 = vrot.slane %v2284_v1, %v5062_v12 }
 0x10c   : > { %v2762_v53 = vcombine.high %v2760_v23, %v2760_v23  ;;  %v2314_v47 = vcombine.high %v2298_v29, %v2298_v29  ;;  %v2215_v48 = vsub.f32 1.0, %v5977_v40  ;;  %v2216_v36 = vsub.f32 1.0, %v5979_v39 }
 0x10d   : > { %v2544_v44 = vmul.f32 %v2406_v5, %v5853_v43  ;;  %v2546_v19 = vmul.f32 %v2406_v5, %v5862_v41  ;;  %v2884_v56 = vrot.slane %v2776_v21, %v5049_v7  ;;  %v2543_v51 = vmul.f32 %v2402_v30, %v5903_v59 }
 0x10e   : > { %v2545_v10 = vmul.f32 %v2402_v30, %v5906_v57  ;;  %v2880_v22 = vrot.slane %v2776_v21, %v5047_v6  ;;  %v2414_v60 = vrot.slane %v2312_v33, %v5049_v7  ;;  %v2790_v3 = vrot.slane %v2762_v53, %v5062_v12 }
 0x10f   : > { %v2600_v38 = vpack.c.bf16 %v2546_v19, %v2544_v44  ;;  %v3022_v54 = vmul.f32 %v2884_v56, %v5897_v42  ;;  %v3024_v49 = vmul.f32 %v2884_v56, %v5899_v18  ;;  %v2410_v11 = vrot.slane %v2312_v33, %v5047_v6 }
 0x110   : > { %v2599_v14 = vpack.c.bf16 %v2545_v10, %v2543_v51  ;;  %v3021_v61 = vmul.f32 %v2880_v22, %v5913_v28  ;;  %v3023_v35 = vmul.f32 %v2880_v22, %v5921_v2  ;;  %v2548_v15 = vmul.f32 %v2414_v60, %v5853_v43 }
 0x111   : > { %2631 = vmatprep.subr.bf16.mxu0 %v2600_v38  ;;  %v3078_v58 = vpack.c.bf16 %v3024_v49, %v3022_v54  ;;  %v2550_v46 = vmul.f32 %v2414_v60, %v5862_v41  ;;  %v2892_v34 = vrot.slane %v2790_v3, %v5049_v7  ;;  %v2547_v37 = vmul.f32 %v2410_v11, %v5903_v59 }
 0x112   : > { %2632 = vmatpush1.bf16.msra.mxu0 %v2599_v14  ;;  %v3077_v52 = vpack.c.bf16 %v3023_v35, %v3021_v61  ;;  %v2549_v63 = vmul.f32 %v2410_v11, %v5906_v57  ;;  %v2888_v55 = vrot.slane %v2790_v3, %v5047_v6  ;;  %v2422_v13 = vrot.slane %v2314_v47, %v5049_v7 }
 0x113   : > { %3109 = vmatprep.subr.bf16.mxu1 %v3078_v58  ;;  %v2602_v17 = vpack.c.bf16 %v2550_v46, %v2548_v15  ;;  %v3026_v20 = vmul.f32 %v2892_v34, %v5897_v42  ;;  %v3028_v45 = vmul.f32 %v2892_v34, %v5899_v18  ;;  %v2792_v24 = vcombine.high %v2776_v21, %v2776_v21 }
 0x114   : > { %3110 = vmatpush1.bf16.msra.mxu1 %v3077_v52  ;;  %v2601_v0 = vpack.c.bf16 %v2549_v63, %v2547_v37  ;;  %v3025_v32 = vmul.f32 %v2888_v55, %v5913_v28  ;;  %v3027_v29 = vmul.f32 %v2888_v55, %v5921_v2  ;;  %v2552_v23 = vmul.f32 %v2422_v13, %v5853_v43 }
 0x115   : > { %2633 = vmatprep.subr.bf16.mxu0 %v2602_v17  ;;  %v3080_v1 = vpack.c.bf16 %v3028_v45, %v3026_v20  ;;  %v2554_v5 = vmul.f32 %v2422_v13, %v5862_v41  ;;  %v2900_v30 = vrot.slane %v2792_v24, %v5049_v7  ;;  %v2418_v53 = vrot.slane %v2314_v47, %v5047_v6  ;;  %v4801_v20 = vld [vmem:[%s5054_s7 + $0x17] ss:$8 sm:$0x3] }
 0x116   : > { %2634 = vmatpush1.bf16.msra.mxu0 %v2601_v0  ;;  %v3079_v44 = vpack.c.bf16 %v3027_v29, %v3025_v32  ;;  %v2896_v21 = vrot.slane %v2792_v24, %v5047_v6  ;;  %v2316_v19 = vcombine.high %v2312_v33, %v2312_v33  ;;  %v2794_v56 = vcombine.high %v2790_v3, %v2790_v3 }
 0x117   : > { %3111 = vmatprep.subr.bf16.mxu1 %v3080_v1  ;;  %v2604_v51 = vpack.c.bf16 %v2554_v5, %v2552_v23  ;;  %v3030_v10 = vmul.f32 %v2900_v30, %v5897_v42  ;;  %v3032_v22 = vmul.f32 %v2900_v30, %v5899_v18  ;;  %v2551_v60 = vmul.f32 %v2418_v53, %v5903_v59  ;;  %v6052_v1 = vld [vmem:[%s5054_s7 + $0x30] ss:$8 sm:$0x3] }
 0x118   : > { %3112 = vmatpush1.bf16.msra.mxu1 %v3079_v44  ;;  %v2553_v38 = vmul.f32 %v2418_v53, %v5906_v57  ;;  %v3029_v54 = vmul.f32 %v2896_v21, %v5913_v28  ;;  %v3031_v47 = vmul.f32 %v2896_v21, %v5921_v2  ;;  %v2430_v49 = vrot.slane %v2316_v19, %v5049_v7 }
 0x119   : > { %2635 = vmatprep.subr.bf16.mxu0 %v2604_v51  ;;  %v3082_v33 = vpack.c.bf16 %v3032_v22, %v3030_v10  ;;  %v2908_v3 = vrot.slane %v2794_v56, %v5049_v7  ;;  %v2426_v11 = vrot.slane %v2316_v19, %v5047_v6  ;;  %v2904_v14 = vrot.slane %v2794_v56, %v5047_v6 }
 0x11a   : > { %v2603_v61 = vpack.c.bf16 %v2553_v38, %v2551_v60  ;;  %v3081_v35 = vpack.c.bf16 %v3031_v47, %v3029_v54  ;;  %v2556_v15 = vmul.f32 %v2430_v49, %v5853_v43  ;;  %v2558_v58 = vmul.f32 %v2430_v49, %v5862_v41 }
 0x11b   : > { %3113 = vmatprep.subr.bf16.mxu1 %v3082_v33  ;;  %v3034_v46 = vmul.f32 %v2908_v3, %v5897_v42  ;;  %v3036_v34 = vmul.f32 %v2908_v3, %v5899_v18  ;;  %v2555_v37 = vmul.f32 %v2426_v11, %v5903_v59  ;;  %v2557_v52 = vmul.f32 %v2426_v11, %v5906_v57 }
 0x11c   : > { %2636 = vmatpush1.bf16.msra.mxu0 %v2603_v61  ;;  %3114 = vmatpush1.bf16.msra.mxu1 %v3081_v35  ;;  %v2606_v63 = vpack.c.bf16 %v2558_v58, %v2556_v15  ;;  %v3033_v55 = vmul.f32 %v2904_v14, %v5913_v28  ;;  %v3035_v13 = vmul.f32 %v2904_v14, %v5921_v2  ;;  %v2219_v17 = vmax.f32 %v2215_v48, 0.0 }
 0x11d   : > { %v3084_v45 = vpack.c.bf16 %v3036_v34, %v3034_v46  ;;  %v2605_v24 = vpack.c.bf16 %v2557_v52, %v2555_v37  ;;  %v2220_v0 = vmax.f32 %v2216_v36, 0.0  ;;  %v2689_v32 = vand.u32 2147483647, %v2685_v31 }
 0x11e   : > { %2637 = vmatprep.subr.bf16.mxu0 %v2606_v63  ;;  %v3083_v29 = vpack.c.bf16 %v3035_v13, %v3033_v55  ;;  %v2690_v23 = vand.u32 2147483647, %v2686_v62  ;;  %v6056_v40 = vrot.slane %v5967_v16, %v5049_v7  ;;  %v3167_v39 = vsub.f32 %v5056_v8, %v5985_v25 }
 0x11f   : > { %3115 = vmatprep.subr.bf16.mxu1 %v3084_v45  ;;  %v2317_v48 = vcombine.low %v2219_v17, %v2220_v0  ;;  %v2693_v36 = vsub.f32 1.0, %v2689_v32  ;;  %v2318_v26 = vcombine.high %v2219_v17, %v2220_v0  ;;  %v6061_v31 = vrot.slane %v4801_v20, %v5047_v6 }
 0x120   : > { %2638 = vmatpush1.bf16.msra.mxu0 %v2605_v24  ;;  %3116 = vmatpush1.bf16.msra.mxu1 %v3083_v29  ;;  %v2694_v4 = vsub.f32 1.0, %v2690_v23  ;;  %v3168_v62 = vsub.f32 %v5056_v8, %v6056_v40  ;;  %v3171_v5 = vand.u32 2147483647, %v3167_v39  ;;  %v6066_v16 = vrot.slane %v4801_v20, %v5049_v7 }
 0x121   : > { %v2325_v30 = vrot.slane %v2317_v48, %v5062_v12  ;;  %v2697_v53 = vmax.f32 %v2693_v36, 0.0  ;;  %v6070_v44 = vrot.slane %v2318_v26, %v5062_v12  ;;  %v6074_v21 = vrot.slane %v6052_v1, %v5047_v6 }
 0x122   : > { %v2698_v19 = vmax.f32 %v2694_v4, 0.0  ;;  %v6076_v56 = vand.u32 2147483647, %v3168_v62  ;;  %v3175_v51 = vsub.f32 1.0, %v3171_v5  ;;  %v3195_v10 = vsub.f32 %v5056_v8, %v6066_v16 }
 0x123   : > { %v2341_v22 = vrot.slane %v2325_v30, %v5062_v12  ;;  %v2333_v60 = vcombine.high %v2325_v30, %v2325_v30  ;;  %v6083_v38 = vrot.slane %v6070_v44, %v5062_v12  ;;  %v2334_v54 = vcombine.high %v6070_v44, %v6070_v44 }
 0x124   : > { %v2795_v47 = vcombine.low %v2697_v53, %v2698_v19  ;;  %v2796_v49 = vcombine.high %v2697_v53, %v2698_v19  ;;  %v3176_v33 = vsub.f32 1.0, %v6076_v56  ;;  %v6088_v3 = vmax.f32 %v3175_v51, 0.0 }
 0x125   : > { %v2438_v11 = vrot.slane %v2341_v22, %v5049_v7  ;;  %v2434_v14 = vrot.slane %v2341_v22, %v5047_v6  ;;  %v2355_v61 = vrot.slane %v2333_v60, %v5062_v12  ;;  %v2363_v35 = vcombine.high %v2341_v22, %v2341_v22 }
 0x126   : > { %v2803_v15 = vrot.slane %v2795_v47, %v5062_v12  ;;  %v6096_v58 = vrot.slane %v6083_v38, %v5049_v7  ;;  %v6099_v46 = vrot.slane %v2796_v49, %v5062_v12  ;;  %v6103_v34 = vrot.slane %v6083_v38, %v5047_v6 }
 0x127   : > { %v2560_v37 = vmul.f32 %v2438_v11, %v5853_v43  ;;  %v2562_v52 = vmul.f32 %v2438_v11, %v5862_v41  ;;  %v2559_v63 = vmul.f32 %v2434_v14, %v5903_v59  ;;  %v2561_v55 = vmul.f32 %v2434_v14, %v5906_v57 }
 0x128   : > { %v2819_v13 = vrot.slane %v2803_v15, %v5062_v12  ;;  %v2446_v17 = vrot.slane %v2355_v61, %v5049_v7  ;;  %v2811_v20 = vcombine.high %v2803_v15, %v2803_v15  ;;  %v2442_v45 = vrot.slane %v2355_v61, %v5047_v6 }
 0x129   : > { %v2608_v24 = vpack.c.bf16 %v2562_v52, %v2560_v37  ;;  %v2607_v0 = vpack.c.bf16 %v2561_v55, %v2559_v63  ;;  %v2454_v32 = vrot.slane %v2363_v35, %v5049_v7  ;;  %v2450_v29 = vrot.slane %v2363_v35, %v5047_v6 }
 0x12a   : > { %v2916_v23 = vrot.slane %v2819_v13, %v5049_v7  ;;  %v2912_v39 = vrot.slane %v2819_v13, %v5047_v6  ;;  %v2564_v48 = vmul.f32 %v2446_v17, %v5853_v43  ;;  %v2566_v36 = vmul.f32 %v2446_v17, %v5862_v41 }
 0x12b   : > { %2639 = vmatprep.subr.bf16.mxu0 %v2608_v24  ;;  %v2833_v26 = vrot.slane %v2811_v20, %v5062_v12  ;;  %v2563_v4 = vmul.f32 %v2442_v45, %v5903_v59  ;;  %v2565_v62 = vmul.f32 %v2442_v45, %v5906_v57  ;;  %v2568_v5 = vmul.f32 %v2454_v32, %v5853_v43 }
 0x12c   : > { %v3038_v30 = vmul.f32 %v2916_v23, %v5897_v42  ;;  %v3040_v53 = vmul.f32 %v2916_v23, %v5899_v18  ;;  %2640 = vmatpush1.bf16.msra.mxu0 %v2607_v0  ;;  %v3037_v19 = vmul.f32 %v2912_v39, %v5913_v28  ;;  %v3039_v56 = vmul.f32 %v2912_v39, %v5921_v2 }
 0x12d   : > { %v2610_v51 = vpack.c.bf16 %v2566_v36, %v2564_v48  ;;  %v2924_v22 = vrot.slane %v2833_v26, %v5049_v7  ;;  %v2609_v60 = vpack.c.bf16 %v2565_v62, %v2563_v4  ;;  %v2920_v47 = vrot.slane %v2833_v26, %v5047_v6 }
 0x12e   : > { %v3086_v49 = vpack.c.bf16 %v3040_v53, %v3038_v30  ;;  %v3085_v11 = vpack.c.bf16 %v3039_v56, %v3037_v19  ;;  %v2570_v14 = vmul.f32 %v2454_v32, %v5862_v41  ;;  %v2841_v35 = vcombine.high %v2819_v13, %v2819_v13 }
 0x12f   : > { %2641 = vmatprep.subr.bf16.mxu0 %v2610_v51  ;;  %v3042_v15 = vmul.f32 %v2924_v22, %v5897_v42  ;;  %v3044_v37 = vmul.f32 %v2924_v22, %v5899_v18  ;;  %v3041_v52 = vmul.f32 %v2920_v47, %v5913_v28  ;;  %v3043_v63 = vmul.f32 %v2920_v47, %v5921_v2 }
 0x130   : > { %3117 = vmatprep.subr.bf16.mxu1 %v3086_v49  ;;  %2642 = vmatpush1.bf16.msra.mxu0 %v2609_v60  ;;  %v2612_v55 = vpack.c.bf16 %v2570_v14, %v2568_v5  ;;  %v2932_v17 = vrot.slane %v2841_v35, %v5049_v7  ;;  %v2567_v20 = vmul.f32 %v2450_v29, %v5903_v59  ;;  %v6135_v45 = vmax.f32 %v3176_v33, 0.0 }
 0x131   : > { %3118 = vmatpush1.bf16.msra.mxu1 %v3085_v11  ;;  %v3088_v13 = vpack.c.bf16 %v3044_v37, %v3042_v15  ;;  %v3087_v24 = vpack.c.bf16 %v3043_v63, %v3041_v52  ;;  %v2569_v0 = vmul.f32 %v2450_v29, %v5906_v57  ;;  %v2928_v32 = vrot.slane %v2841_v35, %v5047_v6 }
 0x132   : > { %2643 = vmatprep.subr.bf16.mxu0 %v2612_v55  ;;  %v3046_v23 = vmul.f32 %v2932_v17, %v5897_v42  ;;  %v3048_v39 = vmul.f32 %v2932_v17, %v5899_v18  ;;  %v2365_v48 = vcombine.high %v2355_v61, %v2355_v61  ;;  %v2843_v36 = vcombine.high %v2833_v26, %v2833_v26 }
 0x133   : > { %3119 = vmatprep.subr.bf16.mxu1 %v3088_v13  ;;  %v2611_v4 = vpack.c.bf16 %v2569_v0, %v2567_v20  ;;  %v3045_v62 = vmul.f32 %v2928_v32, %v5913_v28  ;;  %v3047_v33 = vmul.f32 %v2928_v32, %v5921_v2  ;;  %v2576_v5 = vmul.f32 %v6096_v58, %v5853_v43 }
 0x134   : > { %v3090_v30 = vpack.c.bf16 %v3048_v39, %v3046_v23  ;;  %v2462_v29 = vrot.slane %v2365_v48, %v5049_v7  ;;  %v2940_v53 = vrot.slane %v2843_v36, %v5049_v7  ;;  %v2458_v19 = vrot.slane %v2365_v48, %v5047_v6 }
 0x135   : > { %3120 = vmatpush1.bf16.msra.mxu1 %v3087_v24  ;;  %2644 = vmatpush1.bf16.msra.mxu0 %v2611_v4  ;;  %v3089_v61 = vpack.c.bf16 %v3047_v33, %v3045_v62  ;;  %v2936_v26 = vrot.slane %v2843_v36, %v5047_v6  ;;  %v2578_v56 = vmul.f32 %v6096_v58, %v5862_v41  ;;  %v6154_v51 = vand.u32 2147483647, %v3195_v10 }
 0x136   : > { %3121 = vmatprep.subr.bf16.mxu1 %v3090_v30  ;;  %v2572_v22 = vmul.f32 %v2462_v29, %v5853_v43  ;;  %v2574_v60 = vmul.f32 %v2462_v29, %v5862_v41  ;;  %v3050_v47 = vmul.f32 %v2940_v53, %v5897_v42  ;;  %v3052_v49 = vmul.f32 %v2940_v53, %v5899_v18 }
 0x137   : > { %v2571_v11 = vmul.f32 %v2458_v19, %v5903_v59  ;;  %v2573_v14 = vmul.f32 %v2458_v19, %v5906_v57  ;;  %v3049_v58 = vmul.f32 %v2936_v26, %v5913_v28  ;;  %v3051_v35 = vmul.f32 %v2936_v26, %v5921_v2 }
 0x138   : > { %v2614_v15 = vpack.c.bf16 %v2574_v60, %v2572_v22  ;;  %v3092_v10 = vpack.c.bf16 %v3052_v49, %v3050_v47  ;;  %v2616_v37 = vpack.c.bf16 %v2578_v56, %v2576_v5  ;;  %v2826_v52 = vrot.slane %v6099_v46, %v5062_v12 }
 0x139   : > { %3122 = vmatpush1.bf16.msra.mxu1 %v3089_v61  ;;  %v2613_v63 = vpack.c.bf16 %v2573_v14, %v2571_v11  ;;  %v3091_v55 = vpack.c.bf16 %v3051_v35, %v3049_v58  ;;  %v2575_v17 = vmul.f32 %v6103_v34, %v5903_v59  ;;  %v2577_v20 = vmul.f32 %v6103_v34, %v5906_v57 }
 0x13a   : > { %2645 = vmatprep.subr.bf16.mxu0 %v2614_v15  ;;  %3123 = vmatprep.subr.bf16.mxu1 %v3092_v10  ;;  %v2948_v13 = vrot.slane %v2826_v52, %v5049_v7  ;;  %v2944_v24 = vrot.slane %v2826_v52, %v5047_v6  ;;  %v2362_v0 = vrot.slane %v2334_v54, %v5062_v12  ;;  %v3203_v32 = vsub.f32 1.0, %v6154_v51 }
 0x13b   : > { %2646 = vmatpush1.bf16.msra.mxu0 %v2613_v63  ;;  %v2615_v23 = vpack.c.bf16 %v2577_v20, %v2575_v17  ;;  %v2812_v39 = vcombine.high %v6099_v46, %v6099_v46  ;;  %v2364_v34 = vcombine.high %v6083_v38, %v6083_v38  ;;  %v2842_v48 = vcombine.high %v2826_v52, %v2826_v52 }
 0x13c   : > { %2647 = vmatprep.subr.bf16.mxu0 %v2616_v37  ;;  %v3054_v36 = vmul.f32 %v2948_v13, %v5897_v42  ;;  %v3056_v4 = vmul.f32 %v2948_v13, %v5899_v18  ;;  %v3053_v62 = vmul.f32 %v2944_v24, %v5913_v28  ;;  %v3055_v44 = vmul.f32 %v2944_v24, %v5921_v2 }
 0x13d   : > { %3124 = vmatpush1.bf16.msra.mxu1 %v3091_v55  ;;  %v2478_v54 = vrot.slane %v2362_v0, %v5049_v7  ;;  %v2840_v33 = vrot.slane %v2812_v39, %v5062_v12  ;;  %v2474_v46 = vrot.slane %v2362_v0, %v5047_v6  ;;  %v2486_v5 = vrot.slane %v2364_v34, %v5049_v7 }
 0x13e   : > { %v3094_v38 = vpack.c.bf16 %v3056_v4, %v3054_v36  ;;  %v3093_v30 = vpack.c.bf16 %v3055_v44, %v3053_v62  ;;  %v2964_v29 = vrot.slane %v2842_v48, %v5049_v7  ;;  %v2482_v53 = vrot.slane %v2364_v34, %v5047_v6 }
 0x13f   : > { %2648 = vmatpush1.bf16.msra.mxu0 %v2615_v23  ;;  %v2580_v19 = vmul.f32 %v2478_v54, %v5853_v43  ;;  %v2582_v61 = vmul.f32 %v2478_v54, %v5862_v41  ;;  %v2956_v26 = vrot.slane %v2840_v33, %v5049_v7  ;;  %v2579_v56 = vmul.f32 %v2474_v46, %v5903_v59 }
 0x140   : > { %3125 = vmatprep.subr.bf16.mxu1 %v3094_v38  ;;  %v2581_v51 = vmul.f32 %v2474_v46, %v5906_v57  ;;  %v2952_v22 = vrot.slane %v2840_v33, %v5047_v6  ;;  %v2584_v60 = vmul.f32 %v2486_v5, %v5853_v43  ;;  %v2586_v47 = vmul.f32 %v2486_v5, %v5862_v41 }
 0x141   : > { %3126 = vmatpush1.bf16.msra.mxu1 %v3093_v30  ;;  %v2618_v49 = vpack.c.bf16 %v2582_v61, %v2580_v19  ;;  %v3058_v11 = vmul.f32 %v2956_v26, %v5897_v42  ;;  %v3060_v14 = vmul.f32 %v2956_v26, %v5899_v18  ;;  %v3062_v58 = vmul.f32 %v2964_v29, %v5897_v42 }
 0x142   : > { %v2617_v35 = vpack.c.bf16 %v2581_v51, %v2579_v56  ;;  %v3057_v15 = vmul.f32 %v2952_v22, %v5913_v28  ;;  %v3059_v10 = vmul.f32 %v2952_v22, %v5921_v2  ;;  %v2620_v37 = vpack.c.bf16 %v2586_v47, %v2584_v60  ;;  %v4804_v56 = vld [vmem:[%s5054_s7 + $0x20] ss:$8 sm:$0x3] }
 0x143   : > { %2649 = vmatprep.subr.bf16.mxu0 %v2618_v49  ;;  %v3096_v52 = vpack.c.bf16 %v3060_v14, %v3058_v11  ;;  %v3064_v63 = vmul.f32 %v2964_v29, %v5899_v18  ;;  %v2583_v55 = vmul.f32 %v2482_v53, %v5903_v59  ;;  %v2585_v17 = vmul.f32 %v2482_v53, %v5906_v57  ;;  %v4803_v29 = vld [vmem:[%s5054_s7 + $0x7] ss:$8 sm:$0x3] }
 0x144   : > { %2650 = vmatpush1.bf16.msra.mxu0 %v2617_v35  ;;  %v3095_v20 = vpack.c.bf16 %v3059_v10, %v3057_v15  ;;  %v2960_v13 = vrot.slane %v2842_v48, %v5047_v6  ;;  %v2366_v24 = vcombine.high %v2362_v0, %v2362_v0  ;;  %v2844_v23 = vcombine.high %v2840_v33, %v2840_v33 }
 0x145   : > { %3127 = vmatprep.subr.bf16.mxu1 %v3096_v52  ;;  %2651 = vmatprep.subr.bf16.mxu0 %v2620_v37  ;;  %v3098_v39 = vpack.c.bf16 %v3064_v63, %v3062_v58  ;;  %v2619_v34 = vpack.c.bf16 %v2585_v17, %v2583_v55  ;;  %v3197_v36 = vsub.f32 %v5058_v9, %v6066_v16  ;;  %v3207_v4 = vmax.f32 %v3203_v32, 0.0 }
 0x146   : > { %3128 = vmatpush1.bf16.msra.mxu1 %v3095_v20  ;;  %v3061_v62 = vmul.f32 %v2960_v13, %v5913_v28  ;;  %v3063_v44 = vmul.f32 %v2960_v13, %v5921_v2  ;;  %v2494_v54 = vrot.slane %v2366_v24, %v5049_v7  ;;  %v2972_v48 = vrot.slane %v2844_v23, %v5049_v7 }
 0x147   : > { %3129 = vmatprep.subr.bf16.mxu1 %v3098_v39  ;;  %v2490_v0 = vrot.slane %v2366_v24, %v5047_v6  ;;  %v2968_v33 = vrot.slane %v2844_v23, %v5047_v6  ;;  %v3201_v46 = vand.u32 2147483647, %v3197_v36  ;;  %v3218_v16 = vrot.slane %v6052_v1, %v5049_v7 }
 0x148   : > { %2652 = vmatpush1.bf16.msra.mxu0 %v2619_v34  ;;  %v3097_v32 = vpack.c.bf16 %v3063_v44, %v3061_v62  ;;  %v2588_v5 = vmul.f32 %v2494_v54, %v5853_v43  ;;  %v2590_v38 = vmul.f32 %v2494_v54, %v5862_v41  ;;  %v3066_v30 = vmul.f32 %v2972_v48, %v5897_v42 }
 0x149   : > { %v3068_v53 = vmul.f32 %v2972_v48, %v5899_v18  ;;  %v2587_v19 = vmul.f32 %v2490_v0, %v5903_v59  ;;  %v2589_v61 = vmul.f32 %v2490_v0, %v5906_v57  ;;  %v3065_v26 = vmul.f32 %v2968_v33, %v5913_v28  ;;  %v4805_v18 = vld [vmem:[%s5054_s7 + $0x31] ss:$8 sm:$0x3] }
 0x14a   : > { %3130 = vmatpush1.bf16.msra.mxu1 %v3097_v32  ;;  %v2622_v1 = vpack.c.bf16 %v2590_v38, %v2588_v5  ;;  %v3067_v51 = vmul.f32 %v2968_v33, %v5921_v2  ;;  %v3205_v43 = vsub.f32 1.0, %v3201_v46  ;;  %v6228_v22 = vmul.f32 %v3218_v16, %v3207_v4 }
 0x14b   : > { %v3100_v41 = vpack.c.bf16 %v3068_v53, %v3066_v30  ;;  %v2621_v60 = vpack.c.bf16 %v2589_v61, %v2587_v19  ;;  %v3229_v42 = vcombine.low %v6088_v3, %v6135_v45  ;;  %v6234_v59 = vrot.slane %v4803_v29, %v5047_v6 }
 0x14c   : > { %2653 = vmatprep.subr.bf16.mxu0 %v2622_v1  ;;  %v3099_v57 = vpack.c.bf16 %v3067_v51, %v3065_v26  ;;  %v3209_v28 = vmax.f32 %v3205_v43, 0.0  ;;  %v6237_v47 = vrot.slane %v4803_v29, %v5049_v7  ;;  %v3665_v2 = vrot.slane %v4804_v56, %v5047_v6 }
 0x14d   : > { %3131 = vmatprep.subr.bf16.mxu1 %v3100_v41  ;;  %2654 = vmatpush1.bf16.msra.mxu0 %v2621_v60  ;;  %v3237_v49 = vrot.slane %v3229_v42, %v5062_v12  ;;  %v3645_v11 = vsub.f32 %v5056_v8, %v6234_v59  ;;  %v3669_v14 = vrot.slane %v4804_v56, %v5049_v7 }
 0x14e   : > { %3132 = vmatpush1.bf16.msra.mxu1 %v3099_v57  ;;  %v6244_v58 = vmul.f32 %v3218_v16, %v3209_v28  ;;  %v3646_v35 = vsub.f32 %v5056_v8, %v6237_v47  ;;  %v6249_v15 = vrot.slane %v4805_v18, %v5047_v6  ;;  %v3696_v10 = vrot.slane %v4805_v18, %v5049_v7 }
 0x14f   : > { %v3253_v37 = vrot.slane %v3237_v49, %v5062_v12  ;;  %v3649_v52 = vand.u32 2147483647, %v3645_v11  ;;  %v3673_v63 = vsub.f32 %v5056_v8, %v3669_v14  ;;  %v3675_v55 = vsub.f32 %v5058_v9, %v3669_v14 }
 0x150   : > { %2656 = vmatmul.mubr.bf16.vlgmr.msra.gmra.mrb[8].mxu0 %v5875_v50  ;;  %v3650_v17 = vand.u32 2147483647, %v3646_v35  ;;  %v3194_v20 = vsub.f32 %v5056_v8, %v6061_v31  ;;  %v3196_v13 = vsub.f32 %v5058_v9, %v6061_v31  ;;  %v3672_v24 = vsub.f32 %v5056_v8, %v3665_v2 }
 0x151   : > { %3134 = vmatmul.mubr.bf16.vlgmr.msra.gmra.mrb[8].mxu1 %v5875_v50  ;;  %v3336_v23 = vrot.slane %v3253_v37, %v5049_v7  ;;  %v3653_v39 = vsub.f32 1.0, %v3649_v52  ;;  %v3677_v34 = vand.u32 2147483647, %v3673_v63  ;;  %v3679_v36 = vand.u32 2147483647, %v3675_v55  ;;  %3617 = vmatprep.mubr.bf16.mxu0 %v5285_v27 }
 0x152   : > { %v3654_v4 = vsub.f32 1.0, %v3650_v17  ;;  %v3198_v62 = vand.u32 2147483647, %v3194_v20  ;;  %v3200_v44 = vand.u32 2147483647, %v3196_v13  ;;  %v3332_v54 = vrot.slane %v3253_v37, %v5047_v6  ;;  %4095 = vmatprep.mubr.bf16.mxu1 %v5285_v27 }
 0x153   : > { %v3490_v31 = vmul.f32 %v3336_v23, %v6228_v22  ;;  %v3492_v48 = vmul.f32 %v3336_v23, %v6244_v58  ;;  %v6268_v0 = vmax.f32 %v3653_v39, 0.0  ;;  %v3681_v50 = vsub.f32 1.0, %v3677_v34 }
 0x154   : > { %v6270_v33 = vmax.f32 %v3654_v4, 0.0  ;;  %v3683_v46 = vsub.f32 1.0, %v3679_v36  ;;  %v3202_v16 = vsub.f32 1.0, %v3198_v62  ;;  %v3204_v32 = vsub.f32 1.0, %v3200_v44 }
 0x155   : > { %v3554_v5 = vpack.c.bf16 %v3492_v48, %v3490_v31  ;;  %v3685_v38 = vmax.f32 %v3681_v50, 0.0  ;;  %v3674_v30 = vsub.f32 %v5058_v9, %v3665_v2  ;;  %v3676_v29 = vand.u32 2147483647, %v3672_v24 }
 0x156   : > { %v3687_v53 = vmax.f32 %v3683_v46, 0.0  ;;  %v3707_v19 = vcombine.low %v6268_v0, %v6270_v33  ;;  %v3206_v61 = vmax.f32 %v3202_v16, 0.0  ;;  %v3208_v26 = vmax.f32 %v3204_v32, 0.0 }
 0x157   : > { %3585 = vmatprep.subr.bf16.mxu0 %v3554_v5  ;;  %v6275_v56 = vmul.f32 %v3696_v10, %v3685_v38  ;;  %v3678_v1 = vand.u32 2147483647, %v3674_v30  ;;  %v3680_v51 = vsub.f32 1.0, %v3676_v29  ;;  %v3245_v43 = vcombine.high %v3237_v49, %v3237_v49 }
 0x158   : > { %v6277_v41 = vmul.f32 %v3696_v10, %v3687_v53  ;;  %v3715_v60 = vrot.slane %v3707_v19, %v5062_v12  ;;  %v6281_v42 = vmul.f32 %v6074_v21, %v3206_v61  ;;  %v6284_v18 = vmul.f32 %v6074_v21, %v3208_v26 }
 0x159   : > { %v3682_v57 = vsub.f32 1.0, %v3678_v1  ;;  %v3684_v28 = vmax.f32 %v3680_v51, 0.0  ;;  %v3267_v2 = vrot.slane %v3245_v43, %v5062_v12  ;;  %v3275_v11 = vcombine.high %v3253_v37, %v3253_v37 }
 0x15a   : > { %v3731_v14 = vrot.slane %v3715_v60, %v5062_v12  ;;  %v3489_v35 = vmul.f32 %v3332_v54, %v6281_v42  ;;  %v3491_v49 = vmul.f32 %v3332_v54, %v6284_v18  ;;  %v3723_v10 = vcombine.high %v3715_v60, %v3715_v60 }
 0x15b   : > { %v3686_v52 = vmax.f32 %v3682_v57, 0.0  ;;  %v6291_v63 = vmul.f32 %v6249_v15, %v3684_v28  ;;  %v3344_v55 = vrot.slane %v3267_v2, %v5049_v7  ;;  %v3340_v21 = vrot.slane %v3267_v2, %v5047_v6  ;;  %v733_v17 = vpop.f32.mrb[0].mxu0 }
 0x15c   : > { %v3814_v20 = vrot.slane %v3731_v14, %v5049_v7  ;;  %v3553_v13 = vpack.c.bf16 %v3491_v49, %v3489_v35  ;;  %v3810_v37 = vrot.slane %v3731_v14, %v5047_v6  ;;  %v3745_v24 = vrot.slane %v3723_v10, %v5062_v12  ;;  %740 = vst [vmem:[#allocation2] sm:$0xf] %v733_v17  ;;  %v1211_v23 = vpop.f32.mrb[0].mxu1  ;;  %v735_v39 = vpop.f32.mrb[1].mxu0 }
 0x15d   : > { %v6299_v34 = vmul.f32 %v6249_v15, %v3686_v52  ;;  %v3494_v36 = vmul.f32 %v3344_v55, %v6228_v22  ;;  %v3496_v4 = vmul.f32 %v3344_v55, %v6244_v58  ;;  %v3493_v62 = vmul.f32 %v3340_v21, %v6281_v42  ;;  %741 = vst [vmem:[#allocation2 + $0x8] sm:$0xf] %v735_v39  ;;  %v6304_v44 = vpop.f32.mrb[1].mxu1  ;;  %v737_v54 = vpop.f32.mrb[2].mxu0 }
 0x15e   : > { %v3968_v31 = vmul.f32 %v3814_v20, %v6275_v56  ;;  %v3970_v48 = vmul.f32 %v3814_v20, %v6277_v41  ;;  %3586 = vmatpush1.bf16.msra.mxu0 %v3553_v13  ;;  %v3967_v50 = vmul.f32 %v3810_v37, %v6291_v63  ;;  %v3822_v15 = vrot.slane %v3745_v24, %v5049_v7  ;;  %v738_v46 = vpop.f32.mrb[3].mxu0  ;;  %v1215_v16 = vpop.f32.mrb[2].mxu1 }
 0x15f   : > { %v3969_v32 = vmul.f32 %v3810_v37, %v6299_v34  ;;  %v3556_v5 = vpack.c.bf16 %v3496_v4, %v3494_v36  ;;  %v3495_v38 = vmul.f32 %v3340_v21, %v6284_v18  ;;  %v3818_v30 = vrot.slane %v3745_v24, %v5047_v6  ;;  %v1216_v29 = vpop.f32.mrb[3].mxu1 }
 0x160   : > { %v4032_v53 = vpack.c.bf16 %v3970_v48, %v3968_v31  ;;  %v3972_v19 = vmul.f32 %v3822_v15, %v6275_v56  ;;  %v3974_v61 = vmul.f32 %v3822_v15, %v6277_v41  ;;  %v3352_v26 = vrot.slane %v3275_v11, %v5049_v7 }
 0x161   : > { %v4031_v1 = vpack.c.bf16 %v3969_v32, %v3967_v50  ;;  %3587 = vmatprep.subr.bf16.mxu0 %v3556_v5  ;;  %v3555_v51 = vpack.c.bf16 %v3495_v38, %v3493_v62  ;;  %v3971_v43 = vmul.f32 %v3818_v30, %v6291_v63  ;;  %v3973_v60 = vmul.f32 %v3818_v30, %v6299_v34 }
 0x162   : > { %4063 = vmatprep.subr.bf16.mxu1 %v4032_v53  ;;  %v4034_v57 = vpack.c.bf16 %v3974_v61, %v3972_v19  ;;  %v3498_v28 = vmul.f32 %v3352_v26, %v6228_v22  ;;  %v3500_v35 = vmul.f32 %v3352_v26, %v6244_v58  ;;  %v3753_v49 = vcombine.high %v3731_v14, %v3731_v14 }
 0x163   : > { %4064 = vmatpush1.bf16.msra.mxu1 %v4031_v1  ;;  %3588 = vmatpush1.bf16.msra.mxu0 %v3555_v51  ;;  %v4033_v10 = vpack.c.bf16 %v3973_v60, %v3971_v43  ;;  %v3348_v52 = vrot.slane %v3275_v11, %v5047_v6  ;;  %v3277_v55 = vcombine.high %v3267_v2, %v3267_v2  ;;  %v1220_v21 = vrot.slane %v1211_v23, 4 }
 0x164   : > { %4065 = vmatprep.subr.bf16.mxu1 %v4034_v57  ;;  %v3558_v17 = vpack.c.bf16 %v3500_v35, %v3498_v28  ;;  %v3830_v20 = vrot.slane %v3753_v49, %v5049_v7  ;;  %v3826_v13 = vrot.slane %v3753_v49, %v5047_v6  ;;  %v3755_v37 = vcombine.high %v3745_v24, %v3745_v24 }
 0x165   : > { %v3497_v39 = vmul.f32 %v3348_v52, %v6281_v42  ;;  %v3499_v36 = vmul.f32 %v3348_v52, %v6284_v18  ;;  %v3360_v14 = vrot.slane %v3277_v55, %v5049_v7  ;;  %v3356_v4 = vrot.slane %v3277_v55, %v5047_v6  ;;  %1224 = vst [vmem:[#allocation2] sm:$0xf0] %v1220_v21 }
 0x166   : > { %3589 = vmatprep.subr.bf16.mxu0 %v3558_v17  ;;  %v3976_v2 = vmul.f32 %v3830_v20, %v6275_v56  ;;  %v3978_v11 = vmul.f32 %v3830_v20, %v6277_v41  ;;  %v3975_v23 = vmul.f32 %v3826_v13, %v6291_v63  ;;  %v3977_v62 = vmul.f32 %v3826_v13, %v6299_v34 }
 0x167   : > { %4066 = vmatpush1.bf16.msra.mxu1 %v4033_v10  ;;  %v3557_v24 = vpack.c.bf16 %v3499_v36, %v3497_v39  ;;  %v3502_v54 = vmul.f32 %v3360_v14, %v6228_v22  ;;  %v3504_v31 = vmul.f32 %v3360_v14, %v6244_v58  ;;  %v3838_v48 = vrot.slane %v3755_v37, %v5049_v7 }
 0x168   : > { %v4036_v50 = vpack.c.bf16 %v3978_v11, %v3976_v2  ;;  %v4035_v15 = vpack.c.bf16 %v3977_v62, %v3975_v23  ;;  %v3501_v46 = vmul.f32 %v3356_v4, %v6281_v42  ;;  %v3503_v16 = vmul.f32 %v3356_v4, %v6284_v18 }
 0x169   : > { %3590 = vmatpush1.bf16.msra.mxu0 %v3557_v24  ;;  %v3560_v32 = vpack.c.bf16 %v3504_v31, %v3502_v54  ;;  %v3980_v5 = vmul.f32 %v3838_v48, %v6275_v56  ;;  %v3982_v38 = vmul.f32 %v3838_v48, %v6277_v41  ;;  %v3834_v30 = vrot.slane %v3755_v37, %v5047_v6 }
 0x16a   : > { %4067 = vmatprep.subr.bf16.mxu1 %v4036_v50  ;;  %v3559_v29 = vpack.c.bf16 %v3503_v16, %v3501_v46  ;;  %v3230_v53 = vcombine.high %v6088_v3, %v6135_v45  ;;  %v3708_v19 = vcombine.high %v6268_v0, %v6270_v33  ;;  %v3169_v61 = vsub.f32 %v5058_v9, %v5985_v25  ;;  %v6353_v0 = vld [vmem:[%s5054_s7 + $0x10] ss:$8 sm:$0x3] }
 0x16b   : > { %4068 = vmatpush1.bf16.msra.mxu1 %v4035_v15  ;;  %3591 = vmatprep.subr.bf16.mxu0 %v3560_v32  ;;  %v4038_v26 = vpack.c.bf16 %v3982_v38, %v3980_v5  ;;  %v3979_v1 = vmul.f32 %v3834_v30, %v6291_v63  ;;  %v3981_v51 = vmul.f32 %v3834_v30, %v6299_v34  ;;  %v1221_v43 = vrot.slane %v6304_v44, 4 }
 0x16c   : > { %v3244_v60 = vrot.slane %v3230_v53, %v5062_v12  ;;  %v3722_v57 = vrot.slane %v3708_v19, %v5062_v12  ;;  %v3170_v3 = vsub.f32 %v5058_v9, %v6056_v40  ;;  %v3173_v45 = vand.u32 2147483647, %v3169_v61 }
 0x16d   : > { %4069 = vmatprep.subr.bf16.mxu1 %v4038_v26  ;;  %3592 = vmatpush1.bf16.msra.mxu0 %v3559_v29  ;;  %v4037_v25 = vpack.c.bf16 %v3981_v51, %v3979_v1  ;;  %v3647_v33 = vsub.f32 %v5058_v9, %v6234_v59  ;;  %v3648_v28 = vsub.f32 %v5058_v9, %v6237_v47 }
 0x16e   : > { %1225 = vst [vmem:[#allocation2 + $0x8] sm:$0xf0] %v1221_v43  ;;  %v3260_v44 = vrot.slane %v3244_v60, %v5062_v12  ;;  %v3738_v35 = vrot.slane %v3722_v57, %v5062_v12  ;;  %v3246_v49 = vcombine.high %v3244_v60, %v3244_v60  ;;  %v3724_v10 = vcombine.high %v3722_v57, %v3722_v57 }
 0x16f   : > { %4070 = vmatpush1.bf16.msra.mxu1 %v4037_v25  ;;  %v3174_v40 = vand.u32 2147483647, %v3170_v3  ;;  %v3177_v52 = vsub.f32 1.0, %v3173_v45  ;;  %v6361_v55 = vand.u32 2147483647, %v3647_v33  ;;  %v6365_v21 = vrot.slane %v6353_v0, %v5047_v6 }
 0x170   : > { %v3368_v59 = vrot.slane %v3260_v44, %v5049_v7  ;;  %v3846_v17 = vrot.slane %v3738_v35, %v5049_v7  ;;  %v3364_v20 = vrot.slane %v3260_v44, %v5047_v6  ;;  %v3842_v13 = vrot.slane %v3738_v35, %v5047_v6 }
 0x171   : > { %v3274_v37 = vrot.slane %v3246_v49, %v5062_v12  ;;  %v3752_v39 = vrot.slane %v3724_v10, %v5062_v12  ;;  %v3276_v36 = vcombine.high %v3260_v44, %v3260_v44  ;;  %v3754_v14 = vcombine.high %v3738_v35, %v3738_v35 }
 0x172   : > { %v3506_v4 = vmul.f32 %v3368_v59, %v6228_v22  ;;  %v3508_v2 = vmul.f32 %v3368_v59, %v6244_v58  ;;  %v3984_v11 = vmul.f32 %v3846_v17, %v6275_v56  ;;  %v3986_v23 = vmul.f32 %v3846_v17, %v6277_v41 }
 0x173   : > { %v3505_v62 = vmul.f32 %v3364_v20, %v6281_v42  ;;  %v3507_v24 = vmul.f32 %v3364_v20, %v6284_v18  ;;  %v3983_v54 = vmul.f32 %v3842_v13, %v6291_v63  ;;  %v3985_v31 = vmul.f32 %v3842_v13, %v6299_v34 }
 0x174   : > { %v3562_v48 = vpack.c.bf16 %v3508_v2, %v3506_v4  ;;  %v4040_v50 = vpack.c.bf16 %v3986_v23, %v3984_v11  ;;  %v3376_v15 = vrot.slane %v3274_v37, %v5049_v7  ;;  %v3854_v46 = vrot.slane %v3752_v39, %v5049_v7 }
 0x175   : > { %v3561_v16 = vpack.c.bf16 %v3507_v24, %v3505_v62  ;;  %v4039_v32 = vpack.c.bf16 %v3985_v31, %v3983_v54  ;;  %v3372_v5 = vrot.slane %v3274_v37, %v5047_v6  ;;  %v3850_v38 = vrot.slane %v3752_v39, %v5047_v6 }
 0x176   : > { %3593 = vmatprep.subr.bf16.mxu0 %v3562_v48  ;;  %4071 = vmatprep.subr.bf16.mxu1 %v4040_v50  ;;  %v3510_v30 = vmul.f32 %v3376_v15, %v6228_v22  ;;  %v3512_v29 = vmul.f32 %v3376_v15, %v6244_v58  ;;  %v3988_v53 = vmul.f32 %v3854_v46, %v6275_v56  ;;  %v3178_v19 = vsub.f32 1.0, %v3174_v40 }
 0x177   : > { %3594 = vmatpush1.bf16.msra.mxu0 %v3561_v16  ;;  %4072 = vmatpush1.bf16.msra.mxu1 %v4039_v32  ;;  %v3990_v61 = vmul.f32 %v3854_v46, %v6277_v41  ;;  %v3509_v26 = vmul.f32 %v3372_v5, %v6281_v42  ;;  %v3511_v1 = vmul.f32 %v3372_v5, %v6284_v18  ;;  %v3181_v51 = vmax.f32 %v3177_v52, 0.0 }
 0x178   : > { %v3564_v43 = vpack.c.bf16 %v3512_v29, %v3510_v30  ;;  %v3987_v60 = vmul.f32 %v3850_v38, %v6291_v63  ;;  %v3989_v57 = vmul.f32 %v3850_v38, %v6299_v34  ;;  %v3384_v3 = vrot.slane %v3276_v36, %v5049_v7 }
 0x179   : > { %v4042_v45 = vpack.c.bf16 %v3990_v61, %v3988_v53  ;;  %v3563_v25 = vpack.c.bf16 %v3511_v1, %v3509_v26  ;;  %v3862_v33 = vrot.slane %v3754_v14, %v5049_v7  ;;  %v3380_v44 = vrot.slane %v3276_v36, %v5047_v6 }
 0x17a   : > { %3595 = vmatprep.subr.bf16.mxu0 %v3564_v43  ;;  %v4041_v35 = vpack.c.bf16 %v3989_v57, %v3987_v60  ;;  %v3514_v49 = vmul.f32 %v3384_v3, %v6228_v22  ;;  %v3516_v10 = vmul.f32 %v3384_v3, %v6244_v58  ;;  %v3858_v40 = vrot.slane %v3754_v14, %v5047_v6 }
 0x17b   : > { %4073 = vmatprep.subr.bf16.mxu1 %v4042_v45  ;;  %3596 = vmatpush1.bf16.msra.mxu0 %v3563_v25  ;;  %v3992_v52 = vmul.f32 %v3862_v33, %v6275_v56  ;;  %v3994_v59 = vmul.f32 %v3862_v33, %v6277_v41  ;;  %v3513_v17 = vmul.f32 %v3380_v44, %v6281_v42  ;;  %v3182_v20 = vmax.f32 %v3178_v19, 0.0 }
 0x17c   : > { %4074 = vmatpush1.bf16.msra.mxu1 %v4041_v35  ;;  %v3566_v13 = vpack.c.bf16 %v3516_v10, %v3514_v49  ;;  %v3515_v36 = vmul.f32 %v3380_v44, %v6284_v18  ;;  %v3991_v4 = vmul.f32 %v3858_v40, %v6291_v63  ;;  %v3993_v2 = vmul.f32 %v3858_v40, %v6299_v34 }
 0x17d   : > { %v4044_v11 = vpack.c.bf16 %v3994_v59, %v3992_v52  ;;  %v3278_v23 = vcombine.high %v3274_v37, %v3274_v37  ;;  %v3756_v14 = vcombine.high %v3752_v39, %v3752_v39  ;;  %v3279_v62 = vcombine.low %v3181_v51, %v3182_v20 }
 0x17e   : > { %3597 = vmatprep.subr.bf16.mxu0 %v3566_v13  ;;  %v3565_v24 = vpack.c.bf16 %v3515_v36, %v3513_v17  ;;  %v4043_v54 = vpack.c.bf16 %v3993_v2, %v3991_v4  ;;  %v3652_v31 = vand.u32 2147483647, %v3648_v28  ;;  %v3655_v48 = vsub.f32 1.0, %v6361_v55 }
 0x17f   : > { %4075 = vmatprep.subr.bf16.mxu1 %v4044_v11  ;;  %v3392_v50 = vrot.slane %v3278_v23, %v5049_v7  ;;  %v3870_v15 = vrot.slane %v3756_v14, %v5049_v7  ;;  %v3388_v46 = vrot.slane %v3278_v23, %v5047_v6  ;;  %v3866_v37 = vrot.slane %v3756_v14, %v5047_v6 }
 0x180   : > { %3598 = vmatpush1.bf16.msra.mxu0 %v3565_v24  ;;  %4076 = vmatpush1.bf16.msra.mxu1 %v4043_v54  ;;  %v3287_v39 = vrot.slane %v3279_v62, %v5062_v12  ;;  %v3656_v16 = vsub.f32 1.0, %v3652_v31  ;;  %v6414_v32 = vmax.f32 %v3655_v48, 0.0  ;;  %v3280_v47 = vcombine.high %v3181_v51, %v3182_v20 }
 0x181   : > { %v3518_v28 = vmul.f32 %v3392_v50, %v6228_v22  ;;  %v3520_v55 = vmul.f32 %v3392_v50, %v6244_v58  ;;  %v3996_v5 = vmul.f32 %v3870_v15, %v6275_v56  ;;  %v3998_v38 = vmul.f32 %v3870_v15, %v6277_v41 }
 0x182   : > { %v3517_v30 = vmul.f32 %v3388_v46, %v6281_v42  ;;  %v3519_v29 = vmul.f32 %v3388_v46, %v6284_v18  ;;  %v3995_v53 = vmul.f32 %v3866_v37, %v6291_v63  ;;  %v3997_v19 = vmul.f32 %v3866_v37, %v6299_v34 }
 0x183   : > { %v3568_v61 = vpack.c.bf16 %v3520_v55, %v3518_v28  ;;  %v4046_v26 = vpack.c.bf16 %v3998_v38, %v3996_v5  ;;  %v3303_v1 = vrot.slane %v3287_v39, %v5062_v12  ;;  %v6425_v51 = vmax.f32 %v3656_v16, 0.0 }
 0x184   : > { %v3567_v43 = vpack.c.bf16 %v3519_v29, %v3517_v30  ;;  %v4045_v60 = vpack.c.bf16 %v3997_v19, %v3995_v53  ;;  %v3295_v57 = vcombine.high %v3287_v39, %v3287_v39  ;;  %v6428_v3 = vrot.slane %v3280_v47, %v5062_v12 }
 0x185   : > { %3599 = vmatprep.subr.bf16.mxu0 %v3568_v61  ;;  %4077 = vmatprep.subr.bf16.mxu1 %v4046_v26  ;;  %v3400_v45 = vrot.slane %v3303_v1, %v5049_v7  ;;  %v3757_v25 = vcombine.low %v6414_v32, %v6425_v51  ;;  %v3396_v33 = vrot.slane %v3303_v1, %v5047_v6 }
 0x186   : > { %3600 = vmatpush1.bf16.msra.mxu0 %v3567_v43  ;;  %4078 = vmatpush1.bf16.msra.mxu1 %v4045_v60  ;;  %v3317_v44 = vrot.slane %v3295_v57, %v5062_v12  ;;  %v3325_v35 = vcombine.high %v3303_v1, %v3303_v1  ;;  %v6437_v49 = vrot.slane %v6428_v3, %v5062_v12 }
 0x187   : > { %v3522_v10 = vmul.f32 %v3400_v45, %v6228_v22  ;;  %v3524_v40 = vmul.f32 %v3400_v45, %v6244_v58  ;;  %v3765_v52 = vrot.slane %v3757_v25, %v5062_v12  ;;  %v3521_v59 = vmul.f32 %v3396_v33, %v6281_v42 }
 0x188   : > { %v3523_v17 = vmul.f32 %v3396_v33, %v6284_v18  ;;  %v3408_v20 = vrot.slane %v3317_v44, %v5049_v7  ;;  %v3404_v13 = vrot.slane %v3317_v44, %v5047_v6  ;;  %v3416_v36 = vrot.slane %v3325_v35, %v5049_v7 }
 0x189   : > { %v3570_v4 = vpack.c.bf16 %v3524_v40, %v3522_v10  ;;  %v3781_v2 = vrot.slane %v3765_v52, %v5062_v12  ;;  %v3773_v11 = vcombine.high %v3765_v52, %v3765_v52  ;;  %v3412_v23 = vrot.slane %v3325_v35, %v5047_v6 }
 0x18a   : > { %v3569_v14 = vpack.c.bf16 %v3523_v17, %v3521_v59  ;;  %v3526_v62 = vmul.f32 %v3408_v20, %v6228_v22  ;;  %v3528_v24 = vmul.f32 %v3408_v20, %v6244_v58  ;;  %v3525_v54 = vmul.f32 %v3404_v13, %v6281_v42 }
 0x18b   : > { %3601 = vmatprep.subr.bf16.mxu0 %v3570_v4  ;;  %v3878_v31 = vrot.slane %v3781_v2, %v5049_v7  ;;  %v3874_v48 = vrot.slane %v3781_v2, %v5047_v6  ;;  %v3795_v50 = vrot.slane %v3773_v11, %v5062_v12  ;;  %v3527_v15 = vmul.f32 %v3404_v13, %v6284_v18 }
 0x18c   : > { %3602 = vmatpush1.bf16.msra.mxu0 %v3569_v14  ;;  %v3572_v46 = vpack.c.bf16 %v3528_v24, %v3526_v62  ;;  %v3530_v37 = vmul.f32 %v3416_v36, %v6228_v22  ;;  %v3532_v39 = vmul.f32 %v3416_v36, %v6244_v58  ;;  %v3803_v16 = vcombine.high %v3781_v2, %v3781_v2 }
 0x18d   : > { %v4000_v47 = vmul.f32 %v3878_v31, %v6275_v56  ;;  %v4002_v28 = vmul.f32 %v3878_v31, %v6277_v41  ;;  %v3999_v55 = vmul.f32 %v3874_v48, %v6291_v63  ;;  %v4001_v5 = vmul.f32 %v3874_v48, %v6299_v34 }
 0x18e   : > { %3603 = vmatprep.subr.bf16.mxu0 %v3572_v46  ;;  %v3886_v38 = vrot.slane %v3795_v50, %v5049_v7  ;;  %v3571_v30 = vpack.c.bf16 %v3527_v15, %v3525_v54  ;;  %v3882_v29 = vrot.slane %v3795_v50, %v5047_v6  ;;  %v3574_v53 = vpack.c.bf16 %v3532_v39, %v3530_v37 }
 0x18f   : > { %v4048_v19 = vpack.c.bf16 %v4002_v28, %v4000_v47  ;;  %v4047_v61 = vpack.c.bf16 %v4001_v5, %v3999_v55  ;;  %v3894_v26 = vrot.slane %v3803_v16, %v5049_v7  ;;  %v3529_v1 = vmul.f32 %v3412_v23, %v6281_v42 }
 0x190   : > { %v4004_v43 = vmul.f32 %v3886_v38, %v6275_v56  ;;  %v4006_v60 = vmul.f32 %v3886_v38, %v6277_v41  ;;  %3604 = vmatpush1.bf16.msra.mxu0 %v3571_v30  ;;  %v4003_v57 = vmul.f32 %v3882_v29, %v6291_v63  ;;  %v4005_v45 = vmul.f32 %v3882_v29, %v6299_v34 }
 0x191   : > { %4079 = vmatprep.subr.bf16.mxu1 %v4048_v19  ;;  %3605 = vmatprep.subr.bf16.mxu0 %v3574_v53  ;;  %v4008_v25 = vmul.f32 %v3894_v26, %v6275_v56  ;;  %v4010_v33 = vmul.f32 %v3894_v26, %v6277_v41  ;;  %v3531_v35 = vmul.f32 %v3412_v23, %v6284_v18 }
 0x192   : > { %4080 = vmatpush1.bf16.msra.mxu1 %v4047_v61  ;;  %v4050_v10 = vpack.c.bf16 %v4006_v60, %v4004_v43  ;;  %v4049_v40 = vpack.c.bf16 %v4005_v45, %v4003_v57  ;;  %v3890_v52 = vrot.slane %v3803_v16, %v5047_v6  ;;  %v3327_v59 = vcombine.high %v3317_v44, %v3317_v44 }
 0x193   : > { %v4052_v17 = vpack.c.bf16 %v4010_v33, %v4008_v25  ;;  %v3573_v20 = vpack.c.bf16 %v3531_v35, %v3529_v1  ;;  %v3805_v13 = vcombine.high %v3795_v50, %v3795_v50  ;;  %v3432_v36 = vrot.slane %v6437_v49, %v5049_v7 }
 0x194   : > { %4081 = vmatprep.subr.bf16.mxu1 %v4050_v10  ;;  %v4007_v4 = vmul.f32 %v3890_v52, %v6291_v63  ;;  %v4009_v2 = vmul.f32 %v3890_v52, %v6299_v34  ;;  %v3424_v11 = vrot.slane %v3327_v59, %v5049_v7  ;;  %v3420_v23 = vrot.slane %v3327_v59, %v5047_v6 }
 0x195   : > { %3606 = vmatpush1.bf16.msra.mxu0 %v3573_v20  ;;  %v3902_v14 = vrot.slane %v3805_v13, %v5049_v7  ;;  %v3898_v44 = vrot.slane %v3805_v13, %v5047_v6  ;;  %v3538_v62 = vmul.f32 %v3432_v36, %v6228_v22  ;;  %v3540_v24 = vmul.f32 %v3432_v36, %v6244_v58 }
 0x196   : > { %4082 = vmatpush1.bf16.msra.mxu1 %v4049_v40  ;;  %v4051_v54 = vpack.c.bf16 %v4009_v2, %v4007_v4  ;;  %v3534_v31 = vmul.f32 %v3424_v11, %v6228_v22  ;;  %v3536_v48 = vmul.f32 %v3424_v11, %v6244_v58  ;;  %v3533_v50 = vmul.f32 %v3420_v23, %v6281_v42 }
 0x197   : > { %4083 = vmatprep.subr.bf16.mxu1 %v4052_v17  ;;  %v4012_v15 = vmul.f32 %v3902_v14, %v6275_v56  ;;  %v4014_v46 = vmul.f32 %v3902_v14, %v6277_v41  ;;  %v3535_v37 = vmul.f32 %v3420_v23, %v6284_v18  ;;  %v4011_v39 = vmul.f32 %v3898_v44, %v6291_v63 }
 0x198   : > { %v3576_v16 = vpack.c.bf16 %v3536_v48, %v3534_v31  ;;  %v4013_v47 = vmul.f32 %v3898_v44, %v6299_v34  ;;  %v3578_v28 = vpack.c.bf16 %v3540_v24, %v3538_v62  ;;  %v3758_v55 = vcombine.high %v6414_v32, %v6425_v51 }
 0x199   : > { %v4054_v5 = vpack.c.bf16 %v4014_v46, %v4012_v15  ;;  %v3575_v38 = vpack.c.bf16 %v3535_v37, %v3533_v50  ;;  %v3428_v30 = vrot.slane %v6437_v49, %v5047_v6  ;;  %v3296_v29 = vcombine.high %v6428_v3, %v6428_v3 }
 0x19a   : > { %4084 = vmatpush1.bf16.msra.mxu1 %v4051_v54  ;;  %3607 = vmatprep.subr.bf16.mxu0 %v3576_v16  ;;  %v4053_v53 = vpack.c.bf16 %v4013_v47, %v4011_v39  ;;  %v3772_v19 = vrot.slane %v3758_v55, %v5062_v12  ;;  %v3326_v61 = vcombine.high %v6437_v49, %v6437_v49 }
 0x19b   : > { %4085 = vmatprep.subr.bf16.mxu1 %v4054_v5  ;;  %3608 = vmatpush1.bf16.msra.mxu0 %v3575_v38  ;;  %v3537_v32 = vmul.f32 %v3428_v30, %v6281_v42  ;;  %v3539_v51 = vmul.f32 %v3428_v30, %v6284_v18  ;;  %v3324_v26 = vrot.slane %v3296_v29, %v5062_v12 }
 0x19c   : > { %3609 = vmatprep.subr.bf16.mxu0 %v3578_v28  ;;  %v3788_v1 = vrot.slane %v3772_v19, %v5062_v12  ;;  %v3774_v3 = vcombine.high %v3772_v19, %v3772_v19  ;;  %v3448_v43 = vrot.slane %v3326_v61, %v5049_v7  ;;  %v3444_v60 = vrot.slane %v3326_v61, %v5047_v6 }
 0x19d   : > { %v3577_v57 = vpack.c.bf16 %v3539_v51, %v3537_v32  ;;  %v3440_v45 = vrot.slane %v3324_v26, %v5049_v7  ;;  %v3436_v49 = vrot.slane %v3324_v26, %v5047_v6  ;;  %v3328_v25 = vcombine.high %v3324_v26, %v3324_v26 }
 0x19e   : > { %4086 = vmatpush1.bf16.msra.mxu1 %v4053_v53  ;;  %v3910_v33 = vrot.slane %v3788_v1, %v5049_v7  ;;  %v3906_v35 = vrot.slane %v3788_v1, %v5047_v6  ;;  %v3802_v10 = vrot.slane %v3774_v3, %v5062_v12  ;;  %v3546_v40 = vmul.f32 %v3448_v43, %v6228_v22 }
 0x19f   : > { %3610 = vmatpush1.bf16.msra.mxu0 %v3577_v57  ;;  %v3542_v52 = vmul.f32 %v3440_v45, %v6228_v22  ;;  %v3544_v59 = vmul.f32 %v3440_v45, %v6244_v58  ;;  %v3541_v17 = vmul.f32 %v3436_v49, %v6281_v42  ;;  %v3543_v20 = vmul.f32 %v3436_v49, %v6284_v18 }
 0x1a0   : > { %v4016_v13 = vmul.f32 %v3910_v33, %v6275_v56  ;;  %v4018_v36 = vmul.f32 %v3910_v33, %v6277_v41  ;;  %v4015_v4 = vmul.f32 %v3906_v35, %v6291_v63  ;;  %v4017_v2 = vmul.f32 %v3906_v35, %v6299_v34 }
 0x1a1   : > { %v3580_v11 = vpack.c.bf16 %v3544_v59, %v3542_v52  ;;  %v3918_v23 = vrot.slane %v3802_v10, %v5049_v7  ;;  %v3579_v14 = vpack.c.bf16 %v3543_v20, %v3541_v17  ;;  %v3914_v44 = vrot.slane %v3802_v10, %v5047_v6 }
 0x1a2   : > { %v4056_v62 = vpack.c.bf16 %v4018_v36, %v4016_v13  ;;  %v4055_v24 = vpack.c.bf16 %v4017_v2, %v4015_v4  ;;  %v3548_v54 = vmul.f32 %v3448_v43, %v6244_v58  ;;  %v3804_v31 = vcombine.high %v3788_v1, %v3788_v1  ;;  %v4808_v4 = vld [vmem:[%s5054_s7 + $0x32] ss:$8 sm:$0x3] }
 0x1a3   : > { %3611 = vmatprep.subr.bf16.mxu0 %v3580_v11  ;;  %v4020_v48 = vmul.f32 %v3918_v23, %v6275_v56  ;;  %v4022_v50 = vmul.f32 %v3918_v23, %v6277_v41  ;;  %v4019_v15 = vmul.f32 %v3914_v44, %v6291_v63  ;;  %v4021_v46 = vmul.f32 %v3914_v44, %v6299_v34  ;;  %v6564_v23 = vld.sshfl [vmem:[%s5251_s11] sm:$0x33 pattern:$0x76325410]  ;;  %s4885_s11 = scalar_lea.vmem %s4884_s10, 512 }
 0x1a4   : > { %4087 = vmatprep.subr.bf16.mxu1 %v4056_v62  ;;  %3612 = vmatpush1.bf16.msra.mxu0 %v3579_v14  ;;  %v3582_v37 = vpack.c.bf16 %v3548_v54, %v3546_v40  ;;  %v3926_v39 = vrot.slane %v3804_v31, %v5049_v7  ;;  %v3545_v16 = vmul.f32 %v3444_v60, %v6281_v42  ;;  %p4887_p2 = scmp.lt.s32.totalorder %s4885_s11, %s4879_s8 }
 0x1a5   : > { %4088 = vmatpush1.bf16.msra.mxu1 %v4055_v24  ;;  %v4058_v47 = vpack.c.bf16 %v4022_v50, %v4020_v48  ;;  %v4057_v28 = vpack.c.bf16 %v4021_v46, %v4019_v15  ;;  %v3547_v55 = vmul.f32 %v3444_v60, %v6284_v18  ;;  %v3922_v5 = vrot.slane %v3804_v31, %v5047_v6  ;;  %v4807_v60 = vld [vmem:[%s5054_s7 + $0x21] ss:$8 sm:$0x3]  ;;  %s6714_s7 = scalar_lea.hbm %s6765_s4, %s4818_s26 }
 0x1a6   : > { %3613 = vmatprep.subr.bf16.mxu0 %v3582_v37  ;;  %v4024_v38 = vmul.f32 %v3926_v39, %v6275_v56  ;;  %v4026_v30 = vmul.f32 %v3926_v39, %v6277_v41  ;;  %v3456_v29 = vrot.slane %v3328_v25, %v5049_v7  ;;  %v3806_v53 = vcombine.high %v3802_v10, %v3802_v10  ;;  %p4888_p3 = por %p4887_p2, %p4886_p1 }
 0x1a7   : > { %4089 = vmatprep.subr.bf16.mxu1 %v4058_v47  ;;  %v3581_v19 = vpack.c.bf16 %v3547_v55, %v3545_v16  ;;  %v4023_v61 = vmul.f32 %v3922_v5, %v6291_v63  ;;  %v4025_v32 = vmul.f32 %v3922_v5, %v6299_v34  ;;  %v3452_v51 = vrot.slane %v3328_v25, %v5047_v6 }
 0x1a8   : > { %v4060_v26 = vpack.c.bf16 %v4026_v30, %v4024_v38  ;;  %v3550_v1 = vmul.f32 %v3456_v29, %v6228_v22  ;;  %v3552_v3 = vmul.f32 %v3456_v29, %v6244_v58  ;;  %v3934_v43 = vrot.slane %v3806_v53, %v5049_v7  ;;  %p4889_p5 = pnand %p4888_p3, %p4882_p0 }
 0x1a9   : > { %4090 = vmatpush1.bf16.msra.mxu1 %v4057_v28  ;;  %3614 = vmatpush1.bf16.msra.mxu0 %v3581_v19  ;;  %v4059_v57 = vpack.c.bf16 %v4025_v32, %v4023_v61  ;;  %v3549_v45 = vmul.f32 %v3452_v51, %v6281_v42  ;;  %v3551_v49 = vmul.f32 %v3452_v51, %v6284_v18 }
 0x1aa   : > { %4091 = vmatprep.subr.bf16.mxu1 %v4060_v26  ;;  %v3584_v33 = vpack.c.bf16 %v3552_v3, %v3550_v1  ;;  %v4028_v35 = vmul.f32 %v3934_v43, %v6275_v56  ;;  %v4030_v25 = vmul.f32 %v3934_v43, %v6277_v41  ;;  %v3930_v22 = vrot.slane %v3806_v53, %v5047_v6 }
 0x1ab   : > { %v3583_v10 = vpack.c.bf16 %v3551_v49, %v3549_v45  ;;  %v4126_v58 = vrot.slane %v6353_v0, %v5049_v7  ;;  %v4129_v40 = vsub.f32 %v5056_v8, %v6365_v21  ;;  %v4149_v42 = vrot.slane %v4807_v60, %v5047_v6 }
 0x1ac   : > { %3615 = vmatprep.subr.bf16.mxu0 %v3584_v33  ;;  %v4062_v18 = vpack.c.bf16 %v4030_v25, %v4028_v35  ;;  %v4027_v52 = vmul.f32 %v3930_v22, %v6291_v63  ;;  %v4029_v56 = vmul.f32 %v3930_v22, %v6299_v34  ;;  %v4153_v41 = vrot.slane %v4807_v60, %v5049_v7 }
 0x1ad   : > { %4092 = vmatpush1.bf16.msra.mxu1 %v4059_v57  ;;  %3616 = vmatpush1.bf16.msra.mxu0 %v3583_v10  ;;  %v4130_v59 = vsub.f32 %v5056_v8, %v4126_v58  ;;  %v4133_v0 = vand.u32 2147483647, %v4129_v40  ;;  %v4156_v36 = vsub.f32 %v5056_v8, %v4149_v42  ;;  %v4158_v34 = vsub.f32 %v5058_v9, %v4149_v42 }
 0x1ae   : > { %4093 = vmatprep.subr.bf16.mxu1 %v4062_v18  ;;  %v4061_v17 = vpack.c.bf16 %v4029_v56, %v4027_v52  ;;  %v4157_v20 = vsub.f32 %v5056_v8, %v4153_v41  ;;  %v4159_v13 = vsub.f32 %v5058_v9, %v4153_v41  ;;  %v4131_v11 = vsub.f32 %v5058_v9, %v6365_v21 }
 0x1af   : > { %v4134_v63 = vand.u32 2147483647, %v4130_v59  ;;  %v4137_v2 = vsub.f32 1.0, %v4133_v0  ;;  %v4160_v62 = vand.u32 2147483647, %v4156_v36  ;;  %v4132_v24 = vsub.f32 %v5058_v9, %v4126_v58 }
 0x1b0   : > { %3618 = vmatmul.mubr.bf16.vlgmr.msra.gmra.mrb[12].mxu0 %v6564_v23  ;;  %v4161_v14 = vand.u32 2147483647, %v4157_v20  ;;  %v4163_v44 = vand.u32 2147483647, %v4159_v13  ;;  %v4162_v31 = vand.u32 2147483647, %v4158_v34  ;;  %v4176_v21 = vrot.slane %v4808_v4, %v5047_v6 }
 0x1b1   : > { %4094 = vmatpush1.bf16.msra.mxu1 %v4061_v17  ;;  %v4138_v54 = vsub.f32 1.0, %v4134_v63  ;;  %v4141_v8 = vmax.f32 %v4137_v2, 0.0  ;;  %4579 = vmatprep.mubr.bf16.mxu0 %v5285_v27  ;;  %v4164_v15 = vsub.f32 1.0, %v4160_v62  ;;  %v4135_v39 = vand.u32 2147483647, %v4131_v11 }
 0x1b2   : > { %v4165_v48 = vsub.f32 1.0, %v4161_v14  ;;  %v4167_v50 = vsub.f32 1.0, %v4163_v44  ;;  %v4166_v37 = vsub.f32 1.0, %v4162_v31  ;;  %v4180_v9 = vrot.slane %v4808_v4, %v5049_v7 }
 0x1b3   : > { %v4142_v46 = vmax.f32 %v4138_v54, 0.0  ;;  %v4136_v28 = vand.u32 2147483647, %v4132_v24  ;;  %v4168_v5 = vmax.f32 %v4164_v15, 0.0  ;;  %v4139_v29 = vsub.f32 1.0, %v4135_v39 }
 0x1b4   : > { %4096 = vmatmul.mubr.bf16.vlgmr.msra.gmra.mrb[12].mxu1 %v6564_v23  ;;  %v4169_v16 = vmax.f32 %v4165_v48, 0.0  ;;  %v4171_v47 = vmax.f32 %v4167_v50, 0.0  ;;  %v4170_v38 = vmax.f32 %v4166_v37, 0.0 }
 0x1b5   : > { %v4191_v55 = vcombine.low %v4141_v8, %v4142_v46  ;;  %v4192_v30 = vcombine.high %v4141_v8, %v4142_v46  ;;  %v4140_v32 = vsub.f32 1.0, %v4136_v28  ;;  %v6579_v26 = vmul.f32 %v4176_v21, %v4168_v5 }
 0x1b6   : > { %v6573_v53 = vmul.f32 %v4180_v9, %v4169_v16  ;;  %v6575_v19 = vmul.f32 %v4180_v9, %v4171_v47  ;;  %v6581_v1 = vmul.f32 %v4176_v21, %v4170_v38  ;;  %v6587_v33 = vmax.f32 %v4139_v29, 0.0 }
 0x1b7   : > { %v4199_v27 = vrot.slane %v4191_v55, %v5062_v12  ;;  %v4206_v61 = vrot.slane %v4192_v30, %v5062_v12  ;;  %v6589_v35 = vmax.f32 %v4140_v32, 0.0 }
 0x1b9   : > { %v4215_v51 = vrot.slane %v4199_v27, %v5062_v12  ;;  %v4207_v3 = vcombine.high %v4199_v27, %v4199_v27  ;;  %v4222_v49 = vrot.slane %v4206_v61, %v5062_v12  ;;  %v4208_v0 = vcombine.high %v4206_v61, %v4206_v61 }
 0x1ba   : > { %v4241_v28 = vcombine.low %v6587_v33, %v6589_v35 }
 0x1bb   : > { %v4298_v43 = vrot.slane %v4215_v51, %v5049_v7  ;;  %v4294_v60 = vrot.slane %v4215_v51, %v5047_v6  ;;  %v4229_v57 = vrot.slane %v4207_v3, %v5062_v12  ;;  %v4237_v45 = vcombine.high %v4215_v51, %v4215_v51 }
 0x1bc   : > { %v4330_v21 = vrot.slane %v4222_v49, %v5049_v7  ;;  %v4236_v37 = vrot.slane %v4208_v0, %v5062_v12  ;;  %v4326_v9 = vrot.slane %v4222_v49, %v5047_v6  ;;  %v4238_v30 = vcombine.high %v4222_v49, %v4222_v49 }
 0x1bd   : > { %v4452_v25 = vmul.f32 %v4298_v43, %v6573_v53  ;;  %v4454_v22 = vmul.f32 %v4298_v43, %v6575_v19  ;;  %v4451_v10 = vmul.f32 %v4294_v60, %v6579_v26  ;;  %v4453_v58 = vmul.f32 %v4294_v60, %v6581_v1 }
 0x1be   : > { %v4306_v40 = vrot.slane %v4229_v57, %v5049_v7  ;;  %v4302_v42 = vrot.slane %v4229_v57, %v5047_v6  ;;  %v4314_v18 = vrot.slane %v4237_v45, %v5049_v7  ;;  %v4310_v52 = vrot.slane %v4237_v45, %v5047_v6 }
 0x1bf   : > { %v4516_v56 = vpack.c.bf16 %v4454_v22, %v4452_v25  ;;  %v4515_v41 = vpack.c.bf16 %v4453_v58, %v4451_v10  ;;  %v4239_v59 = vcombine.high %v4229_v57, %v4229_v57  ;;  %v1695_v17 = vpop.f32.mrb[4].mxu0  ;;  %v4468_v29 = vmul.f32 %v4330_v21, %v6573_v53 }
 0x1c0   : > { %v4456_v20 = vmul.f32 %v4306_v40, %v6573_v53  ;;  %v4458_v13 = vmul.f32 %v4306_v40, %v6575_v19  ;;  %v4455_v36 = vmul.f32 %v4302_v42, %v6579_v26  ;;  %v4457_v4 = vmul.f32 %v4302_v42, %v6581_v1  ;;  %1702 = vst [vmem:[#allocation2 + $0x10] sm:$0xf] %v1695_v17  ;;  %v6603_v63 = vpop.f32.mrb[4].mxu1  ;;  %v1697_v2 = vpop.f32.mrb[5].mxu0 }
 0x1c1   : > { %4547 = vmatprep.subr.bf16.mxu0 %v4516_v56  ;;  %v4460_v34 = vmul.f32 %v4314_v18, %v6573_v53  ;;  %v4462_v11 = vmul.f32 %v4314_v18, %v6575_v19  ;;  %v4459_v14 = vmul.f32 %v4310_v52, %v6579_v26  ;;  %v4461_v44 = vmul.f32 %v4310_v52, %v6581_v1  ;;  %v6609_v62 = vpop.f32.mrb[5].mxu1  ;;  %v1699_v24 = vpop.f32.mrb[6].mxu0 }
 0x1c2   : > { %1703 = vst [vmem:[#allocation2 + $0x18] sm:$0xf] %v1697_v2  ;;  %4548 = vmatpush1.bf16.msra.mxu0 %v4515_v41  ;;  %v4518_v54 = vpack.c.bf16 %v4458_v13, %v4456_v20  ;;  %v4517_v8 = vpack.c.bf16 %v4457_v4, %v4455_v36  ;;  %v4322_v31 = vrot.slane %v4239_v59, %v5049_v7  ;;  %v1700_v50 = vpop.f32.mrb[7].mxu0  ;;  %v2177_v15 = vpop.f32.mrb[6].mxu1 }
 0x1c3   : > { %v4318_v48 = vrot.slane %v4239_v59, %v5047_v6  ;;  %v4520_v46 = vpack.c.bf16 %v4462_v11, %v4460_v34  ;;  %v2178_v39 = vpop.f32.mrb[7].mxu1  ;;  %v4519_v55 = vpack.c.bf16 %v4461_v44, %v4459_v14  ;;  %v4470_v61 = vmul.f32 %v4330_v21, %v6575_v19 }
 0x1c4   : > { %4549 = vmatprep.subr.bf16.mxu0 %v4518_v54  ;;  %v4464_v16 = vmul.f32 %v4322_v31, %v6573_v53  ;;  %v4466_v47 = vmul.f32 %v4322_v31, %v6575_v19  ;;  %v4338_v32 = vrot.slane %v4236_v37, %v5049_v7  ;;  %v4467_v51 = vmul.f32 %v4326_v9, %v6579_v26 }
 0x1c5   : > { %v4463_v5 = vmul.f32 %v4318_v48, %v6579_v26  ;;  %v4465_v38 = vmul.f32 %v4318_v48, %v6581_v1  ;;  %v4469_v3 = vmul.f32 %v4326_v9, %v6581_v1  ;;  %v4334_v60 = vrot.slane %v4236_v37, %v5047_v6 }
 0x1c6   : > { %4550 = vmatpush1.bf16.msra.mxu0 %v4517_v8  ;;  %v4522_v27 = vpack.c.bf16 %v4466_v47, %v4464_v16  ;;  %v4346_v57 = vrot.slane %v4238_v30, %v5049_v7  ;;  %v4249_v45 = vrot.slane %v4241_v28, %v5062_v12  ;;  %v4524_v49 = vpack.c.bf16 %v4470_v61, %v4468_v29 }
 0x1c7   : > { %4551 = vmatprep.subr.bf16.mxu0 %v4520_v46  ;;  %v4521_v43 = vpack.c.bf16 %v4465_v38, %v4463_v5  ;;  %v4472_v25 = vmul.f32 %v4338_v32, %v6573_v53  ;;  %v4474_v22 = vmul.f32 %v4338_v32, %v6575_v19  ;;  %v4240_v10 = vcombine.high %v4236_v37, %v4236_v37 }
 0x1c8   : > { %v4523_v58 = vpack.c.bf16 %v4469_v3, %v4467_v51  ;;  %v4342_v40 = vrot.slane %v4238_v30, %v5047_v6  ;;  %v4471_v42 = vmul.f32 %v4334_v60, %v6579_v26  ;;  %v4473_v18 = vmul.f32 %v4334_v60, %v6581_v1 }
 0x1c9   : > { %v4476_v52 = vmul.f32 %v4346_v57, %v6573_v53  ;;  %v4478_v56 = vmul.f32 %v4346_v57, %v6575_v19  ;;  %v4526_v41 = vpack.c.bf16 %v4474_v22, %v4472_v25  ;;  %v4354_v59 = vrot.slane %v4240_v10, %v5049_v7 }
 0x1ca   : > { %4552 = vmatpush1.bf16.msra.mxu0 %v4519_v55  ;;  %v4265_v0 = vrot.slane %v4249_v45, %v5062_v12  ;;  %v4257_v17 = vcombine.high %v4249_v45, %v4249_v45  ;;  %v4475_v20 = vmul.f32 %v4342_v40, %v6579_v26  ;;  %v4477_v13 = vmul.f32 %v4342_v40, %v6581_v1 }
 0x1cb   : > { %4553 = vmatprep.subr.bf16.mxu0 %v4522_v27  ;;  %v4525_v36 = vpack.c.bf16 %v4473_v18, %v4471_v42  ;;  %v4528_v4 = vpack.c.bf16 %v4478_v56, %v4476_v52  ;;  %v4350_v2 = vrot.slane %v4240_v10, %v5047_v6  ;;  %v4480_v34 = vmul.f32 %v4354_v59, %v6573_v53  ;;  %v4591_v42 = vld [vmem:[#allocation2 + $0x8] sm:$0xff] }
 0x1cc   : > { %v4482_v11 = vmul.f32 %v4354_v59, %v6575_v19  ;;  %v4362_v14 = vrot.slane %v4265_v0, %v5049_v7  ;;  %v4279_v44 = vrot.slane %v4257_v17, %v5062_v12  ;;  %v4527_v24 = vpack.c.bf16 %v4477_v13, %v4475_v20 }
 0x1cd   : > { %v4358_v54 = vrot.slane %v4265_v0, %v5047_v6  ;;  %v4242_v8 = vcombine.high %v6587_v33, %v6589_v35  ;;  %v4479_v31 = vmul.f32 %v4350_v2, %v6579_v26  ;;  %v4481_v48 = vmul.f32 %v4350_v2, %v6581_v1 }
 0x1ce   : > { %4554 = vmatpush1.bf16.msra.mxu0 %v4521_v43  ;;  %v4287_v50 = vcombine.high %v4265_v0, %v4265_v0  ;;  %v2182_v15 = vrot.slane %v6603_v63, 4  ;;  %v4530_v46 = vpack.c.bf16 %v4482_v11, %v4480_v34  ;;  %v4484_v21 = vmul.f32 %v4362_v14, %v6573_v53  ;;  %v4590_v0 = vld [vmem:[#allocation2] sm:$0xff] }
 0x1cf   : > { %4555 = vmatprep.subr.bf16.mxu0 %v4524_v49  ;;  %v4486_v37 = vmul.f32 %v4362_v14, %v6575_v19  ;;  %v4370_v39 = vrot.slane %v4279_v44, %v5049_v7  ;;  %v4483_v16 = vmul.f32 %v4358_v54, %v6579_v26  ;;  %v4485_v33 = vmul.f32 %v4358_v54, %v6581_v1 }
 0x1d0   : > { %2186 = vst [vmem:[#allocation2 + $0x10] sm:$0xf0] %v2182_v15  ;;  %v4256_v35 = vrot.slane %v4242_v8, %v5062_v12  ;;  %v2183_v47 = vrot.slane %v6609_v62, 4  ;;  %v4529_v9 = vpack.c.bf16 %v4481_v48, %v4479_v31  ;;  %v4366_v63 = vrot.slane %v4279_v44, %v5047_v6 }
 0x1d1   : > { %v4378_v28 = vrot.slane %v4287_v50, %v5049_v7  ;;  %v4532_v55 = vpack.c.bf16 %v4486_v37, %v4484_v21  ;;  %v4488_v5 = vmul.f32 %v4370_v39, %v6573_v53  ;;  %v4490_v38 = vmul.f32 %v4370_v39, %v6575_v19 }
 0x1d2   : > { %4556 = vmatpush1.bf16.msra.mxu0 %v4523_v58  ;;  %v4289_v30 = vcombine.high %v4279_v44, %v4279_v44  ;;  %2187 = vst [vmem:[#allocation2 + $0x18] sm:$0xf0] %v2183_v47  ;;  %v4531_v27 = vpack.c.bf16 %v4485_v33, %v4483_v16  ;;  %v4374_v29 = vrot.slane %v4287_v50, %v5047_v6 }
 0x1d3   : > { %4557 = vmatprep.subr.bf16.mxu0 %v4526_v41  ;;  %v4272_v61 = vrot.slane %v4256_v35, %v5062_v12  ;;  %v4487_v62 = vmul.f32 %v4366_v63, %v6579_v26  ;;  %v4489_v32 = vmul.f32 %v4366_v63, %v6581_v1  ;;  %v4492_v51 = vmul.f32 %v4378_v28, %v6573_v53 }
 0x1d4   : > { %v4494_v3 = vmul.f32 %v4378_v28, %v6575_v19  ;;  %v4534_v43 = vpack.c.bf16 %v4490_v38, %v4488_v5  ;;  %v4386_v60 = vrot.slane %v4289_v30, %v5049_v7  ;;  %v4258_v57 = vcombine.high %v4256_v35, %v4256_v35 }
 0x1d5   : > { %v4491_v45 = vmul.f32 %v4374_v29, %v6579_v26  ;;  %v4493_v49 = vmul.f32 %v4374_v29, %v6581_v1  ;;  %v4394_v25 = vrot.slane %v4272_v61, %v5049_v7  ;;  %v4533_v10 = vpack.c.bf16 %v4489_v32, %v4487_v62 }
 0x1d6   : > { %4558 = vmatpush1.bf16.msra.mxu0 %v4525_v36  ;;  %v4536_v58 = vpack.c.bf16 %v4494_v3, %v4492_v51  ;;  %v4382_v40 = vrot.slane %v4289_v30, %v5047_v6  ;;  %v4496_v52 = vmul.f32 %v4386_v60, %v6573_v53  ;;  %v4498_v56 = vmul.f32 %v4386_v60, %v6575_v19 }
 0x1d7   : > { %4559 = vmatprep.subr.bf16.mxu0 %v4528_v4  ;;  %v4592_v22 = vld [vmem:[#allocation2 + $0x10] sm:$0xff]  ;;  %v4286_v41 = vrot.slane %v4258_v57, %v5062_v12  ;;  %v4535_v20 = vpack.c.bf16 %v4493_v49, %v4491_v45  ;;  %v4500_v13 = vmul.f32 %v4394_v25, %v6573_v53  ;;  %v4502_v36 = vmul.f32 %v4394_v25, %v6575_v19 }
 0x1d8   : > { %v4600_v17 = vpack.c.bf16 %v4592_v22, %v4590_v0  ;;  %v4495_v4 = vmul.f32 %v4382_v40, %v6579_v26  ;;  %v4497_v2 = vmul.f32 %v4382_v40, %v6581_v1  ;;  %v4390_v34 = vrot.slane %v4272_v61, %v5047_v6 }
 0x1d9   : > { %v4593_v18 = vld [vmem:[#allocation2 + $0x18] sm:$0xff]  ;;  %v4538_v11 = vpack.c.bf16 %v4498_v56, %v4496_v52  ;;  %v4402_v12 = vrot.slane %v4286_v41, %v5049_v7  ;;  %v4288_v14 = vcombine.high %v4272_v61, %v4272_v61  ;;  %v4540_v44 = vpack.c.bf16 %v4502_v36, %v4500_v13 }
 0x1da   : > { %4560 = vmatpush1.bf16.msra.mxu0 %v4527_v24  ;;  %v4601_v59 = vpack.c.bf16 %v4593_v18, %v4591_v42  ;;  %v4537_v24 = vpack.c.bf16 %v4497_v2, %v4495_v4  ;;  %v4499_v54 = vmul.f32 %v4390_v34, %v6579_v26  ;;  %v4501_v8 = vmul.f32 %v4390_v34, %v6581_v1 }
 0x1db   : > { %4561 = vmatprep.subr.bf16.mxu0 %v4530_v46  ;;  %v4398_v31 = vrot.slane %v4286_v41, %v5047_v6  ;;  %v4504_v48 = vmul.f32 %v4402_v12, %v6573_v53  ;;  %v4506_v50 = vmul.f32 %v4402_v12, %v6575_v19  ;;  %v4410_v15 = vrot.slane %v4288_v14, %v5049_v7 }
 0x1dc   : > { %4624 = vmatprep.subr.bf16.mxu1 %v4601_v59  ;;  %v4290_v46 = vcombine.high %v4286_v41, %v4286_v41  ;;  %v4539_v21 = vpack.c.bf16 %v4501_v8, %v4499_v54  ;;  %v4406_v16 = vrot.slane %v4288_v14, %v5047_v6  ;;  %v4960_v45 = vmov 0   ;;  %v4606_v54 = vld [vmem:[%s6763_s2] sm:$0xf] }
 0x1dd   : > { %4625 = vmatpush1.bf16.msra.mxu1 %v4600_v17  ;;  %v4503_v37 = vmul.f32 %v4398_v31, %v6579_v26  ;;  %v4505_v39 = vmul.f32 %v4398_v31, %v6581_v1  ;;  %v4542_v33 = vpack.c.bf16 %v4506_v50, %v4504_v48  ;;  %v4508_v35 = vmul.f32 %v4410_v15, %v6573_v53 }
 0x1de   : > { %4562 = vmatpush1.bf16.msra.mxu0 %v4529_v9  ;;  %v4510_v47 = vmul.f32 %v4410_v15, %v6575_v19  ;;  %v4418_v9 = vrot.slane %v4290_v46, %v5049_v7  ;;  %v4507_v28 = vmul.f32 %v4406_v16, %v6579_v26  ;;  %v4414_v5 = vrot.slane %v4290_v46, %v5047_v6 }
 0x1df   : > { %4563 = vmatprep.subr.bf16.mxu0 %v4532_v55  ;;  %v4541_v63 = vpack.c.bf16 %v4505_v39, %v4503_v37  ;;  %v4509_v55 = vmul.f32 %v4406_v16, %v6581_v1  ;;  %4656 = vmatprep.mubr.bf16.mxu1 %v4960_v45 }
 0x1e0   : > { %v4544_v38 = vpack.c.bf16 %v4510_v47, %v4508_v35  ;;  %v4512_v30 = vmul.f32 %v4418_v9, %v6573_v53  ;;  %v4511_v61 = vmul.f32 %v4414_v5, %v6579_v26  ;;  %v4513_v7 = vmul.f32 %v4414_v5, %v6581_v1  ;;  %4876 = vset.pattern.permute.xlu0 %v4960_v45 }
 0x1e1   : > { %v4543_v29 = vpack.c.bf16 %v4509_v55, %v4507_v28 }
 0x1e2   : > { %4564 = vmatpush1.bf16.msra.mxu0 %v4531_v27  ;;  %v4514_v27 = vmul.f32 %v4418_v9, %v6575_v19  ;;  %v4545_v32 = vpack.c.bf16 %v4513_v7, %v4511_v61 }
 0x1e3   : > { %4565 = vmatprep.subr.bf16.mxu0 %v4534_v43 }
 0x1e4   : > { %v4546_v62 = vpack.c.bf16 %v4514_v27, %v4512_v30 }
 0x1e6   : > { %4566 = vmatpush1.bf16.msra.mxu0 %v4533_v10 }
 0x1e7   : > { %4567 = vmatprep.subr.bf16.mxu0 %v4536_v58 }
 0x1ea   : > { %4568 = vmatpush1.bf16.msra.mxu0 %v4535_v20 }
 0x1eb   : > { %4569 = vmatprep.subr.bf16.mxu0 %v4538_v11 }
 0x1ee   : > { %4570 = vmatpush1.bf16.msra.mxu0 %v4537_v24 }
 0x1ef   : > { %4571 = vmatprep.subr.bf16.mxu0 %v4540_v44 }
 0x1f2   : > { %4572 = vmatpush1.bf16.msra.mxu0 %v4539_v21 }
 0x1f3   : > { %4573 = vmatprep.subr.bf16.mxu0 %v4542_v33 }
 0x1f6   : > { %4574 = vmatpush1.bf16.msra.mxu0 %v4541_v63 }
 0x1f7   : > { %4575 = vmatprep.subr.bf16.mxu0 %v4544_v38 }
 0x1fa   : > { %4576 = vmatpush1.bf16.msra.mxu0 %v4543_v29 }
 0x1fb   : > { %4577 = vmatprep.subr.bf16.mxu0 %v4546_v62 }
 0x1fe   : > { %4578 = vmatpush1.bf16.msra.mxu0 %v4545_v32 }
 0x201   : > { %4580 = vmatmul.mubr.bf16.vlgmr.msra.gmra.mrb[16].mxu0 %v6564_v23  ;;  %v4607_v23 = vld [vmem:[%s6764_s3] sm:$0xff] }
 0x202   : > { %4610 = vperm.xlu0 %4876, %v4607_v23  }
 0x223   : > { %v2657_v6 = vpop.f32.mrb[8].mxu0 }
 0x224   : > { %2664 = vst [vmem:[#allocation2 + $0x20] sm:$0xf] %v2657_v6  ;;  %v3135_v51 = vpop.f32.mrb[8].mxu1  ;;  %v2659_v53 = vpop.f32.mrb[9].mxu0 }
 0x225   : > { %v3144_v3 = vrot.slane %v3135_v51, 4  ;;  %2665 = vst [vmem:[#allocation2 + $0x28] sm:$0xf] %v2659_v53  ;;  %v3137_v19 = vpop.f32.mrb[9].mxu1  ;;  %v2661_v43 = vpop.f32.mrb[10].mxu0 }
 0x226   : > { %v3145_v60 = vrot.slane %v3137_v19, 4  ;;  %v2662_v26 = vpop.f32.mrb[11].mxu0  ;;  %v3139_v57 = vpop.f32.mrb[10].mxu1 }
 0x227   : > { %3148 = vst [vmem:[#allocation2 + $0x20] sm:$0xf0] %v3144_v3  ;;  %v3140_v1 = vpop.f32.mrb[11].mxu1 }
 0x228   : > { %3149 = vst [vmem:[#allocation2 + $0x28] sm:$0xf0] %v3145_v60 }
 0x22e   : > { %v4594_v20 = vld [vmem:[#allocation2 + $0x20] sm:$0xff] }
 0x22f   : > { %v4595_v59 = vld [vmem:[#allocation2 + $0x28] sm:$0xff] }
 0x281   : > { %v4611_v8 = vpop.permute.xlu0 %4610 }
 0x283   : > { %v3619_v49 = vpop.f32.mrb[12].mxu0 }
 0x284   : > { %3626 = vst [vmem:[#allocation2 + $0x30] sm:$0xf] %v3619_v49  ;;  %v3621_v25 = vpop.f32.mrb[13].mxu0 }
 0x285   : > { %3627 = vst [vmem:[#allocation2 + $0x38] sm:$0xf] %v3621_v25  ;;  %v3623_v22 = vpop.f32.mrb[14].mxu0 }
 0x286   : > { %v3624_v10 = vpop.f32.mrb[15].mxu0 }
 0x287   : > { %v4097_v58 = vpop.f32.mrb[12].mxu1 }
 0x288   : > { %v4106_v40 = vrot.slane %v4097_v58, 4  ;;  %v4099_v42 = vpop.f32.mrb[13].mxu1 }
 0x289   : > { %v4107_v18 = vrot.slane %v4099_v42, 4  ;;  %v4101_v52 = vpop.f32.mrb[14].mxu1 }
 0x28a   : > { %4110 = vst [vmem:[#allocation2 + $0x30] sm:$0xf0] %v4106_v40  ;;  %v4102_v56 = vpop.f32.mrb[15].mxu1 }
 0x28b   : > { %4111 = vst [vmem:[#allocation2 + $0x38] sm:$0xf0] %v4107_v18 }
 0x291   : > { %v4596_v41 = vld [vmem:[#allocation2 + $0x30] sm:$0xff] }
 0x292   : > { %v4597_v0 = vld [vmem:[#allocation2 + $0x38] sm:$0xff]  ;;  %v4602_v13 = vpack.c.bf16 %v4596_v41, %v4594_v20 }
 0x293   : > { %v4603_v17 = vpack.c.bf16 %v4597_v0, %v4595_v59 }
 0x295   : > { %4626 = vmatprep.subr.bf16.mxu1 %v4603_v17 }
 0x296   : > { %4627 = vmatpush1.bf16.msra.mxu1 %v4602_v13 }
 0x2d4   : > { %v4581_v36 = vpop.f32.mrb[16].mxu0 }
 0x2d5   : > { %4588 = vst [vmem:[#allocation2 + $0x40] sm:$0xf] %v4581_v36  ;;  %v4583_v4 = vpop.f32.mrb[17].mxu0 }
 0x2d6   : > { %4589 = vst [vmem:[#allocation2 + $0x48] sm:$0xf] %v4583_v4  ;;  %v4585_v2 = vpop.f32.mrb[18].mxu0 }
 0x2d7   : > { %v4586_v34 = vpop.f32.mrb[19].mxu0 }
 0x2dc   : > { %v4598_v11 = vld [vmem:[#allocation2 + $0x40] sm:$0xf] }
 0x2dd   : > { %v4599_v12 = vld [vmem:[#allocation2 + $0x48] sm:$0xf]  ;;  %v4604_v14 = vpack.c.bf16 %v4598_v11, %v4598_v11 }
 0x2de   : > { %v4605_v44 = vpack.c.bf16 %v4599_v12, %v4599_v12 }
 0x2df   : > { %v4619_v24 = vsel %vm4617_vm0, %v4604_v14, 0 }
 0x2e0   : > { %4809 = vmatprep.subr.msk.bf16.mxu1 %vm4617_vm0, %v4605_v44 }
 0x2e1   : > { %4629 = vmatpush1.bf16.msra.mxu1 %v4619_v24 }
 0x2e4   : > { %4810 = vmatmul.mubr.msk.bf16.vlgmr.msra.gmra.mrb[16].mxu1 %vm4613_vm1, %v4606_v54 }
 0x3b7   : > { %v4658_v31 = vpop.f32.mrb[16].mxu1 }
 0x3b8   : > { %v4659_v48 = vadd.f32 %v4658_v31, %v4611_v8  ;;  %v4660_v50 = vpop.f32.mrb[17].mxu1 }
 0x3b9   : > { %v4661_v15 = vadd.f32 %v4660_v50, %v4611_v8  ;;  %v4662_v46 = vpop.f32.mrb[18].mxu1 }
 0x3ba   : > { %4665 = vst [vmem:[%s230_s29] sm:$0xff] %v4659_v48  ;;  %v4663_v21 = vpop.f32.mrb[19].mxu1 }
 0x3bb   : > { %4666 = vst [vmem:[%s230_s29 + $0x8] sm:$0xff] %v4661_v15 }
 0x3bc   : > { %4892 = shalt.err (!%p4889_p5)
}
 0x3bd   : > { %s4893_s12 = scalar_lea.hbm %s6714_s7, 256  ;;  %s4897_s21 = scalar_lea.hbm %s6765_s4, 512 }
 0x3be   : > { %p4894_p6 = scmp.ne.s32.totalorder %s6714_s7, %s4893_s12  ;;  %p4898_p10 = scmp.lt.u32.totalorder %s6714_s7, %s6765_s4 }
 0x3bf   : > { %p4899_p11 = scmp.lt.u32.totalorder %s4897_s21, %s4893_s12  ;;  %p4901_p13 = scmp.lt.u32.totalorder %s4893_s12, %s6714_s7 }
 0x3c0   : > { %p4895_p7 = pnand %p4894_p6, %p5027_p4 }
 0x3c1   : > { %p4900_p12 = por %p4899_p11, %p4898_p10 }
 0x3c2   : > { %p4896_p9 = pneg %p4895_p7 }
 0x3c3   : > { %p4902_p0 = por %p4901_p13, %p4900_p12 }
 0x3c5   : > { %p4903_p1 = pnand %p4902_p0, %p4896_p9 }
 0x3c7   : > { %4906 = shalt.err (!%p4903_p1)
}
 0x3c8   : > { %4819 = dma.vmem_to_hbm [thread:$0]  (%p5027_p4), %s6716_s30, 256, %s6714_s7, %s4668_s18  }
 0x3c9 PF: > { %p4825_p2 = scmp.ge.s32.totalorder %s4957_s20, 2  ;;  %s4696_s26 = sand.u32 1, %s4937_s15  }
 0x3ca   : > { %s4697_s29 = scalar_lea.sflag [#allocation4], %s4696_s26 }
 0x3cb   : > { %p4822_p3 = pnand %p4825_p2, %p5034_p8 }
 0x3cd   : > { %4932 = dma.done.wait (!%p4822_p3), %s4697_s29, 256  }
 0x3ce   : > { %4934 = vsyncadd (!%p4822_p3), %s4697_s29, 4294967040  ;;  %s17_s20 = sadd.s32 1, %s4957_s20   ;;  %s6768_s15 = smov %s4941_s16 }
 0x3cf   : > { %p14_p5 = scmp.ge.s32.totalorder %s17_s20, 4   ;;  %s6769_s16 = smov %s4945_s17 }
 0x3d0   : > { %s6770_s17 = smov %s5040_s28  ;;  %s6771_s18 = smov %s4953_s19 }
 0x3d1   : > { %s6772_s19 = smov %s6774_s23  ;;  %16 = sbr.rel (!%p14_p5) target bundleno = 4 (0x4), region = 100 }
 0x3d8   :  { %4702 = vsyncpa [#allocation4], 1 }
 0x3d9   :  { %4704 = vsyncpa [#allocation4 + $0x1], 1 }

</bundles_post_ra>
